<compile_context>
chip_gen: v5e
topology: v5e:2x2
jax: 0.10.0
libtpu: 0.0.40
codegen_flags: <defaults>
</compile_context>

<pallas_src>
import functools

import jax
import jax.numpy as jnp
from jax.experimental import pallas as pl
from jax.experimental.pallas import tpu as pltpu


def _round_up(x, m):
    return ((x + m - 1) // m) * m


def point_model_kernel(
    x_ref,                       # (TILE_B, TILE_N, 3)  f32
    w1_ref, b1_ref,              # (3, 64)    bf16, (1, 64)    f32
    w2_ref, b2_ref,              # (64, 128)  bf16, (1, 128)   f32
    w3_ref, b3_ref,              # (128,1024) bf16, (1, 1024)  f32
    fw1_ref, fb1_ref,            # (1024,512) bf16, (1, 512)   f32
    fw2_ref, fb2_ref,            # (512, 256) bf16, (1, 256)   f32
    fw3_ref, fb3_ref,            # (256,Cpad) bf16, (1, Cpad)  f32
    o_ref,                       # (TILE_B, Cpad) f32
    acc_ref,                     # (TILE_B, 1024) f32 scratch (running max)
    *, tile_b, tile_n, n_points, needs_mask, c3_chunk,
):
    n_idx = pl.program_id(1)
    n_last = pl.num_programs(1) - 1

    @pl.when(n_idx == 0)
    def _init():
        acc_ref[...] = jnp.full(acc_ref.shape, -jnp.inf, dtype=acc_ref.dtype)

    m_rows = tile_b * tile_n

    # ---- Per-point MLP, layers 1-2, fused over the whole batch block ------
    # (TILE_B, TILE_N, 3) -> (M, 3) is a free leading-dim collapse.
    x = x_ref[...].reshape(m_rows, 3).astype(jnp.bfloat16)
    h = jnp.dot(x, w1_ref[...], preferred_element_type=jnp.float32) + b1_ref[...]
    h = jnp.maximum(h, 0.0)                                      # (M, 64)
    h = jnp.dot(h.astype(jnp.bfloat16), w2_ref[...],
                preferred_element_type=jnp.float32) + b2_ref[...]
    h2 = jnp.maximum(h, 0.0).astype(jnp.bfloat16)                # (M, 128)

    if needs_mask:
        # Mask padded point rows of the last point-block to -inf so they
        # cannot corrupt the pooled max.
        row = jax.lax.broadcasted_iota(jnp.int32, (tile_n, 1), 0)
        valid3 = ((n_idx * tile_n + row) < n_points)[None, :, :]  # (1,TILE_N,1)

    # ---- Layer 3 + bias/ReLU/mask/max, chunked over its 1024 outputs ------
    n_out3 = w3_ref.shape[1]
    for lo in range(0, n_out3, c3_chunk):
        hc = jnp.dot(h2, w3_ref[:, lo:lo + c3_chunk],
                     preferred_element_type=jnp.float32)
        hc = hc + b3_ref[:, lo:lo + c3_chunk]
        hc = jnp.maximum(hc, 0.0)                                 # (M, chunk)
        hc = hc.reshape(tile_b, tile_n, c3_chunk)
        if needs_mask:
            hc = jnp.where(valid3, hc, -jnp.inf)
        m = jnp.max(hc, axis=1)                                   # (TILE_B, chunk)
        acc_ref[:, lo:lo + c3_chunk] = jnp.maximum(
            acc_ref[:, lo:lo + c3_chunk], m)

    # ---- FC head, once per batch block, on the pooled (TILE_B, 1024) ------
    @pl.when(n_idx == n_last)
    def _head():
        g = acc_ref[...].astype(jnp.bfloat16)                     # (TILE_B, 1024)
        f = jnp.dot(g, fw1_ref[...],
                    preferred_element_type=jnp.float32) + fb1_ref[...]
        f = jnp.maximum(f, 0.0)                                   # (TILE_B, 512)
        f = jnp.dot(f.astype(jnp.bfloat16), fw2_ref[...],
                    preferred_element_type=jnp.float32) + fb2_ref[...]
        f = jnp.maximum(f, 0.0)                                   # (TILE_B, 256)
        out = jnp.dot(f.astype(jnp.bfloat16), fw3_ref[...],
                      preferred_element_type=jnp.float32) + fb3_ref[...]
        o_ref[...] = out.astype(o_ref.dtype)                      # (TILE_B, Cpad)


def point_model_forward(x, params, num_classes, *,
                        tile_b=32, tile_n=128, c3_chunk=256):
    """x: (B, N, 3) float32.  params: prepared dict (bf16 weights, f32 biases,
    fw3/fb3 padded to a multiple of 128 classes)."""
    B, N, c_in = x.shape
    assert c_in == 3
    assert 1024 % c3_chunk == 0

    TILE_B = min(tile_b, _round_up(B, 8))
    # v7x megacore: keep >= 2 batch blocks when possible so the 'parallel'
    # batch axis actually shards across both TensorCores.
    while (TILE_B > 8 and (TILE_B // 2) % 8 == 0
           and _round_up(B, TILE_B) // TILE_B < 2):
        TILE_B //= 2
    TILE_N = min(tile_n, _round_up(N, 8))
    B_pad = _round_up(B, TILE_B)
    N_pad = _round_up(N, TILE_N)
    needs_mask = N_pad != N   # note: N_pad - N < TILE_N, so a fully-padded
                              # point block can never occur (keeps -inf init safe)

    C_pad = params["fw3"].shape[1]

    x_p = x
    if (B_pad, N_pad) != (B, N):
        x_p = jnp.pad(x, ((0, B_pad - B), (0, N_pad - N), (0, 0)))

    param_order = ["w1", "b1", "w2", "b2", "w3", "b3",
                   "fw1", "fb1", "fw2", "fb2", "fw3", "fb3"]
    param_args = [params[k] for k in param_order]

    def const_spec(p):
        nd = p.ndim
        return pl.BlockSpec(p.shape, lambda b, n, _nd=nd: (0,) * _nd)

    in_specs = [pl.BlockSpec((TILE_B, TILE_N, 3), lambda b, n: (b, n, 0))]
    in_specs += [const_spec(p) for p in param_args]

    kernel = functools.partial(
        point_model_kernel,
        tile_b=TILE_B, tile_n=TILE_N, n_points=N, needs_mask=needs_mask,
        c3_chunk=c3_chunk)

    out = pl.pallas_call(
        kernel,
        out_shape=jax.ShapeDtypeStruct((B_pad, C_pad), jnp.float32),
        grid_spec=pltpu.PrefetchScalarGridSpec(
            num_scalar_prefetch=0,
            grid=(B_pad // TILE_B, N_pad // TILE_N),
            in_specs=in_specs,
            out_specs=pl.BlockSpec((TILE_B, C_pad), lambda b, n: (b, 0)),
            scratch_shapes=[pltpu.VMEM((TILE_B, 1024), jnp.float32)],
        ),
        compiler_params=pltpu.CompilerParams(
            dimension_semantics=("parallel", "arbitrary"),
            # ~20 MiB needed at the default (32, 128) tile; 32 MiB leaves
            # headroom on v7x's 64 MiB VMEM and is the default scoped limit
            # on v6e/v7x anyway.
            vmem_limit_bytes=32 * 1024 * 1024,
        ),
    )(x_p, *param_args)

    return out[:B, :num_classes]


def init_params(key, num_classes):
    """Synthetic f32 parameters with torch-equivalent shapes: Conv1d weights
    (out, in, 1) collapsed to (in, out), Linear weights transposed to (in, out)."""
    dims = [
        ("w1", (3, 64)), ("b1", (1, 64)),
        ("w2", (64, 128)), ("b2", (1, 128)),
        ("w3", (128, 1024)), ("b3", (1, 1024)),
        ("fw1", (1024, 512)), ("fb1", (1, 512)),
        ("fw2", (512, 256)), ("fb2", (1, 256)),
        ("fw3", (256, num_classes)), ("fb3", (1, num_classes)),
    ]
    params = {}
    keys = jax.random.split(key, len(dims))
    for (name, shape), k in zip(dims, keys):
        fan_in = shape[0] if name.startswith(("w", "fw")) else shape[1]
        scale = 1.0 / jnp.sqrt(jnp.float32(fan_in))
        params[name] = jax.random.uniform(
            k, shape, jnp.float32, minval=-scale, maxval=scale)
    return params


def prepare_params(params_f32, num_classes):
    """bf16 weights for the MXU, f32 biases, classifier padded to 128 lanes."""
    c_pad = _round_up(num_classes, 128)
    out = {}
    for name, v in params_f32.items():
        if name in ("fw3", "fb3"):
            v = jnp.pad(v, ((0, 0), (0, c_pad - v.shape[1])))
        if name.startswith(("w", "fw")):
            v = v.astype(jnp.bfloat16)
        out[name] = v
    return out


def point_model_reference(x, params_f32):
    """Pure-JAX reference mirroring the torch forward, emulating the kernel's
    bf16-operand / f32-accumulation matmul numerics."""
    bf16 = jnp.bfloat16
    p = params_f32

    def mm(a, w):
        return jnp.dot(a.astype(bf16), w.astype(bf16),
                       preferred_element_type=jnp.float32)

    h = jnp.maximum(mm(x, p["w1"]) + p["b1"], 0.0)
    h = jnp.maximum(mm(h, p["w2"]) + p["b2"], 0.0)
    h = jnp.maximum(mm(h, p["w3"]) + p["b3"], 0.0)   # (B, N, 1024)
    g = jnp.max(h, axis=1)                            # (B, 1024)
    f = jnp.maximum(mm(g, p["fw1"]) + p["fb1"], 0.0)
    f = jnp.maximum(mm(f, p["fw2"]) + p["fb2"], 0.0)
    return mm(f, p["fw3"]) + p["fb3"]


if __name__ == "__main__":
    B, N, num_classes = 2, 16, 10
    key = jax.random.PRNGKey(0)
    k_x, k_p = jax.random.split(key)

    x = jax.random.normal(k_x, (B, N, 3), dtype=jnp.float32)
    params_f32 = init_params(k_p, num_classes)
    params = prepare_params(params_f32, num_classes)

    out = point_model_forward(x, params, num_classes)
    out = jax.block_until_ready(out)

    ref = point_model_reference(x, params_f32)
    assert out.shape == (B, num_classes), out.shape
    err = float(jnp.max(jnp.abs(out - ref)))
    assert jnp.allclose(out, ref, atol=2e-3, rtol=2e-3), f"mismatch, max err={err}"

    print("KERNEL_OK")
</pallas_src>

<mosaic_0001>
module attributes {stable_mosaic.version = 11 : i64} {
  func.func @point_model_kernel(%arg0: i32, %arg1: i32, %arg2: memref<8x16x3xf32, #tpu.memory_space<vmem>>, %arg3: memref<3x64xbf16, #tpu.memory_space<vmem>>, %arg4: memref<1x64xf32, #tpu.memory_space<vmem>>, %arg5: memref<64x128xbf16, #tpu.memory_space<vmem>>, %arg6: memref<1x128xf32, #tpu.memory_space<vmem>>, %arg7: memref<128x1024xbf16, #tpu.memory_space<vmem>>, %arg8: memref<1x1024xf32, #tpu.memory_space<vmem>>, %arg9: memref<1024x512xbf16, #tpu.memory_space<vmem>>, %arg10: memref<1x512xf32, #tpu.memory_space<vmem>>, %arg11: memref<512x256xbf16, #tpu.memory_space<vmem>>, %arg12: memref<1x256xf32, #tpu.memory_space<vmem>>, %arg13: memref<256x128xbf16, #tpu.memory_space<vmem>>, %arg14: memref<1x128xf32, #tpu.memory_space<vmem>>, %arg15: memref<8x128xf32, #tpu.memory_space<vmem>>, %arg16: memref<8x1024xf32, #tpu.memory_space<vmem>>) attributes {dimension_semantics = [#tpu.dimension_semantics<parallel>, #tpu.dimension_semantics<arbitrary>], iteration_bounds = array<i64: 1, 1>, scalar_prefetch = 0 : i64, scratch_operands = 1 : i64, tpu.core_type = #tpu.core_type<tc>, window_params = [{transform_indices = @transform_0, window_bounds = array<i64: 8, 16, 3>}, {pipeline_mode = #tpu.pipeline_mode<synchronous>, transform_indices = @transform_1, window_bounds = array<i64: 3, 64>}, {pipeline_mode = #tpu.pipeline_mode<synchronous>, transform_indices = @transform_2, window_bounds = array<i64: 1, 64>}, {pipeline_mode = #tpu.pipeline_mode<synchronous>, transform_indices = @transform_3, window_bounds = array<i64: 64, 128>}, {pipeline_mode = #tpu.pipeline_mode<synchronous>, transform_indices = @transform_4, window_bounds = array<i64: 1, 128>}, {pipeline_mode = #tpu.pipeline_mode<synchronous>, transform_indices = @transform_5, window_bounds = array<i64: 128, 1024>}, {pipeline_mode = #tpu.pipeline_mode<synchronous>, transform_indices = @transform_6, window_bounds = array<i64: 1, 1024>}, {pipeline_mode = #tpu.pipeline_mode<synchronous>, transform_indices = @transform_7, window_bounds = array<i64: 1024, 512>}, {pipeline_mode = #tpu.pipeline_mode<synchronous>, transform_indices = @transform_8, window_bounds = array<i64: 1, 512>}, {pipeline_mode = #tpu.pipeline_mode<synchronous>, transform_indices = @transform_9, window_bounds = array<i64: 512, 256>}, {pipeline_mode = #tpu.pipeline_mode<synchronous>, transform_indices = @transform_10, window_bounds = array<i64: 1, 256>}, {pipeline_mode = #tpu.pipeline_mode<synchronous>, transform_indices = @transform_11, window_bounds = array<i64: 256, 128>}, {pipeline_mode = #tpu.pipeline_mode<synchronous>, transform_indices = @transform_12, window_bounds = array<i64: 1, 128>}, {transform_indices = @transform_13, window_bounds = array<i64: 8, 128>}]} {
    %c0_i32 = arith.constant 0 : i32
    %0 = arith.cmpi eq, %arg1, %c0_i32 : i32
    %1 = arith.extui %0 : i1 to i32
    %c0_i32_0 = arith.constant 0 : i32
    %2 = arith.cmpi ne, %1, %c0_i32_0 : i32
    scf.if %2 {
      %cst_57 = arith.constant 0xFF800000 : f32
      %73 = vector.broadcast %cst_57 : f32 to vector<8x1024xf32>
      %c0_58 = arith.constant 0 : index
      %c0_59 = arith.constant 0 : index
      %74 = vector.load %arg16[%c0_58, %c0_59] : memref<8x1024xf32, #tpu.memory_space<vmem>>, vector<8x1024xf32>
      tpu.vector_store %arg16[%c0_58, %c0_59], %73 {strides = array<i32>} : memref<8x1024xf32, #tpu.memory_space<vmem>>, vector<8x1024xf32>,
    } else {
    }
    %c0 = arith.constant 0 : index
    %c0_1 = arith.constant 0 : index
    %c0_2 = arith.constant 0 : index
    %3 = vector.load %arg2[%c0, %c0_1, %c0_2] : memref<8x16x3xf32, #tpu.memory_space<vmem>>, vector<8x16x3xf32>
    %4 = vector.shape_cast %3 : vector<8x16x3xf32> to vector<128x3xf32>
    %5 = arith.truncf %4 : vector<128x3xf32> to vector<128x3xbf16>
    %c0_3 = arith.constant 0 : index
    %c0_4 = arith.constant 0 : index
    %6 = vector.load %arg3[%c0_3, %c0_4] : memref<3x64xbf16, #tpu.memory_space<vmem>>, vector<3x64xbf16>
    %cst = arith.constant dense<0.000000e+00> : vector<128x64xf32>
    %7 = tpu.matmul %5, %6, %cst {dimension_numbers = #tpu.dot_dimension_numbers<[1], [0], [0], [1], [0, 0, 1, 1], [], []>} : vector<128x3xbf16>, vector<3x64xbf16>, vector<128x64xf32> -> vector<128x64xf32>
    %c0_5 = arith.constant 0 : index
    %c0_6 = arith.constant 0 : index
    %8 = vector.load %arg4[%c0_5, %c0_6] : memref<1x64xf32, #tpu.memory_space<vmem>>, vector<1x64xf32>
    %9 = vector.broadcast %8 : vector<1x64xf32> to vector<128x64xf32>
    %10 = arith.addf %7, %9 : vector<128x64xf32>
    %cst_7 = arith.constant 0.000000e+00 : f32
    %11 = vector.broadcast %cst_7 : f32 to vector<128x64xf32>
    %12 = arith.maximumf %10, %11 : vector<128x64xf32>
    %13 = arith.truncf %12 : vector<128x64xf32> to vector<128x64xbf16>
    %c0_8 = arith.constant 0 : index
    %c0_9 = arith.constant 0 : index
    %14 = vector.load %arg5[%c0_8, %c0_9] : memref<64x128xbf16, #tpu.memory_space<vmem>>, vector<64x128xbf16>
    %cst_10 = arith.constant dense<0.000000e+00> : vector<128x128xf32>
    %15 = tpu.matmul %13, %14, %cst_10 {dimension_numbers = #tpu.dot_dimension_numbers<[1], [0], [0], [1], [0, 0, 1, 1], [], []>} : vector<128x64xbf16>, vector<64x128xbf16>, vector<128x128xf32> -> vector<128x128xf32>
    %c0_11 = arith.constant 0 : index
    %c0_12 = arith.constant 0 : index
    %16 = vector.load %arg6[%c0_11, %c0_12] : memref<1x128xf32, #tpu.memory_space<vmem>>, vector<1x128xf32>
    %17 = vector.broadcast %16 : vector<1x128xf32> to vector<128x128xf32>
    %18 = arith.addf %15, %17 : vector<128x128xf32>
    %cst_13 = arith.constant 0.000000e+00 : f32
    %19 = vector.broadcast %cst_13 : f32 to vector<128x128xf32>
    %20 = arith.maximumf %18, %19 : vector<128x128xf32>
    %21 = arith.truncf %20 : vector<128x128xf32> to vector<128x128xbf16>
    %c0_14 = arith.constant 0 : index
    %c0_15 = arith.constant 0 : index
    %22 = vector.load %arg7[%c0_14, %c0_15] : memref<128x1024xbf16, #tpu.memory_space<vmem>>, vector<128x256xbf16>
    %cst_16 = arith.constant dense<0.000000e+00> : vector<128x256xf32>
    %23 = tpu.matmul %21, %22, %cst_16 {dimension_numbers = #tpu.dot_dimension_numbers<[1], [0], [0], [1], [0, 0, 1, 1], [], []>} : vector<128x128xbf16>, vector<128x256xbf16>, vector<128x256xf32> -> vector<128x256xf32>
    %c0_17 = arith.constant 0 : index
    %c0_18 = arith.constant 0 : index
    %24 = vector.load %arg8[%c0_17, %c0_18] : memref<1x1024xf32, #tpu.memory_space<vmem>>, vector<1x256xf32>
    %25 = vector.broadcast %24 : vector<1x256xf32> to vector<128x256xf32>
    %26 = arith.addf %23, %25 : vector<128x256xf32>
    %cst_19 = arith.constant 0.000000e+00 : f32
    %27 = vector.broadcast %cst_19 : f32 to vector<128x256xf32>
    %28 = arith.maximumf %26, %27 : vector<128x256xf32>
    %29 = vector.shape_cast %28 : vector<128x256xf32> to vector<8x16x256xf32>
    %cst_20 = arith.constant dense<0xFF800000> : vector<8x256xf32>
    %30 = vector.multi_reduction <maximumf>, %29, %cst_20 [1] : vector<8x16x256xf32> to vector<8x256xf32>
    %c0_21 = arith.constant 0 : index
    %c0_22 = arith.constant 0 : index
    %31 = vector.load %arg16[%c0_21, %c0_22] : memref<8x1024xf32, #tpu.memory_space<vmem>>, vector<8x256xf32>
    %32 = arith.maximumf %31, %30 : vector<8x256xf32>
    %c0_23 = arith.constant 0 : index
    %c0_24 = arith.constant 0 : index
    %33 = vector.load %arg16[%c0_23, %c0_24] : memref<8x1024xf32, #tpu.memory_space<vmem>>, vector<8x256xf32>
    tpu.vector_store %arg16[%c0_23, %c0_24], %32 {strides = array<i32>} : memref<8x1024xf32, #tpu.memory_space<vmem>>, vector<8x256xf32>,
    %c0_25 = arith.constant 0 : index
    %c256 = arith.constant 256 : index
    %34 = vector.load %arg7[%c0_25, %c256] : memref<128x1024xbf16, #tpu.memory_space<vmem>>, vector<128x256xbf16>
    %cst_26 = arith.constant dense<0.000000e+00> : vector<128x256xf32>
    %35 = tpu.matmul %21, %34, %cst_26 {dimension_numbers = #tpu.dot_dimension_numbers<[1], [0], [0], [1], [0, 0, 1, 1], [], []>} : vector<128x128xbf16>, vector<128x256xbf16>, vector<128x256xf32> -> vector<128x256xf32>
    %c0_27 = arith.constant 0 : index
    %c256_28 = arith.constant 256 : index
    %36 = vector.load %arg8[%c0_27, %c256_28] : memref<1x1024xf32, #tpu.memory_space<vmem>>, vector<1x256xf32>
    %37 = vector.broadcast %36 : vector<1x256xf32> to vector<128x256xf32>
    %38 = arith.addf %35, %37 : vector<128x256xf32>
    %cst_29 = arith.constant 0.000000e+00 : f32
    %39 = vector.broadcast %cst_29 : f32 to vector<128x256xf32>
    %40 = arith.maximumf %38, %39 : vector<128x256xf32>
    %41 = vector.shape_cast %40 : vector<128x256xf32> to vector<8x16x256xf32>
    %cst_30 = arith.constant dense<0xFF800000> : vector<8x256xf32>
    %42 = vector.multi_reduction <maximumf>, %41, %cst_30 [1] : vector<8x16x256xf32> to vector<8x256xf32>
    %c0_31 = arith.constant 0 : index
    %c256_32 = arith.constant 256 : index
    %43 = vector.load %arg16[%c0_31, %c256_32] : memref<8x1024xf32, #tpu.memory_space<vmem>>, vector<8x256xf32>
    %44 = arith.maximumf %43, %42 : vector<8x256xf32>
    %c0_33 = arith.constant 0 : index
    %c256_34 = arith.constant 256 : index
    %45 = vector.load %arg16[%c0_33, %c256_34] : memref<8x1024xf32, #tpu.memory_space<vmem>>, vector<8x256xf32>
    tpu.vector_store %arg16[%c0_33, %c256_34], %44 {strides = array<i32>} : memref<8x1024xf32, #tpu.memory_space<vmem>>, vector<8x256xf32>,
    %c0_35 = arith.constant 0 : index
    %c512 = arith.constant 512 : index
    %46 = vector.load %arg7[%c0_35, %c512] : memref<128x1024xbf16, #tpu.memory_space<vmem>>, vector<128x256xbf16>
    %cst_36 = arith.constant dense<0.000000e+00> : vector<128x256xf32>
    %47 = tpu.matmul %21, %46, %cst_36 {dimension_numbers = #tpu.dot_dimension_numbers<[1], [0], [0], [1], [0, 0, 1, 1], [], []>} : vector<128x128xbf16>, vector<128x256xbf16>, vector<128x256xf32> -> vector<128x256xf32>
    %c0_37 = arith.constant 0 : index
    %c512_38 = arith.constant 512 : index
    %48 = vector.load %arg8[%c0_37, %c512_38] : memref<1x1024xf32, #tpu.memory_space<vmem>>, vector<1x256xf32>
    %49 = vector.broadcast %48 : vector<1x256xf32> to vector<128x256xf32>
    %50 = arith.addf %47, %49 : vector<128x256xf32>
    %cst_39 = arith.constant 0.000000e+00 : f32
    %51 = vector.broadcast %cst_39 : f32 to vector<128x256xf32>
    %52 = arith.maximumf %50, %51 : vector<128x256xf32>
    %53 = vector.shape_cast %52 : vector<128x256xf32> to vector<8x16x256xf32>
    %cst_40 = arith.constant dense<0xFF800000> : vector<8x256xf32>
    %54 = vector.multi_reduction <maximumf>, %53, %cst_40 [1] : vector<8x16x256xf32> to vector<8x256xf32>
    %c0_41 = arith.constant 0 : index
    %c512_42 = arith.constant 512 : index
    %55 = vector.load %arg16[%c0_41, %c512_42] : memref<8x1024xf32, #tpu.memory_space<vmem>>, vector<8x256xf32>
    %56 = arith.maximumf %55, %54 : vector<8x256xf32>
    %c0_43 = arith.constant 0 : index
    %c512_44 = arith.constant 512 : index
    %57 = vector.load %arg16[%c0_43, %c512_44] : memref<8x1024xf32, #tpu.memory_space<vmem>>, vector<8x256xf32>
    tpu.vector_store %arg16[%c0_43, %c512_44], %56 {strides = array<i32>} : memref<8x1024xf32, #tpu.memory_space<vmem>>, vector<8x256xf32>,
    %c0_45 = arith.constant 0 : index
    %c768 = arith.constant 768 : index
    %58 = vector.load %arg7[%c0_45, %c768] : memref<128x1024xbf16, #tpu.memory_space<vmem>>, vector<128x256xbf16>
    %cst_46 = arith.constant dense<0.000000e+00> : vector<128x256xf32>
    %59 = tpu.matmul %21, %58, %cst_46 {dimension_numbers = #tpu.dot_dimension_numbers<[1], [0], [0], [1], [0, 0, 1, 1], [], []>} : vector<128x128xbf16>, vector<128x256xbf16>, vector<128x256xf32> -> vector<128x256xf32>
    %c0_47 = arith.constant 0 : index
    %c768_48 = arith.constant 768 : index
    %60 = vector.load %arg8[%c0_47, %c768_48] : memref<1x1024xf32, #tpu.memory_space<vmem>>, vector<1x256xf32>
    %61 = vector.broadcast %60 : vector<1x256xf32> to vector<128x256xf32>
    %62 = arith.addf %59, %61 : vector<128x256xf32>
    %cst_49 = arith.constant 0.000000e+00 : f32
    %63 = vector.broadcast %cst_49 : f32 to vector<128x256xf32>
    %64 = arith.maximumf %62, %63 : vector<128x256xf32>
    %65 = vector.shape_cast %64 : vector<128x256xf32> to vector<8x16x256xf32>
    %cst_50 = arith.constant dense<0xFF800000> : vector<8x256xf32>
    %66 = vector.multi_reduction <maximumf>, %65, %cst_50 [1] : vector<8x16x256xf32> to vector<8x256xf32>
    %c0_51 = arith.constant 0 : index
    %c768_52 = arith.constant 768 : index
    %67 = vector.load %arg16[%c0_51, %c768_52] : memref<8x1024xf32, #tpu.memory_space<vmem>>, vector<8x256xf32>
    %68 = arith.maximumf %67, %66 : vector<8x256xf32>
    %c0_53 = arith.constant 0 : index
    %c768_54 = arith.constant 768 : index
    %69 = vector.load %arg16[%c0_53, %c768_54] : memref<8x1024xf32, #tpu.memory_space<vmem>>, vector<8x256xf32>
    tpu.vector_store %arg16[%c0_53, %c768_54], %68 {strides = array<i32>} : memref<8x1024xf32, #tpu.memory_space<vmem>>, vector<8x256xf32>,
    %c0_i32_55 = arith.constant 0 : i32
    %70 = arith.cmpi eq, %arg1, %c0_i32_55 : i32
    %71 = arith.extui %70 : i1 to i32
    %c0_i32_56 = arith.constant 0 : i32
    %72 = arith.cmpi ne, %71, %c0_i32_56 : i32
    scf.if %72 {
      %c0_57 = arith.constant 0 : index
      %c0_58 = arith.constant 0 : index
      %73 = vector.load %arg16[%c0_57, %c0_58] : memref<8x1024xf32, #tpu.memory_space<vmem>>, vector<8x1024xf32>
      %74 = arith.truncf %73 : vector<8x1024xf32> to vector<8x1024xbf16>
      %c0_59 = arith.constant 0 : index
      %c0_60 = arith.constant 0 : index
      %75 = vector.load %arg9[%c0_59, %c0_60] : memref<1024x512xbf16, #tpu.memory_space<vmem>>, vector<1024x512xbf16>
      %cst_61 = arith.constant dense<0.000000e+00> : vector<8x512xf32>
      %76 = tpu.matmul %74, %75, %cst_61 {dimension_numbers = #tpu.dot_dimension_numbers<[1], [0], [0], [1], [0, 0, 1, 1], [], []>} : vector<8x1024xbf16>, vector<1024x512xbf16>, vector<8x512xf32> -> vector<8x512xf32>
      %c0_62 = arith.constant 0 : index
      %c0_63 = arith.constant 0 : index
      %77 = vector.load %arg10[%c0_62, %c0_63] : memref<1x512xf32, #tpu.memory_space<vmem>>, vector<1x512xf32>
      %78 = vector.broadcast %77 : vector<1x512xf32> to vector<8x512xf32>
      %79 = arith.addf %76, %78 : vector<8x512xf32>
      %cst_64 = arith.constant 0.000000e+00 : f32
      %80 = vector.broadcast %cst_64 : f32 to vector<8x512xf32>
      %81 = arith.maximumf %79, %80 : vector<8x512xf32>
      %82 = arith.truncf %81 : vector<8x512xf32> to vector<8x512xbf16>
      %c0_65 = arith.constant 0 : index
      %c0_66 = arith.constant 0 : index
      %83 = vector.load %arg11[%c0_65, %c0_66] : memref<512x256xbf16, #tpu.memory_space<vmem>>, vector<512x256xbf16>
      %cst_67 = arith.constant dense<0.000000e+00> : vector<8x256xf32>
      %84 = tpu.matmul %82, %83, %cst_67 {dimension_numbers = #tpu.dot_dimension_numbers<[1], [0], [0], [1], [0, 0, 1, 1], [], []>} : vector<8x512xbf16>, vector<512x256xbf16>, vector<8x256xf32> -> vector<8x256xf32>
      %c0_68 = arith.constant 0 : index
      %c0_69 = arith.constant 0 : index
      %85 = vector.load %arg12[%c0_68, %c0_69] : memref<1x256xf32, #tpu.memory_space<vmem>>, vector<1x256xf32>
      %86 = vector.broadcast %85 : vector<1x256xf32> to vector<8x256xf32>
      %87 = arith.addf %84, %86 : vector<8x256xf32>
      %cst_70 = arith.constant 0.000000e+00 : f32
      %88 = vector.broadcast %cst_70 : f32 to vector<8x256xf32>
      %89 = arith.maximumf %87, %88 : vector<8x256xf32>
      %90 = arith.truncf %89 : vector<8x256xf32> to vector<8x256xbf16>
      %c0_71 = arith.constant 0 : index
      %c0_72 = arith.constant 0 : index
      %91 = vector.load %arg13[%c0_71, %c0_72] : memref<256x128xbf16, #tpu.memory_space<vmem>>, vector<256x128xbf16>
      %cst_73 = arith.constant dense<0.000000e+00> : vector<8x128xf32>
      %92 = tpu.matmul %90, %91, %cst_73 {dimension_numbers = #tpu.dot_dimension_numbers<[1], [0], [0], [1], [0, 0, 1, 1], [], []>} : vector<8x256xbf16>, vector<256x128xbf16>, vector<8x128xf32> -> vector<8x128xf32>
      %c0_74 = arith.constant 0 : index
      %c0_75 = arith.constant 0 : index
      %93 = vector.load %arg14[%c0_74, %c0_75] : memref<1x128xf32, #tpu.memory_space<vmem>>, vector<1x128xf32>
      %94 = vector.broadcast %93 : vector<1x128xf32> to vector<8x128xf32>
      %95 = arith.addf %92, %94 : vector<8x128xf32>
      %c0_76 = arith.constant 0 : index
      %c0_77 = arith.constant 0 : index
      %96 = vector.load %arg15[%c0_76, %c0_77] : memref<8x128xf32, #tpu.memory_space<vmem>>, vector<8x128xf32>
      tpu.vector_store %arg15[%c0_76, %c0_77], %95 {strides = array<i32>} : memref<8x128xf32, #tpu.memory_space<vmem>>, vector<8x128xf32>,
    } else {
    }
    return
  }
  func.func @transform_0(%arg0: i32, %arg1: i32) -> (i32, i32, i32) {
    %c0_i32 = arith.constant 0 : i32
    %c0_i32_0 = arith.constant 0 : i32
    return %arg0, %arg1, %c0_i32 : i32, i32, i32
  }
  func.func @transform_1(%arg0: i32, %arg1: i32) -> (i32, i32) {
    %c0_i32 = arith.constant 0 : i32
    %c0_i32_0 = arith.constant 0 : i32
    %c0_i32_1 = arith.constant 0 : i32
    return %c0_i32, %c0_i32_0 : i32, i32
  }
  func.func @transform_2(%arg0: i32, %arg1: i32) -> (i32, i32) {
    %c0_i32 = arith.constant 0 : i32
    %c0_i32_0 = arith.constant 0 : i32
    %c0_i32_1 = arith.constant 0 : i32
    return %c0_i32, %c0_i32_0 : i32, i32
  }
  func.func @transform_3(%arg0: i32, %arg1: i32) -> (i32, i32) {
    %c0_i32 = arith.constant 0 : i32
    %c0_i32_0 = arith.constant 0 : i32
    %c0_i32_1 = arith.constant 0 : i32
    return %c0_i32, %c0_i32_0 : i32, i32
  }
  func.func @transform_4(%arg0: i32, %arg1: i32) -> (i32, i32) {
    %c0_i32 = arith.constant 0 : i32
    %c0_i32_0 = arith.constant 0 : i32
    %c0_i32_1 = arith.constant 0 : i32
    return %c0_i32, %c0_i32_0 : i32, i32
  }
  func.func @transform_5(%arg0: i32, %arg1: i32) -> (i32, i32) {
    %c0_i32 = arith.constant 0 : i32
    %c0_i32_0 = arith.constant 0 : i32
    %c0_i32_1 = arith.constant 0 : i32
    return %c0_i32, %c0_i32_0 : i32, i32
  }
  func.func @transform_6(%arg0: i32, %arg1: i32) -> (i32, i32) {
    %c0_i32 = arith.constant 0 : i32
    %c0_i32_0 = arith.constant 0 : i32
    %c0_i32_1 = arith.constant 0 : i32
    return %c0_i32, %c0_i32_0 : i32, i32
  }
  func.func @transform_7(%arg0: i32, %arg1: i32) -> (i32, i32) {
    %c0_i32 = arith.constant 0 : i32
    %c0_i32_0 = arith.constant 0 : i32
    %c0_i32_1 = arith.constant 0 : i32
    return %c0_i32, %c0_i32_0 : i32, i32
  }
  func.func @transform_8(%arg0: i32, %arg1: i32) -> (i32, i32) {
    %c0_i32 = arith.constant 0 : i32
    %c0_i32_0 = arith.constant 0 : i32
    %c0_i32_1 = arith.constant 0 : i32
    return %c0_i32, %c0_i32_0 : i32, i32
  }
  func.func @transform_9(%arg0: i32, %arg1: i32) -> (i32, i32) {
    %c0_i32 = arith.constant 0 : i32
    %c0_i32_0 = arith.constant 0 : i32
    %c0_i32_1 = arith.constant 0 : i32
    return %c0_i32, %c0_i32_0 : i32, i32
  }
  func.func @transform_10(%arg0: i32, %arg1: i32) -> (i32, i32) {
    %c0_i32 = arith.constant 0 : i32
    %c0_i32_0 = arith.constant 0 : i32
    %c0_i32_1 = arith.constant 0 : i32
    return %c0_i32, %c0_i32_0 : i32, i32
  }
  func.func @transform_11(%arg0: i32, %arg1: i32) -> (i32, i32) {
    %c0_i32 = arith.constant 0 : i32
    %c0_i32_0 = arith.constant 0 : i32
    %c0_i32_1 = arith.constant 0 : i32
    return %c0_i32, %c0_i32_0 : i32, i32
  }
  func.func @transform_12(%arg0: i32, %arg1: i32) -> (i32, i32) {
    %c0_i32 = arith.constant 0 : i32
    %c0_i32_0 = arith.constant 0 : i32
    %c0_i32_1 = arith.constant 0 : i32
    return %c0_i32, %c0_i32_0 : i32, i32
  }
  func.func @transform_13(%arg0: i32, %arg1: i32) -> (i32, i32) {
    %c0_i32 = arith.constant 0 : i32
    %c0_i32_0 = arith.constant 0 : i32
    return %arg0, %c0_i32 : i32, i32
  }
}

</mosaic_0001>

<bundles_post_ra>
// kernel: tpu_custom_call.1
= control target key start
LH: loop header
LB: loop body
LE: loop exit
PB: predicated region body
PF: predicated region fallthrough
CT: control target
= control target key end

     0   :  { %18 = vsyncpa [#allocation4], 0  ;;  %s7896_s0 = inlined_call_operand.vmem [shape: f32[8,16,3], index: 0, kind: input, shape index: {}]   ;;  %s7897_s1 = inlined_call_operand.vmem [shape: bf16[3,64], index: 1, kind: input, shape index: {}]   ;;  %s7898_s2 = inlined_call_operand.hbm [shape: f32[1,64], index: 2, kind: input, shape index: {}]   ;;  %s7899_s3 = inlined_call_operand.vmem [shape: bf16[64,128], index: 3, kind: input, shape index: {}]   ;;  %s7900_s4 = inlined_call_operand.hbm [shape: f32[1,128], index: 4, kind: input, shape index: {}]   ;;  %s7901_s5 = inlined_call_operand.hbm [shape: bf16[128,1024], index: 5, kind: input, shape index: {}]   ;;  %s7902_s6 = inlined_call_operand.hbm [shape: f32[1,1024], index: 6, kind: input, shape index: {}]   ;;  %s7903_s7 = inlined_call_operand.hbm [shape: bf16[1024,512], index: 7, kind: input, shape index: {}]   ;;  %s7904_s8 = inlined_call_operand.hbm [shape: f32[1,512], index: 8, kind: input, shape index: {}]   ;;  %s7905_s9 = inlined_call_operand.hbm [shape: bf16[512,256], index: 9, kind: input, shape index: {}]   ;;  %s7906_s10 = inlined_call_operand.hbm [shape: f32[1,256], index: 10, kind: input, shape index: {}]   ;;  %s7907_s11 = inlined_call_operand.vmem [shape: bf16[256,128], index: 11, kind: input, shape index: {}]   ;;  %s7908_s12 = inlined_call_operand.vmem [shape: f32[1,128], index: 12, kind: input, shape index: {}]   ;;  %s7909_s13 = inlined_call_operand.hbm [shape: f32[8,128], index: 13, kind: output, shape index: {}]  }
   0x1   :  { %19 = vsyncpa [#allocation7], 0 }
   0x2   :  { %20 = vsyncpa [#allocation10], 0 }
   0x3   :  { %21 = vsyncpa [#allocation13], 0 }
   0x4   :  { %22 = vsyncpa [#allocation16], 0  ;;  %s46_s27 = sshll.u32 %s7900_s4, 4  ;;  %s47_s27 = int_to_ptr.hbm [resolvable:$true] %s46_s27 }
   0x5   :  { %23 = vsyncpa [#allocation5], 0  ;;  %s6927_s28 = smov [#allocation6]   ;;  %s70_s15 = sshll.u32 %s7902_s6, 4  ;;  %s71_s15 = int_to_ptr.hbm [resolvable:$true] %s70_s15 }
   0x6   :  { %s48_s29 = sshll.u32 %s6927_s28, 4  ;;  %s6928_s16 = smov [#allocation9]   ;;  %s49_s29 = int_to_ptr.vmem [resolvable:$true] %s48_s29 }
   0x7   :  { %51 = dma.hbm_to_vmem [thread:$0]  %s47_s27, 16, %s49_s29, [#allocation7]  }
   0x8   :  { %s72_s17 = sshll.u32 %s6928_s16, 4  ;;  %s94_s20 = sshll.u32 %s7904_s8, 4  ;;  %s73_s17 = int_to_ptr.vmem [resolvable:$true] %s72_s17  ;;  %s95_s20 = int_to_ptr.hbm [resolvable:$true] %s94_s20 }
   0x9   :  { %75 = dma.hbm_to_vmem [thread:$0]  %s71_s15, 128, %s73_s17, [#allocation10]  }
   0xa   :  { %s33_s22 = sshll.u32 %s7898_s2, 4  ;;  %s6929_s23 = smov [#allocation12]   ;;  %s34_s22 = int_to_ptr.hbm [resolvable:$true] %s33_s22 }
   0xb   :  { %s96_s24 = sshll.u32 %s6929_s23, 4  ;;  %s6930_s6 = smov [#allocation3]   ;;  %s97_s24 = int_to_ptr.vmem [resolvable:$true] %s96_s24 }
   0xc   :  { %99 = dma.hbm_to_vmem [thread:$0]  %s95_s20, 64, %s97_s24, [#allocation13]  }
   0xd   :  { %s35_s25 = sshll.u32 %s6930_s6, 4  ;;  %s56_s28 = sshll.u32 %s7901_s5, 4  ;;  %s36_s25 = int_to_ptr.vmem [resolvable:$true] %s35_s25  ;;  %s57_s28 = int_to_ptr.hbm [resolvable:$true] %s56_s28 }
   0xe   :  { %38 = dma.hbm_to_vmem [thread:$0]  %s34_s22, 16, %s36_s25, [#allocation4]  }
   0xf   :  { %s6931_s8 = smov [#allocation8]   ;;  %s80_s2 = sshll.u32 %s7903_s7, 4  ;;  %s81_s2 = int_to_ptr.hbm [resolvable:$true] %s80_s2 }
  0x10   :  { %s58_s29 = sshll.u32 %s6931_s8, 4  ;;  %s6932_s15 = smov 512   ;;  %s59_s29 = int_to_ptr.vmem [resolvable:$true] %s58_s29 }
  0x11   :  { %s6933_s16 = smov 32   ;;  %s6934_s17 = smov [#allocation11]  }
  0x12   :  { %64 = dma.hbm_to_vmem [thread:$0]  %s57_s28, 8192, %s59_s29, [#allocation7], %s6932_s15, %s6932_s15, %s6933_s16  }
  0x13   :  { %s82_s18 = sshll.u32 %s6934_s17, 4  ;;  %s6935_s19 = smov 256   ;;  %s83_s18 = int_to_ptr.vmem [resolvable:$true] %s82_s18 }
  0x14   :  { %s6936_s20 = smov 16   ;;  %s104_s21 = sshll.u32 %s7905_s9, 4  ;;  %s105_s21 = int_to_ptr.hbm [resolvable:$true] %s104_s21 }
  0x15   :  { %88 = dma.hbm_to_vmem [thread:$0]  %s81_s2, 32768, %s83_s18, [#allocation10], %s6935_s19, %s6935_s19, %s6936_s20  }
  0x16   :  { %s6937_s22 = smov [#allocation14]   ;;  %s118_s6 = sshll.u32 %s7906_s10, 4  ;;  %s119_s6 = int_to_ptr.hbm [resolvable:$true] %s118_s6 }
  0x17   :  { %s106_s23 = sshll.u32 %s6937_s22, 4  ;;  %s6938_s25 = smov 128   ;;  %s107_s23 = int_to_ptr.vmem [resolvable:$true] %s106_s23 }
  0x18   :  { %s6939_s26 = smov 8   ;;  %s6940_s27 = smov [#allocation15]  }
  0x19   :  { %112 = dma.hbm_to_vmem [thread:$0]  %s105_s21, 8192, %s107_s23, [#allocation13], %s6938_s25, %s6938_s25, %s6939_s26  }
  0x1a   :  { %s120_s28 = sshll.u32 %s6940_s27, 4  ;;  %s121_s28 = int_to_ptr.vmem [resolvable:$true] %s120_s28 }
  0x1b   :  { %123 = dma.hbm_to_vmem [thread:$0]  %s119_s6, 32, %s121_s28, [#allocation16]  }
  0x1c   :  { %6915 = dma.done.wait [#allocation4], 16  }
  0x1d   :  { %6916 = vsyncadd [#allocation4], 4294967280 }
  0x1e   :  { %6917 = dma.done.wait [#allocation7], 8208  }
  0x1f   :  { %6918 = vsyncadd [#allocation7], 4294959088 }
  0x20   :  { %6919 = dma.done.wait [#allocation10], 32896  }
  0x21   :  { %6920 = vsyncadd [#allocation10], 4294934400 }
  0x22   :  { %6921 = dma.done.wait [#allocation13], 8256  }
  0x23   :  { %6922 = vsyncadd [#allocation13], 4294959040 }
  0x24   :  { %6923 = dma.done.wait [#allocation16], 32  }
  0x25   :  { %6924 = vsyncadd [#allocation16], 4294967264  ;;  %vm227_vm0 = vcmask 1040384   ;;  %vm228_vm1 = vcmask 1041408   ;;  %v6941_v0 = vmov 65535   ;;  %v173_v4 = vld [vmem:[%s7896_s0] sm:$0xff] }
  0x26   :  { %v229_v1 = vsel %vm227_vm0, 4294967295, %v6941_v0  ;;  %v197_v3 = vld [vmem:[%s7897_s1] sm:$0x3]  ;;  %v174_v5 = vld [vmem:[%s7896_s0 + $0x8] sm:$0xff]  ;;  %vm202_vm2 = vcmask 23552   ;;  %v175_v8 = vld [vmem:[%s7896_s0 + $0x10] sm:$0xff] }
  0x27   :  { %v230_v2 = vsel %vm228_vm1, %v229_v1, 0  ;;  %v189_v7 = vpack.c.bf16 %v174_v5, %v173_v4  ;;  %v176_v9 = vld [vmem:[%s7896_s0 + $0x18] sm:$0xff]  ;;  %v177_v11 = vld [vmem:[%s7896_s0 + $0x20] sm:$0xff]  ;;  %v178_v12 = vld [vmem:[%s7896_s0 + $0x28] sm:$0xff]  ;;  %vm343_vm3 = vcmask 523264   ;;  %vm803_vm4 = vcmask 1041409  }
  0x28   :  { %v232_v6 = vand.u32 %v230_v2, %v197_v3  ;;  %v190_v10 = vpack.c.bf16 %v176_v9, %v175_v8  ;;  %v191_v13 = vpack.c.bf16 %v178_v12, %v177_v11  ;;  %v179_v14 = vld [vmem:[%s7896_s0 + $0x30] sm:$0xff]  ;;  %v180_v15 = vld [vmem:[%s7896_s0 + $0x38] sm:$0xff]  ;;  %v181_v17 = vld [vmem:[%s7896_s0 + $0x40] sm:$0xff]  ;;  %vm805_vm5 = vcmask 1042434   ;;  %s4629_s26 = sshll.u32 %s7909_s13, 4  ;;  %s4630_s26 = int_to_ptr.hbm [resolvable:$true] %s4629_s26 }
  0x29   :  { %v192_v16 = vpack.c.bf16 %v180_v15, %v179_v14  ;;  %v182_v18 = vld [vmem:[%s7896_s0 + $0x48] sm:$0xff]  ;;  %v183_v20 = vld [vmem:[%s7896_s0 + $0x50] sm:$0xff]  ;;  %v184_v21 = vld [vmem:[%s7896_s0 + $0x58] sm:$0xff]  ;;  %vm807_vm6 = vcmask 1043459   ;;  %vm809_vm7 = vcmask 1044484   ;;  %vm811_vm8 = vcmask 1045509  }
  0x2a   :  { %241 = vmatpush.bf16.msra.mxu0 %v232_v6  ;;  %v193_v19 = vpack.c.bf16 %v182_v18, %v181_v17  ;;  %v194_v22 = vpack.c.bf16 %v184_v21, %v183_v20  ;;  %v185_v23 = vld [vmem:[%s7896_s0 + $0x60] sm:$0xff]  ;;  %v186_v24 = vld [vmem:[%s7896_s0 + $0x68] sm:$0xff]  ;;  %v6278_v25 = vld [vmem:[%s7899_s3 + $0x18] sm:$0xff]  ;;  %vm813_vm9 = vcmask 1046534   ;;  %vm815_vm10 = vcmask 1047559  }
  0x2b   :  { %v195_v26 = vpack.c.bf16 %v186_v24, %v185_v23  ;;  %372 = vmatpush.bf16.msra.mxu1 %v6278_v25  ;;  %v6277_v27 = vld [vmem:[%s7899_s3 + $0x10] sm:$0xff]  ;;  %v6276_v28 = vld [vmem:[%s7899_s3 + $0x8] sm:$0xff]  ;;  %v6275_v29 = vld [vmem:[%s7899_s3] sm:$0xff] }
  0x2c   :  { %v187_v30 = vld [vmem:[%s7896_s0 + $0x70] sm:$0xff]  ;;  %v188_v31 = vld [vmem:[%s7896_s0 + $0x78] sm:$0xff]  ;;  %v7108_v34 = vld [vmem:[#allocation3] ss:$0 sm:$0xff] }
  0x2d   :  { %4643 = vmatmul.msk.bf16.vlgmr.msra.gmra.mxu0 %vm202_vm2, %v189_v7  ;;  %v196_v32 = vpack.c.bf16 %v188_v31, %v187_v30  ;;  %v4797_v6 = vld [vmem:[#allocation8 + $0x1c8] sm:$0xf]  ;;  %v6309_v9 = vld [vmem:[#allocation8 + $0x1cc] sm:$0xf]  ;;  %v4733_v15 = vld [vmem:[#allocation8 + $0x1c0] sm:$0xf] }
  0x2e   :  { %v6310_v7 = vld [vmem:[#allocation8 + $0x1e4] sm:$0xf0]  ;;  %v6293_v17 = vld [vmem:[#allocation8 + $0x1c4] sm:$0xf]  ;;  %v4725_v24 = vld [vmem:[#allocation8 + $0x180] sm:$0xf] }
  0x2f   :  { %373 = vmatpush.bf16.msra.mxu1 %v6277_v27  ;;  %v4798_v8 = vor.u32 %v6310_v7, %v4797_v6  ;;  %v6292_v25 = vld [vmem:[#allocation8 + $0x19c] sm:$0xf0]  ;;  %v6308_v30 = vld [vmem:[#allocation8 + $0x1a4] sm:$0xf0] }
  0x30   :  { %v4726_v27 = vor.u32 %v6292_v25, %v4725_v24  ;;  %v4765_v6 = vld [vmem:[#allocation8 + $0xc8] sm:$0xf]  ;;  %v6299_v25 = vld [vmem:[#allocation8 + $0x8c] sm:$0xf] }
  0x31   :  { %932 = vmatpush.bf16.msrb.mxu0 %v4798_v8  ;;  %v6302_v7 = vld [vmem:[#allocation8 + $0xe4] sm:$0xf0] }
  0x33   :  { %374 = vmatpush.bf16.msra.mxu1 %v6276_v28  ;;  %v4727_v28 = vld [vmem:[#allocation8 + $0x1a0] sm:$0xf0] }
  0x37   :  { %375 = vmatpush.bf16.msra.mxu1 %v6275_v29  ;;  %v4789_v29 = vld [vmem:[#allocation8 + $0x188] sm:$0xf] }
  0x3d   :  { %4644 = vmatmul.msk.bf16.gmra.mxu0 %vm202_vm2, %v190_v10  ;;  %v4799_v10 = vld [vmem:[#allocation8 + $0x1e8] sm:$0xf0] }
  0x3e   :  { %v4802_v11 = vor.u32 %v6309_v9, %v4799_v10 }
  0x40   :  { %981 = vmatpush.bf16.msrb.mxu1 %v4802_v11  ;;  %v4766_v11 = vor.u32 %v6302_v7, %v4765_v6 }
  0x4d   :  { %4645 = vmatmul.msk.bf16.gmra.mxu0 %vm202_vm2, %v191_v13 }
  0x5d   :  { %4646 = vmatmul.msk.bf16.gmra.mxu0 %vm202_vm2, %v192_v16  ;;  %v6294_v16 = vld [vmem:[#allocation8 + $0x1dc] sm:$0xf0] }
  0x5e   :  { %v4734_v18 = vor.u32 %v6294_v16, %v4733_v15  ;;  %v4693_v16 = vld [vmem:[#allocation8 + $0x80] sm:$0xf] }
  0x60   :  { %543 = vmatpush.bf16.msra.mxu2 %v4734_v18  ;;  %v6283_v18 = vld [vmem:[#allocation8 + $0x84] sm:$0xf] }
  0x64   :  { %544 = vmatpush.bf16.msra.mxu2 %v4726_v27 }
  0x6d   :  { %4647 = vmatmul.msk.bf16.gmra.mxu0 %vm202_vm2, %v193_v19  ;;  %v4735_v19 = vld [vmem:[#allocation8 + $0x1e0] sm:$0xf0] }
  0x7d   :  { %4648 = vmatmul.msk.bf16.gmra.mxu0 %vm202_vm2, %v194_v22  ;;  %v4738_v22 = vor.u32 %v6293_v17, %v4735_v19  ;;  %v6284_v17 = vld [vmem:[#allocation8 + $0x9c] sm:$0xf0] }
  0x7e   :  { %v4694_v19 = vor.u32 %v6284_v17, %v4693_v16 }
  0x7f   :  { %592 = vmatpush.bf16.msra.mxu3 %v4738_v22  ;;  %v6300_v22 = vld [vmem:[#allocation8 + $0xa4] sm:$0xf0] }
  0x8d   :  { %4649 = vmatmul.msk.bf16.gmra.mxu0 %vm202_vm2, %v195_v26  ;;  %v6291_v26 = vld [vmem:[#allocation8 + $0x184] sm:$0xf] }
  0x8e   :  { %v4730_v31 = vor.u32 %v6291_v26, %v4727_v28  ;;  %v4759_v26 = vld [vmem:[#allocation8 + $0xa8] sm:$0xf0] }
  0x8f   :  { %v4762_v28 = vor.u32 %v6299_v25, %v4759_v26 }
  0x90   :  { %593 = vmatpush.bf16.msra.mxu3 %v4730_v31  ;;  %v6281_v31 = vld [vmem:[#allocation8 + $0x44] sm:$0xf] }
  0x9d   :  { %4650 = vmatmul.msk.bf16.gmra.mxu0 %vm202_vm2, %v196_v32  ;;  %v4790_v32 = vor.u32 %v6308_v30, %v4789_v29  ;;  %v4685_v29 = vld [vmem:[#allocation8 + $0x40] sm:$0xf] }
  0x9e   :  { %v6282_v30 = vld [vmem:[#allocation8 + $0x5c] sm:$0xf0] }
  0x9f   :  { %933 = vmatpush.bf16.msrb.mxu0 %v4790_v32  ;;  %v4686_v32 = vor.u32 %v6282_v30, %v4685_v29 }
  0xaa   :  { %v243_v33 = vpop.f32.mrf.mxu0 }
  0xab   :  { %v244_v35 = vadd.f32 %v7108_v34, %v243_v33  ;;  %v6307_v33 = vld [vmem:[#allocation8 + $0x18c] sm:$0xf] }
  0xad   :  { %v283_v38 = vmax.f32 %v244_v35, 0.0  ;;  %v4791_v35 = vld [vmem:[#allocation8 + $0x1a8] sm:$0xf0] }
  0xb2   :  { %v245_v36 = vpop.f32.mrf.mxu0 }
  0xb3   :  { %v246_v37 = vadd.f32 %v7108_v34, %v245_v36  ;;  %v4717_v36 = vld [vmem:[#allocation8 + $0x140] sm:$0xf] }
  0xb5   :  { %v284_v39 = vmax.f32 %v246_v37, 0.0 }
  0xb7   :  { %v299_v40 = vpack.c.bf16 %v284_v39, %v283_v38  ;;  %v4794_v38 = vor.u32 %v6307_v33, %v4791_v35  ;;  %v6290_v39 = vld [vmem:[#allocation8 + $0x15c] sm:$0xf0]  ;;  %v4687_v33 = vld [vmem:[#allocation8 + $0x60] sm:$0xf0]  ;;  %v4749_v35 = vld [vmem:[#allocation8 + $0x48] sm:$0xf] }
  0xb9   :  { %4667 = vmatmul.msk.bf16.vlgmr.msra.gmra.mxu1 %vm343_vm3, %v299_v40  ;;  %v6289_v40 = vld [vmem:[#allocation8 + $0x144] sm:$0xf] }
  0xba   :  { %v248_v41 = vpop.f32.mrf.mxu0  ;;  %982 = vmatpush.bf16.msrb.mxu1 %v4794_v38 }
  0xbb   :  { %v249_v42 = vadd.f32 %v7108_v34, %v248_v41  ;;  %v4719_v41 = vld [vmem:[#allocation8 + $0x160] sm:$0xf0] }
  0xbd   :  { %v285_v45 = vmax.f32 %v249_v42, 0.0  ;;  %v4718_v42 = vor.u32 %v6290_v39, %v4717_v36  ;;  %v6298_v36 = vld [vmem:[#allocation8 + $0x64] sm:$0xf0]  ;;  %v6297_v39 = vld [vmem:[#allocation8 + $0x4c] sm:$0xf] }
  0xbe   :  { %v4750_v38 = vor.u32 %v6298_v36, %v4749_v35  ;;  %v6323_v35 = vld [vmem:[#allocation8 + $0x194] sm:$0xf] }
  0xbf   :  { %545 = vmatpush.bf16.msra.mxu2 %v4718_v42  ;;  %v4677_v42 = vld [vmem:[#allocation8] sm:$0xf]  ;;  %v4855_v36 = vld [vmem:[#allocation8 + $0x1b0] sm:$0xf0] }
  0xc2   :  { %v250_v43 = vpop.f32.mrf.mxu0 }
  0xc3   :  { %v251_v44 = vadd.f32 %v7108_v34, %v250_v43  ;;  %v4722_v43 = vor.u32 %v6289_v40, %v4719_v41  ;;  %v4751_v40 = vld [vmem:[#allocation8 + $0x68] sm:$0xf0] }
  0xc4   :  { %v4754_v41 = vor.u32 %v6297_v39, %v4751_v40  ;;  %v6342_v39 = vld [vmem:[#allocation8 + $0x1f4] sm:$0xf0]  ;;  %v6341_v40 = vld [vmem:[#allocation8 + $0x1dc] sm:$0xf] }
  0xc5   :  { %v286_v46 = vmax.f32 %v251_v44, 0.0  ;;  %v4781_v44 = vld [vmem:[#allocation8 + $0x148] sm:$0xf]  ;;  %594 = vmatpush.bf16.msra.mxu3 %v4722_v43  ;;  %v6280_v43 = vld [vmem:[#allocation8 + $0x1c] sm:$0xf0] }
  0xc7   :  { %v300_v47 = vpack.c.bf16 %v286_v46, %v285_v45  ;;  %v6306_v45 = vld [vmem:[#allocation8 + $0x164] sm:$0xf0]  ;;  %v6305_v46 = vld [vmem:[#allocation8 + $0x14c] sm:$0xf] }
  0xc9   :  { %4668 = vmatmul.msk.bf16.gmra.mxu1 %vm343_vm3, %v300_v47  ;;  %v4782_v47 = vor.u32 %v6306_v45, %v4781_v44  ;;  %v6279_v44 = vld [vmem:[#allocation8 + $0x4] sm:$0xf]  ;;  %v4678_v45 = vor.u32 %v6280_v43, %v4677_v42  ;;  %v4927_v42 = vld [vmem:[#allocation8 + $0x1f8] sm:$0xf0] }
  0xca   :  { %v253_v48 = vpop.f32.mrf.mxu0  ;;  %v4930_v43 = vor.u32 %v6341_v40, %v4927_v42  ;;  %v6316_v42 = vld [vmem:[#allocation8 + $0xac] sm:$0xf0] }
  0xcb   :  { %v254_v49 = vadd.f32 %v7108_v34, %v253_v48  ;;  %v4783_v48 = vld [vmem:[#allocation8 + $0x168] sm:$0xf0]  ;;  %934 = vmatpush.bf16.msrb.mxu0 %v4782_v47  ;;  %v4741_v47 = vld [vmem:[#allocation8 + $0x8] sm:$0xf] }
  0xcd   :  { %v287_v52 = vmax.f32 %v254_v49, 0.0  ;;  %v4709_v49 = vld [vmem:[#allocation8 + $0x100] sm:$0xf] }
  0xd2   :  { %v255_v50 = vpop.f32.mrf.mxu0 }
  0xd3   :  { %v256_v51 = vadd.f32 %v7108_v34, %v255_v50  ;;  %v6288_v50 = vld [vmem:[#allocation8 + $0x11c] sm:$0xf0] }
  0xd5   :  { %v288_v53 = vmax.f32 %v256_v51, 0.0  ;;  %v4786_v51 = vor.u32 %v6305_v46, %v4783_v48  ;;  %v4679_v46 = vld [vmem:[#allocation8 + $0x20] sm:$0xf0]  ;;  %v6296_v48 = vld [vmem:[#allocation8 + $0x24] sm:$0xf0] }
  0xd7   :  { %v301_v54 = vpack.c.bf16 %v288_v53, %v287_v52  ;;  %v6287_v52 = vld [vmem:[#allocation8 + $0x104] sm:$0xf]  ;;  %983 = vmatpush.bf16.msrb.mxu1 %v4786_v51  ;;  %v4742_v51 = vor.u32 %v6296_v48, %v4741_v47 }
  0xd8   :  { %v4711_v53 = vld [vmem:[#allocation8 + $0x120] sm:$0xf0] }
  0xd9   :  { %4669 = vmatmul.msk.bf16.gmra.mxu1 %vm343_vm3, %v301_v54  ;;  %v4710_v54 = vor.u32 %v6288_v50, %v4709_v49  ;;  %v4682_v50 = vor.u32 %v6279_v44, %v4679_v46 }
  0xda   :  { %v258_v55 = vpop.f32.mrf.mxu0 }
  0xdb   :  { %v259_v56 = vadd.f32 %v7108_v34, %v258_v55  ;;  %v4773_v55 = vld [vmem:[#allocation8 + $0x108] sm:$0xf]  ;;  %546 = vmatpush.bf16.msra.mxu2 %v4710_v54 }
  0xdd   :  { %v289_v59 = vmax.f32 %v259_v56, 0.0  ;;  %v6304_v56 = vld [vmem:[#allocation8 + $0x124] sm:$0xf0] }
  0xe2   :  { %v260_v57 = vpop.f32.mrf.mxu0 }
  0xe3   :  { %v261_v58 = vadd.f32 %v7108_v34, %v260_v57  ;;  %v6303_v57 = vld [vmem:[#allocation8 + $0x10c] sm:$0xf] }
  0xe5   :  { %v290_v60 = vmax.f32 %v261_v58, 0.0  ;;  %v4714_v58 = vor.u32 %v6287_v52, %v4711_v53  ;;  %v6295_v52 = vld [vmem:[#allocation8 + $0xc] sm:$0xf] }
  0xe6   :  { %v4743_v53 = vld [vmem:[#allocation8 + $0x28] sm:$0xf0] }
  0xe7   :  { %v302_v61 = vpack.c.bf16 %v290_v60, %v289_v59  ;;  %v4774_v59 = vor.u32 %v6304_v56, %v4773_v55  ;;  %v4775_v60 = vld [vmem:[#allocation8 + $0x128] sm:$0xf0]  ;;  %595 = vmatpush.bf16.msra.mxu3 %v4714_v58  ;;  %v4746_v55 = vor.u32 %v6295_v52, %v4743_v53  ;;  %v6322_v52 = vld [vmem:[#allocation8 + $0x16c] sm:$0xf0] }
  0xe9   :  { %4670 = vmatmul.msk.bf16.gmra.mxu1 %vm343_vm3, %v302_v61  ;;  %v4778_v61 = vor.u32 %v6303_v57, %v4775_v60  ;;  %935 = vmatpush.bf16.msrb.mxu0 %v4774_v59 }
  0xea   :  { %v263_v62 = vpop.f32.mrf.mxu0 }
  0xeb   :  { %v264_v63 = vadd.f32 %v7108_v34, %v263_v62  ;;  %984 = vmatpush.bf16.msrb.mxu1 %v4778_v61  ;;  %v7134_v61 = vld [vmem:[#allocation6] ss:$0 sm:$0xff] }
  0xed   :  { %v291_v2 = vmax.f32 %v264_v63, 0.0  ;;  %936 = vmatpush.bf16.msrb.mxu0 %v4766_v11 }
  0xf2   :  { %v265_v0 = vpop.f32.mrf.mxu0 }
  0xf3   :  { %v266_v1 = vadd.f32 %v7108_v34, %v265_v0 }
  0xf5   :  { %v292_v3 = vmax.f32 %v266_v1, 0.0  ;;  %v4701_v1 = vld [vmem:[#allocation8 + $0xc0] sm:$0xf] }
  0xf7   :  { %v303_v4 = vpack.c.bf16 %v292_v3, %v291_v2  ;;  %v6286_v2 = vld [vmem:[#allocation8 + $0xdc] sm:$0xf0]  ;;  %v6285_v3 = vld [vmem:[#allocation8 + $0xc4] sm:$0xf] }
  0xf9   :  { %4671 = vmatmul.msk.bf16.gmra.mxu1 %vm343_vm3, %v303_v4  ;;  %v4702_v4 = vor.u32 %v6286_v2, %v4701_v1 }
  0xfa   :  { %v268_v5 = vpop.f32.mrf.mxu0 }
  0xfb   :  { %v269_v12 = vadd.f32 %v7108_v34, %v268_v5  ;;  %v4703_v5 = vld [vmem:[#allocation8 + $0xe0] sm:$0xf0]  ;;  %547 = vmatpush.bf16.msra.mxu2 %v4702_v4 }
  0xfc   :  { %v4706_v10 = vor.u32 %v6285_v3, %v4703_v5 }
  0xfd   :  { %v293_v20 = vmax.f32 %v269_v12, 0.0  ;;  %v6301_v12 = vld [vmem:[#allocation8 + $0xcc] sm:$0xf] }
  0xfe   :  { %596 = vmatpush.bf16.msra.mxu3 %v4706_v10 }
  0xff   :  { %548 = vmatpush.bf16.msra.mxu2 %v4694_v19  ;;  %v6326_v19 = vld [vmem:[#allocation8 + $0x1ec] sm:$0xf0] }
 0x102   :  { %v270_v13 = vpop.f32.mrf.mxu0 }
 0x103   :  { %v271_v14 = vadd.f32 %v7108_v34, %v270_v13  ;;  %v4767_v13 = vld [vmem:[#allocation8 + $0xe8] sm:$0xf0]  ;;  %549 = vmatpush.bf16.msra.mxu2 %v4686_v32  ;;  %v6324_v32 = vld [vmem:[#allocation8 + $0x1ac] sm:$0xf0] }
 0x105   :  { %v294_v21 = vmax.f32 %v271_v14, 0.0  ;;  %v4770_v14 = vor.u32 %v6301_v12, %v4767_v13 }
 0x107   :  { %v304_v23 = vpack.c.bf16 %v294_v21, %v293_v20  ;;  %985 = vmatpush.bf16.msrb.mxu1 %v4770_v14  ;;  %v4695_v20 = vld [vmem:[#allocation8 + $0xa0] sm:$0xf0]  ;;  %v4757_v21 = vld [vmem:[#allocation8 + $0x88] sm:$0xf]  ;;  %550 = vmatpush.bf16.msra.mxu2 %v4678_v45 }
 0x108   :  { %v4758_v24 = vor.u32 %v6300_v22, %v4757_v21  ;;  %v6325_v21 = vld [vmem:[#allocation8 + $0x1d4] sm:$0xf] }
 0x109   :  { %4672 = vmatmul.msk.bf16.gmra.mxu1 %vm343_vm3, %v304_v23  ;;  %v4698_v23 = vor.u32 %v6283_v18, %v4695_v20  ;;  %v4861_v18 = vld [vmem:[#allocation8 + $0x1d0] sm:$0xf]  ;;  %v4863_v22 = vld [vmem:[#allocation8 + $0x1f0] sm:$0xf0] }
 0x10a   :  { %v273_v37 = vpop.f32.mrf.mxu0  ;;  %937 = vmatpush.bf16.msrb.mxu0 %v4758_v24  ;;  %v4862_v20 = vor.u32 %v6326_v19, %v4861_v18  ;;  %v4901_v18 = vld [vmem:[#allocation8 + $0x118] sm:$0xf] }
 0x10b   :  { %v274_v62 = vadd.f32 %v7108_v34, %v273_v37  ;;  %597 = vmatpush.bf16.msra.mxu3 %v4698_v23  ;;  %986 = vmatpush.bf16.msrb.mxu1 %v4762_v28  ;;  %v4690_v37 = vor.u32 %v6281_v31, %v4687_v33  ;;  %v4866_v23 = vor.u32 %v6325_v21, %v4863_v22  ;;  %v4853_v31 = vld [vmem:[#allocation8 + $0x190] sm:$0xf]  ;;  %v6335_v21 = vld [vmem:[#allocation8 + $0x11c] sm:$0xf] }
 0x10c   :  { %1314 = vmatpush.bf16.msrb.mxu2 %v4862_v20  ;;  %v4854_v33 = vor.u32 %v6324_v32, %v4853_v31  ;;  %v6336_v20 = vld [vmem:[#allocation8 + $0x134] sm:$0xf0]  ;;  %v4903_v22 = vld [vmem:[#allocation8 + $0x138] sm:$0xf0]  ;;  %v4831_v31 = vld [vmem:[#allocation8 + $0xf0] sm:$0xf0] }
 0x10d   :  { %v295_v8 = vmax.f32 %v274_v62, 0.0  ;;  %v4893_v32 = vld [vmem:[#allocation8 + $0xd8] sm:$0xf] }
 0x10e   :  { %938 = vmatpush.bf16.msrb.mxu0 %v4750_v38  ;;  %v4925_v38 = vld [vmem:[#allocation8 + $0x1d8] sm:$0xf] }
 0x10f   :  { %598 = vmatpush.bf16.msra.mxu3 %v4690_v37  ;;  %987 = vmatpush.bf16.msrb.mxu1 %v4754_v41  ;;  %v4858_v37 = vor.u32 %v6323_v35, %v4855_v36  ;;  %v4926_v41 = vor.u32 %v6342_v39, %v4925_v38  ;;  %v4895_v38 = vld [vmem:[#allocation8 + $0xf8] sm:$0xf0]  ;;  %v4821_v39 = vld [vmem:[#allocation8 + $0x90] sm:$0xf] }
 0x110   :  { %1315 = vmatpush.bf16.msrb.mxu2 %v4854_v33  ;;  %v6334_v33 = vld [vmem:[#allocation8 + $0xf4] sm:$0xf0] }
 0x111   :  { %v4894_v40 = vor.u32 %v6334_v33, %v4893_v32  ;;  %v846_v32 = vld [vmem:[#allocation9 + $0x2] sm:$0x3] }
 0x112   :  { %v275_v63 = vpop.f32.mrf.mxu0  ;;  %939 = vmatpush.bf16.msrb.mxu0 %v4742_v51  ;;  %v4845_v51 = vld [vmem:[#allocation8 + $0x150] sm:$0xf] }
 0x113   :  { %v276_v0 = vadd.f32 %v7108_v34, %v275_v63  ;;  %599 = vmatpush.bf16.msra.mxu3 %v4682_v50  ;;  %988 = vmatpush.bf16.msrb.mxu1 %v4746_v55  ;;  %v4846_v53 = vor.u32 %v6322_v52, %v4845_v51  ;;  %v6340_v55 = vld [vmem:[#allocation8 + $0x1b4] sm:$0xf0]  ;;  %v4887_v51 = vld [vmem:[#allocation8 + $0xb8] sm:$0xf0]  ;;  %v4813_v52 = vld [vmem:[#allocation8 + $0x50] sm:$0xf] }
 0x115   :  { %v296_v9 = vmax.f32 %v276_v0, 0.0  ;;  %1316 = vmatpush.bf16.msrb.mxu2 %v4846_v53  ;;  %v6314_v53 = vld [vmem:[#allocation8 + $0x6c] sm:$0xf0] }
 0x116   :  { %1696 = vmatpush.bf16.msra.mxu0 %v4926_v41 }
 0x117   :  { %v305_v15 = vpack.c.bf16 %v296_v9, %v295_v8  ;;  %1363 = vmatpush.bf16.msrb.mxu3 %v4866_v23  ;;  %1745 = vmatpush.bf16.msra.mxu1 %v4930_v43  ;;  %v6315_v43 = vld [vmem:[#allocation8 + $0x94] sm:$0xf] }
 0x119   :  { %4673 = vmatmul.msk.bf16.gmra.mxu1 %vm343_vm3, %v305_v15 }
 0x11a   :  { %v278_v27 = vpop.f32.mrf.mxu0 }
 0x11b   :  { %v279_v49 = vadd.f32 %v7108_v34, %v278_v27  ;;  %1364 = vmatpush.bf16.msrb.mxu3 %v4858_v37  ;;  %v6333_v37 = vld [vmem:[#allocation8 + $0xdc] sm:$0xf] }
 0x11c   :  { %v4898_v41 = vor.u32 %v6333_v37, %v4895_v38  ;;  %v457_v37 = vld [vmem:[#allocation9] sm:$0x3] }
 0x11d   :  { %v297_v57 = vmax.f32 %v279_v49, 0.0 }
 0x122   :  { %v280_v54 = vpop.f32.mrf.mxu0 }
 0x123   :  { %v281_v56 = vadd.f32 %v7108_v34, %v280_v54  ;;  %v4917_v54 = vld [vmem:[#allocation8 + $0x198] sm:$0xf] }
 0x125   :  { %v298_v58 = vmax.f32 %v281_v56, 0.0  ;;  %v6339_v56 = vld [vmem:[#allocation8 + $0x19c] sm:$0xf] }
 0x127   :  { %v306_v59 = vpack.c.bf16 %v298_v58, %v297_v57  ;;  %v6321_v57 = vld [vmem:[#allocation8 + $0x154] sm:$0xf] }
 0x128   :  { %v4847_v58 = vld [vmem:[#allocation8 + $0x170] sm:$0xf0] }
 0x129   :  { %4674 = vmatmul.msk.bf16.gmra.mxu1 %vm343_vm3, %v306_v59  ;;  %v4918_v59 = vor.u32 %v6340_v55, %v4917_v54  ;;  %v6313_v54 = vld [vmem:[#allocation8 + $0x54] sm:$0xf] }
 0x12a   :  { %v4815_v55 = vld [vmem:[#allocation8 + $0x70] sm:$0xf0] }
 0x12b   :  { %1697 = vmatpush.bf16.msra.mxu0 %v4918_v59  ;;  %v4814_v59 = vor.u32 %v6314_v53, %v4813_v52 }
 0x136   :  { %v377_v60 = vpop.f32.mrf.mxu1 }
 0x137   :  { %v378_v62 = vadd.f32 %v7134_v61, %v377_v60  ;;  %v4850_v60 = vor.u32 %v6321_v57, %v4847_v58  ;;  %v4877_v58 = vld [vmem:[#allocation8 + $0x58] sm:$0xf] }
 0x139   :  { %v417_v1 = vmax.f32 %v378_v62, 0.0  ;;  %v4919_v62 = vld [vmem:[#allocation8 + $0x1b8] sm:$0xf0]  ;;  %1365 = vmatpush.bf16.msrb.mxu3 %v4850_v60  ;;  %v4818_v60 = vor.u32 %v6313_v54, %v4815_v55 }
 0x13e   :  { %v379_v63 = vpop.f32.mrf.mxu1 }
 0x13f   :  { %v380_v0 = vadd.f32 %v7134_v61, %v379_v63  ;;  %v4922_v63 = vor.u32 %v6339_v56, %v4919_v62  ;;  %v6330_v62 = vld [vmem:[#allocation8 + $0x74] sm:$0xf0] }
 0x141   :  { %v418_v2 = vmax.f32 %v380_v0, 0.0  ;;  %v4909_v0 = vld [vmem:[#allocation8 + $0x158] sm:$0xf]  ;;  %1746 = vmatpush.bf16.msra.mxu1 %v4922_v63  ;;  %v6329_v63 = vld [vmem:[#allocation8 + $0x5c] sm:$0xf] }
 0x143   :  { %v7138_v3 = vpack.c.bf16 %v418_v2, %v417_v1  ;;  %v6338_v1 = vld [vmem:[#allocation8 + $0x174] sm:$0xf0]  ;;  %v6337_v2 = vld [vmem:[#allocation8 + $0x15c] sm:$0xf] }
 0x145   :  { %551 = vmatmul.bf16.vlgmr.msra.gmra.mxu2 %v7138_v3  ;;  %600 = vmatmul.bf16.vlgmr.msra.gmra.mxu3 %v7138_v3 }
 0x146   :  { %940 = vmatmul.bf16.vlgmr.msrb.gmra.mxu0 %v7138_v3  ;;  %989 = vmatmul.bf16.vlgmr.msrb.gmra.mxu1 %v7138_v3  ;;  %v382_v34 = vpop.f32.mrf.mxu1 }
 0x147   :  { %v383_v4 = vadd.f32 %v7134_v61, %v382_v34 }
 0x149   :  { %v419_v7 = vmax.f32 %v383_v4, 0.0  ;;  %v4910_v4 = vor.u32 %v6338_v1, %v4909_v0  ;;  %v4879_v0 = vld [vmem:[#allocation8 + $0x78] sm:$0xf0] }
 0x14b   :  { %1698 = vmatpush.bf16.msra.mxu0 %v4910_v4  ;;  %v4878_v4 = vor.u32 %v6330_v62, %v4877_v58 }
 0x14e   :  { %v384_v5 = vpop.f32.mrf.mxu1 }
 0x14f   :  { %v385_v6 = vadd.f32 %v7134_v61, %v384_v5  ;;  %v4911_v5 = vld [vmem:[#allocation8 + $0x178] sm:$0xf0] }
 0x151   :  { %v420_v8 = vmax.f32 %v385_v6, 0.0 }
 0x153   :  { %v7146_v9 = vpack.c.bf16 %v420_v8, %v419_v7  ;;  %v4914_v7 = vor.u32 %v6337_v2, %v4911_v5  ;;  %v4882_v5 = vor.u32 %v6329_v63, %v4879_v0 }
 0x155   :  { %556 = vmatmul.bf16.gmra.mxu2 %v7146_v9  ;;  %605 = vmatmul.bf16.gmra.mxu3 %v7146_v9 }
 0x156   :  { %945 = vmatmul.bf16.gmra.mxu0 %v7146_v9  ;;  %994 = vmatmul.bf16.gmra.mxu1 %v7146_v9  ;;  %v387_v10 = vpop.f32.mrf.mxu1 }
 0x157   :  { %v388_v11 = vadd.f32 %v7134_v61, %v387_v10  ;;  %v4837_v10 = vld [vmem:[#allocation8 + $0x110] sm:$0xf]  ;;  %1747 = vmatpush.bf16.msra.mxu1 %v4914_v7 }
 0x158   :  { %v6312_v7 = vld [vmem:[#allocation8 + $0x2c] sm:$0xf0] }
 0x159   :  { %v421_v14 = vmax.f32 %v388_v11, 0.0  ;;  %v6320_v11 = vld [vmem:[#allocation8 + $0x12c] sm:$0xf0] }
 0x15e   :  { %v389_v12 = vpop.f32.mrf.mxu1 }
 0x15f   :  { %v390_v13 = vadd.f32 %v7134_v61, %v389_v12  ;;  %v6319_v12 = vld [vmem:[#allocation8 + $0x114] sm:$0xf] }
 0x161   :  { %v422_v15 = vmax.f32 %v390_v13, 0.0 }
 0x163   :  { %v7154_v16 = vpack.c.bf16 %v422_v15, %v421_v14  ;;  %v4838_v15 = vor.u32 %v6320_v11, %v4837_v10 }
 0x165   :  { %561 = vmatmul.bf16.gmra.mxu2 %v7154_v16  ;;  %610 = vmatmul.bf16.gmra.mxu3 %v7154_v16 }
 0x166   :  { %950 = vmatmul.bf16.gmra.mxu0 %v7154_v16  ;;  %999 = vmatmul.bf16.gmra.mxu1 %v7154_v16  ;;  %v392_v17 = vpop.f32.mrf.mxu1 }
 0x167   :  { %v393_v24 = vadd.f32 %v7134_v61, %v392_v17  ;;  %v4839_v17 = vld [vmem:[#allocation8 + $0x130] sm:$0xf0]  ;;  %1317 = vmatpush.bf16.msrb.mxu2 %v4838_v15 }
 0x168   :  { %v4842_v19 = vor.u32 %v6319_v12, %v4839_v17  ;;  %v6328_v17 = vld [vmem:[#allocation8 + $0x34] sm:$0xf0] }
 0x169   :  { %v423_v27 = vmax.f32 %v393_v24, 0.0  ;;  %v4902_v24 = vor.u32 %v6336_v20, %v4901_v18  ;;  %v6327_v18 = vld [vmem:[#allocation8 + $0x1c] sm:$0xf] }
 0x16a   :  { %1366 = vmatpush.bf16.msrb.mxu3 %v4842_v19 }
 0x16b   :  { %1699 = vmatpush.bf16.msra.mxu0 %v4902_v24 }
 0x16e   :  { %v394_v25 = vpop.f32.mrf.mxu1 }
 0x16f   :  { %v395_v26 = vadd.f32 %v7134_v61, %v394_v25  ;;  %v4906_v25 = vor.u32 %v6335_v21, %v4903_v22  ;;  %1700 = vmatpush.bf16.msra.mxu0 %v4894_v40  ;;  %v4871_v21 = vld [vmem:[#allocation8 + $0x38] sm:$0xf0] }
 0x170   :  { %v4874_v22 = vor.u32 %v6327_v18, %v4871_v21 }
 0x171   :  { %v424_v28 = vmax.f32 %v395_v26, 0.0  ;;  %v4829_v26 = vld [vmem:[#allocation8 + $0xd0] sm:$0xf]  ;;  %1748 = vmatpush.bf16.msra.mxu1 %v4906_v25 }
 0x173   :  { %v7162_v29 = vpack.c.bf16 %v424_v28, %v423_v27  ;;  %v6318_v27 = vld [vmem:[#allocation8 + $0xec] sm:$0xf0]  ;;  %v6317_v28 = vld [vmem:[#allocation8 + $0xd4] sm:$0xf] }
 0x174   :  { %v4834_v36 = vor.u32 %v6317_v28, %v4831_v31 }
 0x175   :  { %566 = vmatmul.bf16.gmra.mxu2 %v7162_v29  ;;  %615 = vmatmul.bf16.gmra.mxu3 %v7162_v29 }
 0x176   :  { %955 = vmatmul.bf16.gmra.mxu0 %v7162_v29  ;;  %1004 = vmatmul.bf16.gmra.mxu1 %v7162_v29  ;;  %v397_v30 = vpop.f32.mrf.mxu1 }
 0x177   :  { %v398_v44 = vadd.f32 %v7134_v61, %v397_v30  ;;  %v4830_v30 = vor.u32 %v6318_v27, %v4829_v26  ;;  %1367 = vmatpush.bf16.msrb.mxu3 %v4834_v36  ;;  %1749 = vmatpush.bf16.msra.mxu1 %v4898_v41  ;;  %v7204_v36 = vperm.slane %v846_v32, 1 }
 0x179   :  { %v425_v47 = vmax.f32 %v398_v44, 0.0  ;;  %v4823_v44 = vld [vmem:[#allocation8 + $0xb0] sm:$0xf0]  ;;  %1318 = vmatpush.bf16.msrb.mxu2 %v4830_v30 }
 0x17e   :  { %v399_v45 = vpop.f32.mrf.mxu1 }
 0x17f   :  { %v400_v46 = vadd.f32 %v7134_v61, %v399_v45  ;;  %v4822_v45 = vor.u32 %v6316_v42, %v4821_v39  ;;  %v7210_v42 = vperm.slane %v457_v37, 0 }
 0x181   :  { %v426_v48 = vmax.f32 %v400_v46, 0.0  ;;  %v4826_v46 = vor.u32 %v6315_v43, %v4823_v44  ;;  %1319 = vmatpush.bf16.msrb.mxu2 %v4822_v45  ;;  %v7212_v43 = vperm.slane %v457_v37, 1 }
 0x183   :  { %v7170_v49 = vpack.c.bf16 %v426_v48, %v425_v47  ;;  %v4885_v47 = vld [vmem:[#allocation8 + $0x98] sm:$0xf]  ;;  %1368 = vmatpush.bf16.msrb.mxu3 %v4826_v46 }
 0x184   :  { %v6332_v48 = vld [vmem:[#allocation8 + $0xb4] sm:$0xf0] }
 0x185   :  { %571 = vmatmul.bf16.gmra.mxu2 %v7170_v49  ;;  %620 = vmatmul.bf16.gmra.mxu3 %v7170_v49  ;;  %v4886_v56 = vor.u32 %v6332_v48, %v4885_v47 }
 0x186   :  { %960 = vmatmul.bf16.gmra.mxu0 %v7170_v49  ;;  %1009 = vmatmul.bf16.gmra.mxu1 %v7170_v49  ;;  %v402_v50 = vpop.f32.mrf.mxu1 }
 0x187   :  { %v403_v34 = vadd.f32 %v7134_v61, %v402_v50  ;;  %v6331_v50 = vld [vmem:[#allocation8 + $0x9c] sm:$0xf]  ;;  %1701 = vmatpush.bf16.msra.mxu0 %v4886_v56  ;;  %1320 = vmatpush.bf16.msrb.mxu2 %v4814_v59 }
 0x188   :  { %v4890_v57 = vor.u32 %v6331_v50, %v4887_v51  ;;  %1369 = vmatpush.bf16.msrb.mxu3 %v4818_v60 }
 0x189   :  { %v427_v13 = vmax.f32 %v403_v34, 0.0 }
 0x18a   :  { %1750 = vmatpush.bf16.msra.mxu1 %v4890_v57 }
 0x18b   :  { %1702 = vmatpush.bf16.msra.mxu0 %v4878_v4 }
 0x18e   :  { %v404_v6 = vpop.f32.mrf.mxu1  ;;  %1751 = vmatpush.bf16.msra.mxu1 %v4882_v5 }
 0x18f   :  { %v405_v8 = vadd.f32 %v7134_v61, %v404_v6  ;;  %v4805_v6 = vld [vmem:[#allocation8 + $0x10] sm:$0xf] }
 0x190   :  { %v4806_v12 = vor.u32 %v6312_v7, %v4805_v6 }
 0x191   :  { %v428_v14 = vmax.f32 %v405_v8, 0.0  ;;  %v6311_v8 = vld [vmem:[#allocation8 + $0x14] sm:$0xf] }
 0x192   :  { %1321 = vmatpush.bf16.msrb.mxu2 %v4806_v12  ;;  %1752 = vmatpush.bf16.msra.mxu1 %v4874_v22 }
 0x193   :  { %v7178_v23 = vpack.c.bf16 %v428_v14, %v427_v13  ;;  %v4807_v13 = vld [vmem:[#allocation8 + $0x30] sm:$0xf0]  ;;  %v4869_v14 = vld [vmem:[#allocation8 + $0x18] sm:$0xf] }
 0x194   :  { %v4810_v15 = vor.u32 %v6311_v8, %v4807_v13  ;;  %v4870_v20 = vor.u32 %v6328_v17, %v4869_v14 }
 0x195   :  { %576 = vmatmul.bf16.gmra.mxu2 %v7178_v23  ;;  %625 = vmatmul.bf16.gmra.mxu3 %v7178_v23 }
 0x196   :  { %965 = vmatmul.bf16.gmra.mxu0 %v7178_v23  ;;  %1014 = vmatmul.bf16.gmra.mxu1 %v7178_v23  ;;  %v407_v35 = vpop.f32.mrf.mxu1 }
 0x197   :  { %v408_v1 = vadd.f32 %v7134_v61, %v407_v35  ;;  %1370 = vmatpush.bf16.msrb.mxu3 %v4810_v15  ;;  %1703 = vmatpush.bf16.msra.mxu0 %v4870_v20 }
 0x199   :  { %v429_v10 = vmax.f32 %v408_v1, 0.0 }
 0x19e   :  { %v409_v2 = vpop.f32.mrf.mxu1 }
 0x19f   :  { %v410_v34 = vadd.f32 %v7134_v61, %v409_v2 }
 0x1a1   :  { %v430_v11 = vmax.f32 %v410_v34, 0.0 }
 0x1a3   :  { %v7186_v19 = vpack.c.bf16 %v430_v11, %v429_v10 }
 0x1a5   :  { %581 = vmatmul.bf16.gmra.mxu2 %v7186_v19  ;;  %630 = vmatmul.bf16.gmra.mxu3 %v7186_v19 }
 0x1a6   :  { %970 = vmatmul.bf16.gmra.mxu0 %v7186_v19  ;;  %1019 = vmatmul.bf16.gmra.mxu1 %v7186_v19  ;;  %v412_v24 = vpop.f32.mrf.mxu1 }
 0x1a7   :  { %v413_v25 = vadd.f32 %v7134_v61, %v412_v24 }
 0x1a9   :  { %v431_v28 = vmax.f32 %v413_v25, 0.0 }
 0x1ae   :  { %v414_v26 = vpop.f32.mrf.mxu1 }
 0x1af   :  { %v415_v27 = vadd.f32 %v7134_v61, %v414_v26  ;;  %v7202_v61 = vperm.slane %v846_v32, 0 }
 0x1b1   :  { %v432_v30 = vmax.f32 %v415_v27, 0.0 }
 0x1b3   :  { %v7194_v31 = vpack.c.bf16 %v432_v30, %v431_v28 }
 0x1b5   :  { %586 = vmatmul.bf16.gmra.mxu2 %v7194_v31  ;;  %635 = vmatmul.bf16.gmra.mxu3 %v7194_v31 }
 0x1b6   :  { %975 = vmatmul.bf16.gmra.mxu0 %v7194_v31  ;;  %1024 = vmatmul.bf16.gmra.mxu1 %v7194_v31 }
 0x1c3   :  { %v941_v33 = vpop.f32.mrf.mxu0  ;;  %v990_v35 = vpop.f32.mrf.mxu1 }
 0x1c4   :  { %v942_v40 = vadd.f32 %v941_v33, %v7202_v61  ;;  %v991_v41 = vadd.f32 %v990_v35, %v7204_v36 }
 0x1c5   :  { %1322 = vmatmul.bf16.vlgmr.msrb.gmra.mxu2 %v7138_v3  ;;  %1371 = vmatmul.bf16.vlgmr.msrb.gmra.mxu3 %v7138_v3 }
 0x1c6   :  { %1704 = vmatmul.bf16.vlgmr.msra.gmra.mxu0 %v7138_v3  ;;  %1753 = vmatmul.bf16.vlgmr.msra.gmra.mxu1 %v7138_v3  ;;  %v1030_v48 = vmax.f32 %v942_v40, 0.0  ;;  %v1031_v50 = vmax.f32 %v991_v41, 0.0 }
 0x1c8   :  { %v552_v38 = vpop.f32.mrf.mxu2  ;;  %v601_v39 = vpop.f32.mrf.mxu3 }
 0x1c9   :  { %v553_v52 = vadd.f32 %v552_v38, %v7210_v42  ;;  %v602_v53 = vadd.f32 %v601_v39, %v7212_v43 }
 0x1cb   :  { %v943_v44 = vpop.f32.mrf.mxu0  ;;  %v992_v45 = vpop.f32.mrf.mxu1  ;;  %v641_v60 = vmax.f32 %v553_v52, 0.0  ;;  %v642_v62 = vmax.f32 %v602_v53, 0.0 }
 0x1cc   :  { %v944_v46 = vadd.f32 %v943_v44, %v7202_v61  ;;  %v993_v47 = vadd.f32 %v992_v45, %v7204_v36 }
 0x1ce   :  { %v1032_v3 = vmax.f32 %v944_v46, 0.0  ;;  %v1033_v51 = vmax.f32 %v993_v47, 0.0 }
 0x1d0   :  { %v1062_v54 = vmax.f32 %v1030_v48, %v1032_v3  ;;  %v1069_v55 = vmax.f32 %v1031_v50, %v1033_v51  ;;  %v554_v56 = vpop.f32.mrf.mxu2  ;;  %v603_v57 = vpop.f32.mrf.mxu3 }
 0x1d1   :  { %v555_v58 = vadd.f32 %v554_v56, %v7210_v42  ;;  %v604_v59 = vadd.f32 %v603_v57, %v7212_v43 }
 0x1d2   :  { %v1063_v34 = vrot.slane %v1062_v54, 4  ;;  %v1070_v4 = vrot.slane %v1069_v55, 4 }
 0x1d3   :  { %v643_v63 = vmax.f32 %v555_v58, 0.0  ;;  %v644_v0 = vmax.f32 %v604_v59, 0.0  ;;  %v946_v1 = vpop.f32.mrf.mxu0  ;;  %v995_v2 = vpop.f32.mrf.mxu1 }
 0x1d4   :  { %v1064_v10 = vmax.f32 %v1062_v54, %v1063_v34  ;;  %v1071_v11 = vmax.f32 %v1069_v55, %v1070_v4  ;;  %v947_v12 = vadd.f32 %v946_v1, %v7202_v61  ;;  %v996_v13 = vadd.f32 %v995_v2, %v7204_v36 }
 0x1d5   :  { %v673_v5 = vmax.f32 %v641_v60, %v643_v63  ;;  %v680_v6 = vmax.f32 %v642_v62, %v644_v0  ;;  %1327 = vmatmul.bf16.gmra.mxu2 %v7146_v9  ;;  %1376 = vmatmul.bf16.gmra.mxu3 %v7146_v9 }
 0x1d6   :  { %1709 = vmatmul.bf16.gmra.mxu0 %v7146_v9  ;;  %1758 = vmatmul.bf16.gmra.mxu1 %v7146_v9  ;;  %v1065_v22 = vrot.slane %v1064_v10, 2  ;;  %v1072_v24 = vrot.slane %v1071_v11, 2  ;;  %v1034_v25 = vmax.f32 %v947_v12, 0.0  ;;  %v1035_v9 = vmax.f32 %v996_v13, 0.0 }
 0x1d7   :  { %v674_v14 = vrot.slane %v673_v5, 4  ;;  %v681_v15 = vrot.slane %v680_v6, 4 }
 0x1d8   :  { %v557_v7 = vpop.f32.mrf.mxu2  ;;  %v606_v8 = vpop.f32.mrf.mxu3  ;;  %v1066_v40 = vmax.f32 %v1064_v10, %v1065_v22  ;;  %v1073_v41 = vmax.f32 %v1071_v11, %v1072_v24 }
 0x1d9   :  { %v675_v26 = vmax.f32 %v673_v5, %v674_v14  ;;  %v682_v27 = vmax.f32 %v680_v6, %v681_v15  ;;  %v558_v32 = vadd.f32 %v557_v7, %v7210_v42  ;;  %v607_v33 = vadd.f32 %v606_v8, %v7212_v43 }
 0x1da   :  { %v1067_v58 = vrot.slane %v1066_v40, 1  ;;  %v1074_v59 = vrot.slane %v1073_v41, 1 }
 0x1db   :  { %v948_v17 = vpop.f32.mrf.mxu0  ;;  %v997_v18 = vpop.f32.mrf.mxu1  ;;  %v676_v46 = vrot.slane %v675_v26, 2  ;;  %v683_v47 = vrot.slane %v682_v27, 2  ;;  %v645_v3 = vmax.f32 %v558_v32, 0.0  ;;  %v646_v51 = vmax.f32 %v607_v33, 0.0 }
 0x1dc   :  { %v949_v20 = vadd.f32 %v948_v17, %v7202_v61  ;;  %v998_v21 = vadd.f32 %v997_v18, %v7204_v36  ;;  %v1068_v12 = vmax.f32 %v1066_v40, %v1067_v58  ;;  %v1075_v13 = vmax.f32 %v1073_v41, %v1074_v59 }
 0x1dd   :  { %v677_v63 = vmax.f32 %v675_v26, %v676_v46  ;;  %v684_v0 = vmax.f32 %v682_v27, %v683_v47 }
 0x1de   :  { %v1036_v28 = vmax.f32 %v949_v20, 0.0  ;;  %v1037_v30 = vmax.f32 %v998_v21, 0.0 }
 0x1df   :  { %v678_v17 = vrot.slane %v677_v63, 1  ;;  %v685_v18 = vrot.slane %v684_v0, 1 }
 0x1e0   :  { %v1076_v35 = vmax.f32 %v1034_v25, %v1036_v28  ;;  %v1083_v37 = vmax.f32 %v1035_v9, %v1037_v30  ;;  %v559_v38 = vpop.f32.mrf.mxu2  ;;  %v608_v39 = vpop.f32.mrf.mxu3 }
 0x1e1   :  { %v560_v44 = vadd.f32 %v559_v38, %v7210_v42  ;;  %v609_v45 = vadd.f32 %v608_v39, %v7212_v43  ;;  %v679_v47 = vmax.f32 %v677_v63, %v678_v17 }
 0x1e2   :  { %v1077_v48 = vrot.slane %v1076_v35, 4  ;;  %v1084_v50 = vrot.slane %v1083_v37, 4 }
 0x1e3   :  { %v647_v52 = vmax.f32 %v560_v44, 0.0  ;;  %v648_v53 = vmax.f32 %v609_v45, 0.0  ;;  %v951_v54 = vpop.f32.mrf.mxu0  ;;  %v1000_v55 = vpop.f32.mrf.mxu1 }
 0x1e4   :  { %v1078_v56 = vmax.f32 %v1076_v35, %v1077_v48  ;;  %v1085_v57 = vmax.f32 %v1083_v37, %v1084_v50  ;;  %v952_v5 = vadd.f32 %v951_v54, %v7202_v61  ;;  %v1001_v6 = vadd.f32 %v1000_v55, %v7204_v36 }
 0x1e5   :  { %v687_v60 = vmax.f32 %v645_v3, %v647_v52  ;;  %v694_v62 = vmax.f32 %v646_v51, %v648_v53  ;;  %1332 = vmatmul.bf16.gmra.mxu2 %v7154_v16  ;;  %1381 = vmatmul.bf16.gmra.mxu3 %v7154_v16  ;;  %v686_v48 = vmax.f32 %v684_v0, %v685_v18 }
 0x1e6   :  { %v1079_v1 = vrot.slane %v1078_v56, 2  ;;  %v1086_v2 = vrot.slane %v1085_v57, 2  ;;  %1714 = vmatmul.bf16.gmra.mxu0 %v7154_v16  ;;  %1763 = vmatmul.bf16.gmra.mxu1 %v7154_v16  ;;  %v1038_v24 = vmax.f32 %v952_v5, 0.0  ;;  %v1039_v25 = vmax.f32 %v1001_v6, 0.0 }
 0x1e7   :  { %v688_v34 = vrot.slane %v687_v60, 4  ;;  %v695_v4 = vrot.slane %v694_v62, 4 }
 0x1e8   :  { %v1080_v7 = vmax.f32 %v1078_v56, %v1079_v1  ;;  %v1087_v8 = vmax.f32 %v1085_v57, %v1086_v2  ;;  %v562_v10 = vpop.f32.mrf.mxu2  ;;  %v611_v11 = vpop.f32.mrf.mxu3 }
 0x1e9   :  { %v689_v14 = vmax.f32 %v687_v60, %v688_v34  ;;  %v696_v15 = vmax.f32 %v694_v62, %v695_v4  ;;  %v563_v37 = vadd.f32 %v562_v10, %v7210_v42  ;;  %v612_v38 = vadd.f32 %v611_v11, %v7212_v43 }
 0x1ea   :  { %v1081_v20 = vrot.slane %v1080_v7, 1  ;;  %v1088_v21 = vrot.slane %v1087_v8, 1 }
 0x1eb   :  { %v690_v16 = vrot.slane %v689_v14, 2  ;;  %v697_v22 = vrot.slane %v696_v15, 2  ;;  %v953_v9 = vpop.f32.mrf.mxu0  ;;  %v1002_v26 = vpop.f32.mrf.mxu1  ;;  %v649_v57 = vmax.f32 %v563_v37, 0.0  ;;  %v650_v58 = vmax.f32 %v612_v38, 0.0 }
 0x1ec   :  { %v1082_v27 = vmax.f32 %v1080_v7, %v1081_v20  ;;  %v1089_v28 = vmax.f32 %v1087_v8, %v1088_v21  ;;  %v954_v30 = vadd.f32 %v953_v9, %v7202_v61  ;;  %v1003_v32 = vadd.f32 %v1002_v26, %v7204_v36 }
 0x1ed   :  { %v691_v33 = vmax.f32 %v689_v14, %v690_v16  ;;  %v698_v35 = vmax.f32 %v696_v15, %v697_v22 }
 0x1ee   :  { %v7243_v39 = vsel %vm803_vm4, %v1082_v27, %v1068_v12  ;;  %v7246_v40 = vsel %vm803_vm4, %v1089_v28, %v1075_v13  ;;  %v1040_v41 = vmax.f32 %v954_v30, 0.0  ;;  %v1041_v44 = vmax.f32 %v1003_v32, 0.0 }
 0x1ef   :  { %v692_v45 = vrot.slane %v691_v33, 1  ;;  %v699_v46 = vrot.slane %v698_v35, 1 }
 0x1f0   :  { %v1090_v50 = vmax.f32 %v1038_v24, %v1040_v41  ;;  %v1097_v3 = vmax.f32 %v1039_v25, %v1041_v44  ;;  %v564_v51 = vpop.f32.mrf.mxu2  ;;  %v613_v52 = vpop.f32.mrf.mxu3 }
 0x1f1   :  { %v693_v53 = vmax.f32 %v691_v33, %v692_v45  ;;  %v700_v54 = vmax.f32 %v698_v35, %v699_v46  ;;  %v565_v55 = vadd.f32 %v564_v51, %v7210_v42  ;;  %v614_v56 = vadd.f32 %v613_v52, %v7212_v43 }
 0x1f2   :  { %v1091_v59 = vrot.slane %v1090_v50, 4  ;;  %v1098_v60 = vrot.slane %v1097_v3, 4 }
 0x1f3   :  { %v804_v62 = vsel %vm803_vm4, %v693_v53, %v679_v47  ;;  %v817_v1 = vsel %vm803_vm4, %v700_v54, %v686_v48  ;;  %v651_v63 = vmax.f32 %v565_v55, 0.0  ;;  %v652_v0 = vmax.f32 %v614_v56, 0.0  ;;  %v956_v2 = vpop.f32.mrf.mxu0  ;;  %v1005_v34 = vpop.f32.mrf.mxu1 }
 0x1f4   :  { %v1092_v4 = vmax.f32 %v1090_v50, %v1091_v59  ;;  %v1099_v5 = vmax.f32 %v1097_v3, %v1098_v60  ;;  %v957_v13 = vadd.f32 %v956_v2, %v7202_v61  ;;  %v1006_v14 = vadd.f32 %v1005_v34, %v7204_v36 }
 0x1f5   :  { %v701_v6 = vmax.f32 %v649_v57, %v651_v63  ;;  %v708_v7 = vmax.f32 %v650_v58, %v652_v0  ;;  %1337 = vmatmul.bf16.gmra.mxu2 %v7162_v29  ;;  %1386 = vmatmul.bf16.gmra.mxu3 %v7162_v29 }
 0x1f6   :  { %v1093_v8 = vrot.slane %v1092_v4, 2  ;;  %v1100_v10 = vrot.slane %v1099_v5, 2  ;;  %1719 = vmatmul.bf16.gmra.mxu0 %v7162_v29  ;;  %1768 = vmatmul.bf16.gmra.mxu1 %v7162_v29  ;;  %v1042_v26 = vmax.f32 %v957_v13, 0.0  ;;  %v1043_v27 = vmax.f32 %v1006_v14, 0.0 }
 0x1f7   :  { %v702_v11 = vrot.slane %v701_v6, 4  ;;  %v709_v12 = vrot.slane %v708_v7, 4 }
 0x1f8   :  { %v1094_v15 = vmax.f32 %v1092_v4, %v1093_v8  ;;  %v1101_v17 = vmax.f32 %v1099_v5, %v1100_v10  ;;  %v567_v18 = vpop.f32.mrf.mxu2  ;;  %v616_v20 = vpop.f32.mrf.mxu3 }
 0x1f9   :  { %v703_v21 = vmax.f32 %v701_v6, %v702_v11  ;;  %v710_v16 = vmax.f32 %v708_v7, %v709_v12  ;;  %v568_v41 = vadd.f32 %v567_v18, %v7210_v42  ;;  %v617_v44 = vadd.f32 %v616_v20, %v7212_v43  ;;  %v5045_v20 = vld [vmem:[#allocation11 + $0xe0] sm:$0xf] }
 0x1fa   :  { %v1095_v22 = vrot.slane %v1094_v15, 1  ;;  %v1102_v24 = vrot.slane %v1101_v17, 1 }
 0x1fb   :  { %v704_v25 = vrot.slane %v703_v21, 2  ;;  %v711_v9 = vrot.slane %v710_v16, 2  ;;  %v958_v29 = vpop.f32.mrf.mxu0  ;;  %v1007_v28 = vpop.f32.mrf.mxu1  ;;  %v654_v59 = vmax.f32 %v617_v44, 0.0 }
 0x1fc   :  { %v1096_v30 = vmax.f32 %v1094_v15, %v1095_v22  ;;  %v1103_v32 = vmax.f32 %v1101_v17, %v1102_v24  ;;  %v959_v33 = vadd.f32 %v958_v29, %v7202_v61  ;;  %v1008_v35 = vadd.f32 %v1007_v28, %v7204_v36 }
 0x1fd   :  { %v705_v37 = vmax.f32 %v703_v21, %v704_v25  ;;  %v712_v38 = vmax.f32 %v710_v16, %v711_v9  ;;  %v6373_v21 = vld [vmem:[#allocation11 + $0xec] sm:$0xf0]  ;;  %v5173_v16 = vld [vmem:[#allocation11 + $0x1e0] sm:$0xf] }
 0x1fe   :  { %v7264_v45 = vsel %vm805_vm5, %v1096_v30, %v7243_v39  ;;  %v7268_v46 = vsel %vm805_vm5, %v1103_v32, %v7246_v40  ;;  %v1044_v47 = vmax.f32 %v959_v33, 0.0  ;;  %v1045_v48 = vmax.f32 %v1008_v35, 0.0  ;;  %v6405_v25 = vld [vmem:[#allocation11 + $0x1ec] sm:$0xf0] }
 0x1ff   :  { %v706_v50 = vrot.slane %v705_v37, 1  ;;  %v713_v3 = vrot.slane %v712_v38, 1  ;;  %v653_v39 = vmax.f32 %v568_v41, 0.0  ;;  %v5174_v29 = vor.u32 %v6405_v25, %v5173_v16  ;;  %v4997_v16 = vld [vmem:[#allocation11 + $0x80] sm:$0xf] }
 0x200   :  { %v1104_v51 = vmax.f32 %v1042_v26, %v1044_v47  ;;  %v1111_v52 = vmax.f32 %v1043_v27, %v1045_v48  ;;  %v569_v53 = vpop.f32.mrf.mxu2  ;;  %v618_v54 = vpop.f32.mrf.mxu3  ;;  %v5046_v27 = vor.u32 %v6373_v21, %v5045_v20  ;;  %v5029_v47 = vld [vmem:[#allocation11 + $0xc0] sm:$0xf]  ;;  %v6369_v48 = vld [vmem:[#allocation11 + $0xcc] sm:$0xf0] }
 0x201   :  { %v707_v55 = vmax.f32 %v705_v37, %v706_v50  ;;  %v714_v56 = vmax.f32 %v712_v38, %v713_v3  ;;  %v570_v57 = vadd.f32 %v569_v53, %v7210_v42  ;;  %v619_v58 = vadd.f32 %v618_v54, %v7212_v43  ;;  %v5157_v50 = vld [vmem:[#allocation11 + $0x1c0] sm:$0xf]  ;;  %3554 = vmatpush.bf16.msra.mxu3 %v5174_v29  ;;  %v6401_v54 = vld [vmem:[#allocation11 + $0x1cc] sm:$0xf0] }
 0x202   :  { %v1105_v60 = vrot.slane %v1104_v51, 4  ;;  %v1112_v63 = vrot.slane %v1111_v52, 4  ;;  %3541 = vmatpush.bf16.msra.mxu2 %v5046_v27  ;;  %v5030_v53 = vor.u32 %v6369_v48, %v5029_v47  ;;  %v5047_v27 = vld [vmem:[#allocation11 + $0xf0] sm:$0xf0]  ;;  %v6357_v47 = vld [vmem:[#allocation11 + $0x6c] sm:$0xf0] }
 0x203   :  { %v7273_v40 = vsel %vm805_vm5, %v707_v55, %v804_v62  ;;  %v7276_v0 = vsel %vm805_vm5, %v714_v56, %v817_v1  ;;  %v655_v2 = vmax.f32 %v570_v57, 0.0  ;;  %v656_v34 = vmax.f32 %v619_v58, 0.0  ;;  %v961_v4 = vpop.f32.mrf.mxu0  ;;  %v1010_v5 = vpop.f32.mrf.mxu1  ;;  %v5109_v48 = vld [vmem:[#allocation11 + $0x160] sm:$0xf] }
 0x204   :  { %v1106_v6 = vmax.f32 %v1104_v51, %v1105_v60  ;;  %v1113_v7 = vmax.f32 %v1111_v52, %v1112_v63  ;;  %v962_v13 = vadd.f32 %v961_v4, %v7202_v61  ;;  %v1011_v32 = vadd.f32 %v1010_v5, %v7204_v36  ;;  %v5013_v5 = vld [vmem:[#allocation11 + $0xa0] sm:$0xf] }
 0x205   :  { %v715_v8 = vmax.f32 %v653_v39, %v655_v2  ;;  %v722_v10 = vmax.f32 %v654_v59, %v656_v34  ;;  %1342 = vmatmul.bf16.gmra.mxu2 %v7170_v49  ;;  %1391 = vmatmul.bf16.gmra.mxu3 %v7170_v49  ;;  %v5158_v63 = vor.u32 %v6401_v54, %v5157_v50  ;;  %v6399_v54 = vld [vmem:[#allocation11 + $0x1c4] sm:$0xf] }
 0x206   :  { %v1107_v11 = vrot.slane %v1106_v6, 2  ;;  %v1114_v12 = vrot.slane %v1113_v7, 2  ;;  %1724 = vmatmul.bf16.gmra.mxu0 %v7170_v49  ;;  %1773 = vmatmul.bf16.gmra.mxu1 %v7170_v49  ;;  %v1046_v30 = vmax.f32 %v962_v13, 0.0  ;;  %v1047_v60 = vmax.f32 %v1011_v32, 0.0 }
 0x207   :  { %v716_v62 = vrot.slane %v715_v8, 4  ;;  %v723_v1 = vrot.slane %v722_v10, 4  ;;  %3542 = vmatpush.bf16.msra.mxu2 %v5030_v53  ;;  %3555 = vmatpush.bf16.msra.mxu3 %v5158_v63  ;;  %v5031_v53 = vld [vmem:[#allocation11 + $0xd0] sm:$0xf0] }
 0x208   :  { %v1108_v14 = vmax.f32 %v1106_v6, %v1107_v11  ;;  %v1115_v15 = vmax.f32 %v1113_v7, %v1114_v12  ;;  %v572_v17 = vpop.f32.mrf.mxu2  ;;  %v621_v18 = vpop.f32.mrf.mxu3  ;;  %v6365_v6 = vld [vmem:[#allocation11 + $0xac] sm:$0xf0]  ;;  %v5141_v7 = vld [vmem:[#allocation11 + $0x1a0] sm:$0xf] }
 0x209   :  { %v717_v22 = vmax.f32 %v715_v8, %v716_v62  ;;  %v724_v24 = vmax.f32 %v722_v10, %v723_v1  ;;  %v573_v52 = vadd.f32 %v572_v17, %v7210_v42  ;;  %v622_v2 = vadd.f32 %v621_v18, %v7212_v43  ;;  %v6397_v11 = vld [vmem:[#allocation11 + $0x1ac] sm:$0xf0] }
 0x20a   :  { %v1109_v9 = vrot.slane %v1108_v14, 1  ;;  %v1116_v26 = vrot.slane %v1115_v15, 1  ;;  %v5014_v13 = vor.u32 %v6365_v6, %v5013_v5  ;;  %v5142_v21 = vor.u32 %v6397_v11, %v5141_v7  ;;  %v4965_v5 = vld [vmem:[#allocation11 + $0x40] sm:$0xf]  ;;  %v6353_v6 = vld [vmem:[#allocation11 + $0x4c] sm:$0xf0] }
 0x20b   :  { %v718_v49 = vrot.slane %v717_v22, 2  ;;  %v725_v28 = vrot.slane %v724_v24, 2  ;;  %v963_v33 = vpop.f32.mrf.mxu0  ;;  %v1012_v35 = vpop.f32.mrf.mxu1  ;;  %v657_v10 = vmax.f32 %v573_v52, 0.0  ;;  %v658_v29 = vmax.f32 %v622_v2, 0.0  ;;  %v5093_v7 = vld [vmem:[#allocation11 + $0x140] sm:$0xf] }
 0x20c   :  { %v1110_v37 = vmax.f32 %v1108_v14, %v1109_v9  ;;  %v1117_v38 = vmax.f32 %v1115_v15, %v1116_v26  ;;  %v964_v41 = vadd.f32 %v963_v33, %v7202_v61  ;;  %v1013_v44 = vadd.f32 %v1012_v35, %v7204_v36  ;;  %3543 = vmatpush.bf16.msra.mxu2 %v5014_v13  ;;  %v6371_v26 = vld [vmem:[#allocation11 + $0xe4] sm:$0xf]  ;;  %v5175_v35 = vld [vmem:[#allocation11 + $0x1f0] sm:$0xf0]  ;;  %v6385_v11 = vld [vmem:[#allocation11 + $0x14c] sm:$0xf0] }
 0x20d   :  { %v719_v3 = vmax.f32 %v717_v22, %v718_v49  ;;  %v726_v51 = vmax.f32 %v724_v24, %v725_v28  ;;  %v6361_v22 = vld [vmem:[#allocation11 + $0x8c] sm:$0xf0]  ;;  %v5125_v24 = vld [vmem:[#allocation11 + $0x180] sm:$0xf]  ;;  %v6403_v49 = vld [vmem:[#allocation11 + $0x1e4] sm:$0xf]  ;;  %3556 = vmatpush.bf16.msra.mxu3 %v5142_v21  ;;  %v5050_v33 = vor.u32 %v6371_v26, %v5047_v27 }
 0x20e   :  { %v7289_v55 = vsel %vm807_vm6, %v1110_v37, %v7264_v45  ;;  %v7293_v56 = vsel %vm807_vm6, %v1117_v38, %v7268_v46  ;;  %v1048_v57 = vmax.f32 %v964_v41, 0.0  ;;  %v1049_v58 = vmax.f32 %v1013_v44, 0.0  ;;  %v4981_v44 = vld [vmem:[#allocation11 + $0x60] sm:$0xf]  ;;  %v6395_v21 = vld [vmem:[#allocation11 + $0x1a4] sm:$0xf] }
 0x20f   :  { %v720_v39 = vrot.slane %v719_v3, 1  ;;  %v727_v59 = vrot.slane %v726_v51, 1  ;;  %v4998_v9 = vor.u32 %v6361_v22, %v4997_v16  ;;  %v5178_v41 = vor.u32 %v6403_v49, %v5175_v35  ;;  %3645 = vmatpush.bf16.msrb.mxu0 %v5050_v33  ;;  %v5143_v16 = vld [vmem:[#allocation11 + $0x1b0] sm:$0xf0] }
 0x210   :  { %v574_v34 = vpop.f32.mrf.mxu2  ;;  %v623_v4 = vpop.f32.mrf.mxu3  ;;  %v1118_v12 = vmax.f32 %v1046_v30, %v1048_v57  ;;  %v1125_v62 = vmax.f32 %v1047_v60, %v1049_v58  ;;  %v5159_v57 = vld [vmem:[#allocation11 + $0x1d0] sm:$0xf0] }
 0x211   :  { %v721_v45 = vmax.f32 %v719_v3, %v720_v39  ;;  %v728_v8 = vmax.f32 %v726_v51, %v727_v59  ;;  %v575_v46 = vadd.f32 %v574_v34, %v7210_v42  ;;  %v624_v1 = vadd.f32 %v623_v4, %v7212_v43  ;;  %3544 = vmatpush.bf16.msra.mxu2 %v4998_v9  ;;  %v6389_v3 = vld [vmem:[#allocation11 + $0x16c] sm:$0xf0]  ;;  %v6367_v51 = vld [vmem:[#allocation11 + $0xc4] sm:$0xf] }
 0x212   :  { %v1119_v28 = vrot.slane %v1118_v12, 4  ;;  %v1126_v30 = vrot.slane %v1125_v62, 4  ;;  %3658 = vmatpush.bf16.msrb.mxu1 %v5178_v41  ;;  %v5110_v63 = vor.u32 %v6389_v3, %v5109_v48  ;;  %v4949_v41 = vld [vmem:[#allocation11 + $0x20] sm:$0xf] }
 0x213   :  { %v7300_v14 = vsel %vm807_vm6, %v721_v45, %v7273_v40  ;;  %v7304_v15 = vsel %vm807_vm6, %v728_v8, %v7276_v0  ;;  %v659_v17 = vmax.f32 %v575_v46, 0.0  ;;  %v966_v18 = vpop.f32.mrf.mxu0  ;;  %v1015_v20 = vpop.f32.mrf.mxu1  ;;  %v6393_v40 = vld [vmem:[#allocation11 + $0x18c] sm:$0xf0]  ;;  %v660_v0 = vmax.f32 %v624_v1, 0.0 }
 0x214   :  { %v5126_v32 = vor.u32 %v6393_v40, %v5125_v24  ;;  %v7310_v58 = vmax.f32 %v1118_v12, %v1119_v28  ;;  %v7312_v39 = vmax.f32 %v1125_v62, %v1126_v30  ;;  %v967_v2 = vadd.f32 %v966_v18, %v7202_v61  ;;  %v6363_v12 = vld [vmem:[#allocation11 + $0xa4] sm:$0xf]  ;;  %v5015_v62 = vld [vmem:[#allocation11 + $0xb0] sm:$0xf0] }
 0x215   :  { %v729_v25 = vmax.f32 %v657_v10, %v659_v17  ;;  %1347 = vmatmul.bf16.gmra.mxu2 %v7178_v23  ;;  %1396 = vmatmul.bf16.gmra.mxu3 %v7178_v23  ;;  %v736_v52 = vmax.f32 %v658_v29, %v660_v0  ;;  %v1016_v8 = vadd.f32 %v1015_v20, %v7204_v36 }
 0x216   :  { %1729 = vmatmul.bf16.gmra.mxu0 %v7178_v23  ;;  %1778 = vmatmul.bf16.gmra.mxu1 %v7178_v23  ;;  %v4982_v23 = vor.u32 %v6357_v47, %v4981_v44  ;;  %v5034_v10 = vor.u32 %v6367_v51, %v5031_v53  ;;  %v5162_v46 = vor.u32 %v6399_v54, %v5159_v57  ;;  %v1121_v22 = vrot.slane %v7310_v58, 2  ;;  %v6349_v44 = vld [vmem:[#allocation11 + $0x2c] sm:$0xf0]  ;;  %v5077_v51 = vld [vmem:[#allocation11 + $0x120] sm:$0xf] }
 0x217   :  { %v730_v50 = vrot.slane %v729_v25, 4  ;;  %3557 = vmatpush.bf16.msra.mxu3 %v5126_v32  ;;  %v737_v1 = vrot.slane %v736_v52, 4  ;;  %v1128_v24 = vrot.slane %v7312_v39, 2  ;;  %v4966_v20 = vor.u32 %v6353_v6, %v4965_v5  ;;  %v6359_v54 = vld [vmem:[#allocation11 + $0x84] sm:$0xf] }
 0x218   :  { %v577_v37 = vpop.f32.mrf.mxu2  ;;  %v626_v38 = vpop.f32.mrf.mxu3  ;;  %3545 = vmatpush.bf16.msra.mxu2 %v4982_v23  ;;  %3646 = vmatpush.bf16.msrb.mxu0 %v5034_v10  ;;  %v1050_v9 = vmax.f32 %v967_v2, 0.0  ;;  %v5018_v29 = vor.u32 %v6363_v12, %v5015_v62  ;;  %v5146_v0 = vor.u32 %v6395_v21, %v5143_v16  ;;  %v1051_v28 = vmax.f32 %v1016_v8, 0.0  ;;  %v6381_v23 = vld [vmem:[#allocation11 + $0x12c] sm:$0xf0]  ;;  %v4999_v57 = vld [vmem:[#allocation11 + $0x90] sm:$0xf0] }
 0x219   :  { %v7317_v45 = vmax.f32 %v729_v25, %v730_v50  ;;  %v578_v13 = vadd.f32 %v577_v37, %v7210_v42  ;;  %v627_v17 = vadd.f32 %v626_v38, %v7212_v43  ;;  %v5094_v25 = vor.u32 %v6385_v11, %v5093_v7  ;;  %3659 = vmatpush.bf16.msrb.mxu1 %v5162_v46  ;;  %v5127_v2 = vld [vmem:[#allocation11 + $0x190] sm:$0xf0]  ;;  %v5061_v7 = vld [vmem:[#allocation11 + $0x100] sm:$0xf]  ;;  %v6377_v11 = vld [vmem:[#allocation11 + $0x10c] sm:$0xf0] }
 0x21a   :  { %v738_v33 = vmax.f32 %v736_v52, %v737_v1  ;;  %v6391_v52 = vld [vmem:[#allocation11 + $0x184] sm:$0xf]  ;;  %v7336_v8 = vmax.f32 %v7310_v58, %v1121_v22  ;;  %v5078_v10 = vor.u32 %v6381_v23, %v5077_v51  ;;  %v5002_v46 = vor.u32 %v6359_v54, %v4999_v57  ;;  %v5301_v12 = vld [vmem:[#allocation11 + $0x2e0] sm:$0xf]  ;;  %v6437_v62 = vld [vmem:[#allocation11 + $0x2ec] sm:$0xf0] }
 0x21b   :  { %v968_v59 = vpop.f32.mrf.mxu0  ;;  %v1017_v60 = vpop.f32.mrf.mxu1  ;;  %3558 = vmatpush.bf16.msra.mxu3 %v5110_v63  ;;  %v732_v49 = vrot.slane %v7317_v45, 2  ;;  %v661_v35 = vmax.f32 %v578_v13, 0.0  ;;  %v662_v37 = vmax.f32 %v627_v17, 0.0  ;;  %v4950_v63 = vor.u32 %v6349_v44, %v4949_v41  ;;  %v5429_v22 = vld [vmem:[#allocation11 + $0x3e0] sm:$0xf] }
 0x21c   :  { %v969_v34 = vadd.f32 %v968_v59, %v7202_v61  ;;  %v1018_v4 = vadd.f32 %v1017_v60, %v7204_v36  ;;  %3546 = vmatpush.bf16.msra.mxu2 %v4966_v20  ;;  %3647 = vmatpush.bf16.msrb.mxu0 %v5018_v29  ;;  %v739_v5 = vrot.slane %v738_v33, 2  ;;  %v5130_v21 = vor.u32 %v6391_v52, %v5127_v2  ;;  %v4983_v29 = vld [vmem:[#allocation11 + $0x70] sm:$0xf0] }
 0x21d   :  { %3660 = vmatpush.bf16.msrb.mxu1 %v5146_v0  ;;  %v7339_v20 = vmax.f32 %v7312_v39, %v1128_v24  ;;  %v1123_v0 = vrot.slane %v7336_v8, 1 }
 0x21e   :  { %v1052_v18 = vmax.f32 %v969_v34, 0.0  ;;  %v1053_v40 = vmax.f32 %v1018_v4, 0.0  ;;  %v4933_v34 = vld [vmem:[#allocation11] sm:$0xf]  ;;  %v6345_v4 = vld [vmem:[#allocation11 + $0xc] sm:$0xf0] }
 0x21f   :  { %3559 = vmatpush.bf16.msra.mxu3 %v5094_v25  ;;  %v4934_v16 = vor.u32 %v6345_v4, %v4933_v34  ;;  %v7344_v25 = vmax.f32 %v738_v33, %v739_v5  ;;  %v5111_v33 = vld [vmem:[#allocation11 + $0x170] sm:$0xf0] }
 0x220   :  { %v579_v26 = vpop.f32.mrf.mxu2  ;;  %v628_v27 = vpop.f32.mrf.mxu3  ;;  %v1132_v38 = vmax.f32 %v1050_v9, %v1052_v18  ;;  %v1139_v53 = vmax.f32 %v1051_v28, %v1053_v40  ;;  %3547 = vmatpush.bf16.msra.mxu2 %v4950_v63  ;;  %3648 = vmatpush.bf16.msrb.mxu0 %v5002_v46  ;;  %v5062_v9 = vor.u32 %v6377_v11, %v5061_v7  ;;  %v6351_v7 = vld [vmem:[#allocation11 + $0x44] sm:$0xf] }
 0x221   :  { %v580_v30 = vadd.f32 %v579_v26, %v7210_v42  ;;  %v629_v32 = vadd.f32 %v628_v27, %v7212_v43  ;;  %3661 = vmatpush.bf16.msrb.mxu1 %v5130_v21  ;;  %v5302_v40 = vor.u32 %v6437_v62, %v5301_v12  ;;  %v6469_v26 = vld [vmem:[#allocation11 + $0x3ec] sm:$0xf0]  ;;  %v6355_v27 = vld [vmem:[#allocation11 + $0x64] sm:$0xf]  ;;  %v741_v51 = vrot.slane %v7344_v25, 1 }
 0x222   :  { %v1133_v6 = vrot.slane %v1132_v38, 4  ;;  %v1140_v1 = vrot.slane %v1139_v53, 4  ;;  %v5430_v41 = vor.u32 %v6469_v26, %v5429_v22  ;;  %v4986_v44 = vor.u32 %v6355_v27, %v4983_v29  ;;  %v5095_v21 = vld [vmem:[#allocation11 + $0x150] sm:$0xf0]  ;;  %v6429_v26 = vld [vmem:[#allocation11 + $0x2ac] sm:$0xf0] }
 0x223   :  { %v663_v47 = vmax.f32 %v580_v30, 0.0  ;;  %v664_v48 = vmax.f32 %v629_v32, 0.0  ;;  %v7327_v50 = vpop.f32.mrf.mxu0  ;;  %v7329_v3 = vpop.f32.mrf.mxu1  ;;  %3560 = vmatpush.bf16.msra.mxu3 %v5078_v10  ;;  %v7347_v30 = vld [vmem:[#allocation9 + $0x6] sm:$0x3]  ;;  %v6387_v32 = vld [vmem:[#allocation11 + $0x164] sm:$0xf] }
 0x224   :  { %v1134_v28 = vmax.f32 %v1132_v38, %v1133_v6  ;;  %3548 = vmatpush.bf16.msra.mxu2 %v4934_v16  ;;  %v7357_v57 = vperm.slane %v7347_v30, 0  ;;  %3649 = vmatpush.bf16.msrb.mxu0 %v4986_v44  ;;  %v5114_v52 = vor.u32 %v6387_v32, %v5111_v33  ;;  %v7361_v34 = vadd.f32 %v7327_v50, %v7202_v61  ;;  %v4967_v10 = vld [vmem:[#allocation11 + $0x50] sm:$0xf0]  ;;  %v5397_v33 = vld [vmem:[#allocation11 + $0x3a0] sm:$0xf] }
 0x225   :  { %v743_v59 = vmax.f32 %v661_v35, %v663_v47  ;;  %v750_v60 = vmax.f32 %v662_v37, %v664_v48  ;;  %1352 = vmatmul.bf16.gmra.mxu2 %v7186_v19  ;;  %1401 = vmatmul.bf16.gmra.mxu3 %v7186_v19  ;;  %v1130_v35 = vrot.slane %v7339_v20, 1  ;;  %v5285_v47 = vld [vmem:[#allocation11 + $0x2c0] sm:$0xf]  ;;  %v6433_v48 = vld [vmem:[#allocation11 + $0x2cc] sm:$0xf0]  ;;  %v7366_v11 = vadd.f32 %v7329_v3, %v7204_v36 }
 0x226   :  { %1734 = vmatmul.bf16.gmra.mxu0 %v7186_v19  ;;  %1783 = vmatmul.bf16.gmra.mxu1 %v7186_v19  ;;  %v7342_v19 = vmax.f32 %v7317_v45, %v732_v49  ;;  %v1141_v45 = vmax.f32 %v1139_v53, %v1140_v1  ;;  %v1135_v54 = vrot.slane %v1134_v28, 2  ;;  %v5286_v6 = vor.u32 %v6433_v48, %v5285_v47  ;;  %v6347_v44 = vld [vmem:[#allocation11 + $0x24] sm:$0xf] }
 0x227   :  { %v744_v13 = vrot.slane %v743_v59, 4  ;;  %v751_v58 = vrot.slane %v750_v60, 4  ;;  %3561 = vmatpush.bf16.msra.mxu3 %v5062_v9  ;;  %3662 = vmatpush.bf16.msrb.mxu1 %v5114_v52  ;;  %v4970_v3 = vor.u32 %v6351_v7, %v4967_v10  ;;  %v7390_v52 = vperm.slane %v7347_v30, 1 }
 0x228   :  { %v582_v17 = vpop.f32.mrf.mxu2  ;;  %v631_v18 = vpop.f32.mrf.mxu3  ;;  %3567 = vmatpush.bf16.msrb.mxu2 %v5302_v40  ;;  %v734_v38 = vrot.slane %v7342_v19, 1  ;;  %v1142_v63 = vrot.slane %v1141_v45, 2  ;;  %v5269_v40 = vld [vmem:[#allocation11 + $0x2a0] sm:$0xf]  ;;  %v7373_v27 = vmax.f32 %v1134_v28, %v1135_v54  ;;  %v4951_v28 = vld [vmem:[#allocation11 + $0x30] sm:$0xf0] }
 0x229   :  { %v745_v49 = vmax.f32 %v743_v59, %v744_v13  ;;  %v7350_v37 = vmax.f32 %v750_v60, %v751_v58  ;;  %v583_v23 = vadd.f32 %v582_v17, %v7210_v42  ;;  %v632_v53 = vadd.f32 %v631_v18, %v7212_v43  ;;  %v5413_v59 = vld [vmem:[#allocation11 + $0x3c0] sm:$0xf]  ;;  %v6465_v60 = vld [vmem:[#allocation11 + $0x3cc] sm:$0xf0]  ;;  %v6383_v18 = vld [vmem:[#allocation11 + $0x144] sm:$0xf]  ;;  %3650 = vmatpush.bf16.msrb.mxu0 %v4970_v3 }
 0x22a   :  { %v5414_v17 = vor.u32 %v6465_v60, %v5413_v59  ;;  %v7375_v29 = vmax.f32 %v1141_v45, %v1142_v63  ;;  %v5079_v45 = vld [vmem:[#allocation11 + $0x130] sm:$0xf0]  ;;  %v1055_v54 = vmax.f32 %v7366_v11, 0.0  ;;  %v5253_v59 = vld [vmem:[#allocation11 + $0x280] sm:$0xf]  ;;  %v5270_v63 = vor.u32 %v6429_v26, %v5269_v40 }
 0x22b   :  { %v973_v39 = vpop.f32.mrf.mxu0  ;;  %v1022_v24 = vpop.f32.mrf.mxu1  ;;  %3580 = vmatpush.bf16.msrb.mxu3 %v5430_v41  ;;  %v746_v2 = vrot.slane %v745_v49, 2  ;;  %v753_v46 = vrot.slane %v7350_v37, 2  ;;  %v665_v1 = vmax.f32 %v583_v23, 0.0  ;;  %v666_v13 = vmax.f32 %v632_v53, 0.0  ;;  %v6461_v41 = vld [vmem:[#allocation11 + $0x3ac] sm:$0xf0] }
 0x22c   :  { %v7371_v50 = vadd.f32 %v973_v39, %v7202_v61  ;;  %3568 = vmatpush.bf16.msrb.mxu2 %v5286_v6  ;;  %v7380_v39 = vadd.f32 %v1022_v24, %v7204_v36  ;;  %v5098_v23 = vor.u32 %v6383_v18, %v5095_v21  ;;  %v6379_v53 = vld [vmem:[#allocation11 + $0x124] sm:$0xf]  ;;  %v1137_v30 = vrot.slane %v7373_v27, 1  ;;  %v5063_v3 = vld [vmem:[#allocation11 + $0x110] sm:$0xf0] }
 0x22d   :  { %v7377_v32 = vmax.f32 %v745_v49, %v746_v2  ;;  %v1054_v49 = vmax.f32 %v7361_v34, 0.0  ;;  %v7393_v60 = vmax.f32 %v7350_v37, %v753_v46  ;;  %v5398_v2 = vor.u32 %v6461_v41, %v5397_v33  ;;  %v6425_v34 = vld [vmem:[#allocation11 + $0x28c] sm:$0xf0] }
 0x22e   :  { %v1056_v24 = vmax.f32 %v7371_v50, 0.0  ;;  %3663 = vmatpush.bf16.msrb.mxu1 %v5098_v23  ;;  %v1057_v46 = vmax.f32 %v7380_v39, 0.0  ;;  %v6343_v50 = vld [vmem:[#allocation11 + $0x4] sm:$0xf]  ;;  %v5254_v18 = vor.u32 %v6425_v34, %v5253_v59  ;;  %v5365_v59 = vld [vmem:[#allocation11 + $0x360] sm:$0xf] }
 0x22f   :  { %3581 = vmatpush.bf16.msrb.mxu3 %v5414_v17  ;;  %v748_v37 = vrot.slane %v7377_v32, 1  ;;  %v7402_v17 = vmax.f32 %v7342_v19, %v734_v38  ;;  %v755_v40 = vrot.slane %v7393_v60, 1  ;;  %v5237_v19 = vld [vmem:[#allocation11 + $0x260] sm:$0xf]  ;;  %v6421_v38 = vld [vmem:[#allocation11 + $0x26c] sm:$0xf0] }
 0x230   :  { %v584_v4 = vpop.f32.mrf.mxu2  ;;  %v633_v5 = vpop.f32.mrf.mxu3  ;;  %3569 = vmatpush.bf16.msrb.mxu2 %v5270_v63  ;;  %v7405_v26 = vmax.f32 %v1054_v49, %v1056_v24  ;;  %v6453_v63 = vld [vmem:[#allocation11 + $0x36c] sm:$0xf0] }
 0x231   :  { %v585_v12 = vadd.f32 %v584_v4, %v7210_v42  ;;  %v634_v62 = vadd.f32 %v633_v5, %v7212_v43  ;;  %v5381_v4 = vld [vmem:[#allocation11 + $0x380] sm:$0xf]  ;;  %v6457_v5 = vld [vmem:[#allocation11 + $0x38c] sm:$0xf0] }
 0x232   :  { %v5382_v21 = vor.u32 %v6457_v5, %v5381_v4  ;;  %v6417_v4 = vld [vmem:[#allocation11 + $0x24c] sm:$0xf0]  ;;  %v1153_v5 = vmax.f32 %v1055_v54, %v1057_v46 }
 0x233   :  { %v667_v16 = vmax.f32 %v585_v12, 0.0  ;;  %v668_v58 = vmax.f32 %v634_v62, 0.0  ;;  %v976_v22 = vpop.f32.mrf.mxu0  ;;  %v1025_v9 = vpop.f32.mrf.mxu1  ;;  %v1228_v62 = vld [vmem:[#allocation9 + $0x4] sm:$0x3]  ;;  %3582 = vmatpush.bf16.msrb.mxu3 %v5398_v2 }
 0x234   :  { %v977_v33 = vadd.f32 %v976_v22, %v7202_v61  ;;  %v1026_v39 = vadd.f32 %v1025_v9, %v7204_v36  ;;  %v7412_v22 = vperm.slane %v1228_v62, 0  ;;  %3570 = vmatpush.bf16.msrb.mxu2 %v5254_v18 }
 0x235   :  { %v757_v47 = vmax.f32 %v665_v1, %v667_v16  ;;  %v764_v48 = vmax.f32 %v666_v13, %v668_v58  ;;  %1357 = vmatmul.bf16.gmra.mxu2 %v7194_v31  ;;  %1406 = vmatmul.bf16.gmra.mxu3 %v7194_v31  ;;  %v5082_v1 = vor.u32 %v6379_v53, %v5079_v45  ;;  %v1144_v13 = vrot.slane %v7375_v29, 1  ;;  %v4935_v16 = vld [vmem:[#allocation11 + $0x10] sm:$0xf0]  ;;  %v6375_v58 = vld [vmem:[#allocation11 + $0x104] sm:$0xf] }
 0x236   :  { %1739 = vmatmul.bf16.gmra.mxu0 %v7194_v31  ;;  %1788 = vmatmul.bf16.gmra.mxu1 %v7194_v31  ;;  %v4954_v31 = vor.u32 %v6347_v44, %v4951_v28  ;;  %v4938_v9 = vor.u32 %v6343_v50, %v4935_v16  ;;  %v5066_v24 = vor.u32 %v6375_v58, %v5063_v3  ;;  %v1058_v50 = vmax.f32 %v977_v33, 0.0 }
 0x237   :  { %v758_v6 = vrot.slane %v757_v47, 4  ;;  %v765_v7 = vrot.slane %v764_v48, 4  ;;  %3664 = vmatpush.bf16.msrb.mxu1 %v5082_v1  ;;  %3583 = vmatpush.bf16.msrb.mxu3 %v5382_v21  ;;  %v1059_v18 = vmax.f32 %v1026_v39, 0.0  ;;  %v742_v33 = vmax.f32 %v7344_v25, %v741_v51 }
 0x238   :  { %v587_v10 = vpop.f32.mrf.mxu2  ;;  %v636_v12 = vpop.f32.mrf.mxu3  ;;  %3651 = vmatpush.bf16.msrb.mxu0 %v4954_v31  ;;  %v6449_v31 = vld [vmem:[#allocation11 + $0x34c] sm:$0xf0]  ;;  %v749_v39 = vmax.f32 %v7377_v32, %v748_v37  ;;  %v810_v32 = vsel %vm809_vm7, %v7402_v17, %v7300_v14 }
 0x239   :  { %v759_v23 = vmax.f32 %v757_v47, %v758_v6  ;;  %v766_v28 = vmax.f32 %v764_v48, %v765_v7  ;;  %v588_v49 = vadd.f32 %v587_v10, %v7210_v42  ;;  %v637_v2 = vadd.f32 %v636_v12, %v7212_v43  ;;  %v5349_v10 = vld [vmem:[#allocation11 + $0x340] sm:$0xf] }
 0x23a   :  { %v5238_v48 = vor.u32 %v6421_v38, %v5237_v19  ;;  %v7418_v6 = vperm.slane %v1228_v62, 1  ;;  %v5366_v7 = vor.u32 %v6453_v63, %v5365_v59  ;;  %v5205_v19 = vld [vmem:[#allocation11 + $0x220] sm:$0xf]  ;;  %v6413_v38 = vld [vmem:[#allocation11 + $0x22c] sm:$0xf0] }
 0x23b   :  { %v978_v41 = vpop.f32.mrf.mxu0  ;;  %v1027_v44 = vpop.f32.mrf.mxu1  ;;  %3665 = vmatpush.bf16.msrb.mxu1 %v5066_v24  ;;  %v760_v1 = vrot.slane %v759_v23, 2  ;;  %v767_v12 = vrot.slane %v766_v28, 2  ;;  %v669_v58 = vmax.f32 %v588_v49, 0.0  ;;  %v670_v54 = vmax.f32 %v637_v2, 0.0  ;;  %v5333_v59 = vld [vmem:[#allocation11 + $0x320] sm:$0xf] }
 0x23c   :  { %v979_v53 = vadd.f32 %v978_v41, %v7202_v61  ;;  %v1028_v45 = vadd.f32 %v1027_v44, %v7204_v36  ;;  %v5221_v61 = vld [vmem:[#allocation11 + $0x240] sm:$0xf]  ;;  %v1147_v36 = vrot.slane %v7405_v26, 4  ;;  %3652 = vmatpush.bf16.msrb.mxu0 %v4938_v9  ;;  %3571 = vmatpush.bf16.msrb.mxu2 %v5238_v48  ;;  %v5350_v44 = vor.u32 %v6449_v31, %v5349_v10  ;;  %v6445_v63 = vld [vmem:[#allocation11 + $0x32c] sm:$0xf0] }
 0x23d   :  { %v5222_v11 = vor.u32 %v6417_v4, %v5221_v61  ;;  %3584 = vmatpush.bf16.msrb.mxu3 %v5366_v7  ;;  %v756_v49 = vmax.f32 %v7393_v60, %v755_v40  ;;  %v1154_v24 = vrot.slane %v1153_v5, 4  ;;  %v761_v2 = vmax.f32 %v759_v23, %v760_v1  ;;  %v5189_v4 = vld [vmem:[#allocation11 + $0x200] sm:$0xf]  ;;  %v6409_v7 = vld [vmem:[#allocation11 + $0x20c] sm:$0xf0] }
 0x23e   :  { %v1060_v34 = vmax.f32 %v979_v53, 0.0  ;;  %v1061_v47 = vmax.f32 %v1028_v45, 0.0  ;;  %v1148_v9 = vmax.f32 %v7405_v26, %v1147_v36  ;;  %v5334_v61 = vor.u32 %v6445_v63, %v5333_v59  ;;  %v6441_v36 = vld [vmem:[#allocation11 + $0x30c] sm:$0xf0] }
 0x23f   :  { %v820_v60 = vsel %vm809_vm7, %v742_v33, %v7304_v15  ;;  %v812_v40 = vsel %vm811_vm8, %v749_v39, %v810_v32  ;;  %v1155_v1 = vmax.f32 %v1153_v5, %v1154_v24  ;;  %v762_v14 = vrot.slane %v761_v2, 1 }
 0x240   :  { %v589_v21 = vpop.f32.mrf.mxu2  ;;  %v638_v16 = vpop.f32.mrf.mxu3  ;;  %v1160_v62 = vmax.f32 %v1058_v50, %v1060_v34  ;;  %v1167_v46 = vmax.f32 %v1059_v18, %v1061_v47  ;;  %v768_v34 = vmax.f32 %v766_v28, %v767_v12  ;;  %3572 = vmatpush.bf16.msrb.mxu2 %v5222_v11  ;;  %v5206_v47 = vor.u32 %v6413_v38, %v5205_v19  ;;  %v5317_v28 = vld [vmem:[#allocation11 + $0x300] sm:$0xf] }
 0x241   :  { %v590_v3 = vadd.f32 %v589_v21, %v7210_v42  ;;  %v639_v41 = vadd.f32 %v638_v16, %v7212_v43  ;;  %3585 = vmatpush.bf16.msrb.mxu3 %v5350_v44  ;;  %v821_v10 = vsel %vm811_vm8, %v756_v49, %v820_v60  ;;  %v1149_v31 = vrot.slane %v1148_v9, 2 }
 0x242   :  { %v1161_v37 = vrot.slane %v1160_v62, 4  ;;  %v1168_v48 = vrot.slane %v1167_v46, 4  ;;  %v769_v50 = vrot.slane %v768_v34, 1  ;;  %v5190_v16 = vor.u32 %v6409_v7, %v5189_v4 }
 0x243   :  { %v671_v42 = vmax.f32 %v590_v3, 0.0  ;;  %v672_v53 = vmax.f32 %v639_v41, 0.0  ;;  %v1705_v43 = vpop.f32.mrf.mxu0  ;;  %v1754_v45 = vpop.f32.mrf.mxu1  ;;  %v5318_v3 = vor.u32 %v6441_v36, %v5317_v28  ;;  %v7441_v38 = vmax.f32 %v1148_v9, %v1149_v31 }
 0x244   :  { %3573 = vmatpush.bf16.msrb.mxu2 %v5206_v47  ;;  %v1706_v15 = vadd.f32 %v1705_v43, %v7357_v57  ;;  %v1162_v41 = vmax.f32 %v1160_v62, %v1161_v37  ;;  %v1169_v11 = vmax.f32 %v1167_v46, %v1168_v48  ;;  %v1156_v33 = vrot.slane %v1155_v1, 2 }
 0x245   :  { %v771_v25 = vmax.f32 %v669_v58, %v671_v42  ;;  %v778_v51 = vmax.f32 %v670_v54, %v672_v53  ;;  %v1755_v58 = vadd.f32 %v1754_v45, %v7390_v52  ;;  %3586 = vmatpush.bf16.msrb.mxu3 %v5334_v61  ;;  %v763_v53 = vmax.f32 %v761_v2, %v762_v14 }
 0x246   :  { %v770_v43 = vmax.f32 %v768_v34, %v769_v50  ;;  %v1794_v63 = vmax.f32 %v1706_v15, 0.0  ;;  %v1163_v24 = vrot.slane %v1162_v41, 2 }
 0x247   :  { %v772_v26 = vrot.slane %v771_v25, 4  ;;  %v779_v23 = vrot.slane %v778_v51, 4  ;;  %v1795_v49 = vmax.f32 %v1755_v58, 0.0 }
 0x248   :  { %v1323_v17 = vpop.f32.mrf.mxu2  ;;  %v1372_v12 = vpop.f32.mrf.mxu3  ;;  %3574 = vmatpush.bf16.msrb.mxu2 %v5190_v16  ;;  %v822_v28 = vsel %vm813_vm9, %v770_v43, %v821_v10  ;;  %v1124_v10 = vmax.f32 %v7336_v8, %v1123_v0 }
 0x249   :  { %v773_v18 = vmax.f32 %v771_v25, %v772_v26  ;;  %v780_v21 = vmax.f32 %v778_v51, %v779_v23  ;;  %3587 = vmatpush.bf16.msrb.mxu3 %v5318_v3  ;;  %v1170_v25 = vrot.slane %v1169_v11, 2  ;;  %v1324_v47 = vadd.f32 %v1323_v17, %v7412_v22 }
 0x24a   :  { %v1373_v32 = vadd.f32 %v1372_v12, %v7418_v6  ;;  %v1157_v26 = vmax.f32 %v1155_v1, %v1156_v33  ;;  %v814_v23 = vsel %vm813_vm9, %v763_v53, %v812_v40 }
 0x24b   :  { %v774_v54 = vrot.slane %v773_v18, 2  ;;  %v781_v44 = vrot.slane %v780_v21, 2  ;;  %v1707_v5 = vpop.f32.mrf.mxu0  ;;  %v1756_v19 = vpop.f32.mrf.mxu1  ;;  %v1412_v16 = vmax.f32 %v1324_v47, 0.0 }
 0x24c   :  { %v1708_v39 = vadd.f32 %v1707_v5, %v7357_v57  ;;  %v1757_v42 = vadd.f32 %v1756_v19, %v7390_v52  ;;  %v1413_v15 = vmax.f32 %v1373_v32, 0.0  ;;  %v1151_v19 = vrot.slane %v7441_v38, 1 }
 0x24d   :  { %v775_v59 = vmax.f32 %v773_v18, %v774_v54  ;;  %v782_v45 = vmax.f32 %v780_v21, %v781_v44  ;;  %v1164_v18 = vmax.f32 %v1162_v41, %v1163_v24  ;;  %v1171_v21 = vmax.f32 %v1169_v11, %v1170_v25 }
 0x24e   :  { %v1796_v62 = vmax.f32 %v1708_v39, 0.0  ;;  %v1797_v46 = vmax.f32 %v1757_v42, 0.0  ;;  %v1131_v54 = vmax.f32 %v7339_v20, %v1130_v35  ;;  %v1138_v41 = vmax.f32 %v7373_v27, %v1137_v30 }
 0x24f   :  { %v776_v51 = vrot.slane %v775_v59, 1  ;;  %v783_v9 = vrot.slane %v782_v45, 1  ;;  %v1145_v11 = vmax.f32 %v7375_v29, %v1144_v13  ;;  %v1158_v33 = vrot.slane %v1157_v26, 1 }
 0x250   :  { %v1826_v37 = vmax.f32 %v1794_v63, %v1796_v62  ;;  %v1833_v48 = vmax.f32 %v1795_v49, %v1797_v46  ;;  %v1325_v2 = vpop.f32.mrf.mxu2  ;;  %v1374_v34 = vpop.f32.mrf.mxu3  ;;  %v1165_v8 = vrot.slane %v1164_v18, 1  ;;  %v1172_v0 = vrot.slane %v1171_v21, 1 }
 0x251   :  { %v777_v61 = vmax.f32 %v775_v59, %v776_v51  ;;  %v784_v4 = vmax.f32 %v782_v45, %v783_v9  ;;  %v1326_v7 = vadd.f32 %v1325_v2, %v7412_v22  ;;  %v1375_v60 = vadd.f32 %v1374_v34, %v7418_v6 }
 0x252   :  { %v1827_v58 = vrot.slane %v1826_v37, 4  ;;  %v1834_v3 = vrot.slane %v1833_v48, 4  ;;  %v1195_v13 = vsel %vm809_vm7, %v1124_v10, %v7289_v55  ;;  %v1202_v42 = vsel %vm809_vm7, %v1131_v54, %v7293_v56 }
 0x253   :  { %v1414_v36 = vmax.f32 %v1326_v7, 0.0  ;;  %v1415_v31 = vmax.f32 %v1375_v60, 0.0  ;;  %v1710_v14 = vpop.f32.mrf.mxu0  ;;  %v1759_v17 = vpop.f32.mrf.mxu1  ;;  %v816_v12 = vsel %vm815_vm10, %v777_v61, %v814_v23  ;;  %v823_v50 = vsel %vm815_vm10, %v784_v4, %v822_v28 }
 0x254   :  { %v7453_v1 = vpack.c.bf16 %v816_v12, %v816_v12  ;;  %v7455_v40 = vpack.c.bf16 %v823_v50, %v823_v50  ;;  %v1828_v27 = vmax.f32 %v1826_v37, %v1827_v58  ;;  %v1835_v30 = vmax.f32 %v1833_v48, %v1834_v3 }
 0x255   :  { %v1444_v44 = vmax.f32 %v1412_v16, %v1414_v36  ;;  %v1451_v5 = vmax.f32 %v1413_v15, %v1415_v31  ;;  %v1711_v39 = vadd.f32 %v1710_v14, %v7357_v57  ;;  %v1760_v29 = vadd.f32 %v1759_v17, %v7390_v52 }
 0x256   :  { %3549 = vmatmul.bf16.vlgmr.msra.gmra.mxu2 %v7453_v1  ;;  %3562 = vmatmul.bf16.vlgmr.msra.gmra.mxu3 %v7455_v40  ;;  %v1196_v59 = vsel %vm811_vm8, %v1138_v41, %v1195_v13  ;;  %v1203_v45 = vsel %vm811_vm8, %v1145_v11, %v1202_v42  ;;  %v1152_v63 = vmax.f32 %v7441_v38, %v1151_v19  ;;  %v1829_v9 = vrot.slane %v1828_v27, 2 }
 0x257   :  { %3653 = vmatmul.bf16.vlgmr.msrb.gmra.mxu0 %v7453_v1  ;;  %3666 = vmatmul.bf16.vlgmr.msrb.gmra.mxu1 %v7455_v40  ;;  %v1445_v53 = vrot.slane %v1444_v44, 4  ;;  %v1452_v43 = vrot.slane %v1451_v5, 4  ;;  %v1159_v49 = vmax.f32 %v1157_v26, %v1158_v33  ;;  %v1166_v24 = vmax.f32 %v1164_v18, %v1165_v8 }
 0x258   :  { %v1328_v20 = vpop.f32.mrf.mxu2  ;;  %v1377_v35 = vpop.f32.mrf.mxu3  ;;  %v1173_v25 = vmax.f32 %v1171_v21, %v1172_v0  ;;  %v1836_v47 = vrot.slane %v1835_v30, 2  ;;  %v1798_v56 = vmax.f32 %v1711_v39, 0.0  ;;  %v1799_v32 = vmax.f32 %v1760_v29, 0.0 }
 0x259   :  { %v1446_v37 = vmax.f32 %v1444_v44, %v1445_v53  ;;  %v1453_v48 = vmax.f32 %v1451_v5, %v1452_v43  ;;  %v1329_v61 = vadd.f32 %v1328_v20, %v7412_v22  ;;  %v1378_v38 = vadd.f32 %v1377_v35, %v7418_v6 }
 0x25a   :  { %v1197_v4 = vsel %vm813_vm9, %v1152_v63, %v1196_v59  ;;  %v1204_v7 = vsel %vm813_vm9, %v1159_v49, %v1203_v45  ;;  %v1830_v14 = vmax.f32 %v1828_v27, %v1829_v9  ;;  %v1837_v17 = vmax.f32 %v1835_v30, %v1836_v47 }
 0x25b   :  { %v1712_v62 = vpop.f32.mrf.mxu0  ;;  %v1761_v46 = vpop.f32.mrf.mxu1  ;;  %v1198_v36 = vsel %vm815_vm10, %v1166_v24, %v1197_v4  ;;  %v1205_v31 = vsel %vm815_vm10, %v1173_v25, %v1204_v7  ;;  %v1447_v18 = vrot.slane %v1446_v37, 2  ;;  %v1454_v21 = vrot.slane %v1453_v48, 2 }
 0x25c   :  { %v1713_v51 = vadd.f32 %v1712_v62, %v7357_v57  ;;  %v1762_v55 = vadd.f32 %v1761_v46, %v7390_v52  ;;  %v1416_v58 = vmax.f32 %v1329_v61, 0.0  ;;  %v1417_v3 = vmax.f32 %v1378_v38, 0.0 }
 0x25d   :  { %v7493_v19 = vpack.c.bf16 %v1198_v36, %v1198_v36  ;;  %v7495_v33 = vpack.c.bf16 %v1205_v31, %v1205_v31  ;;  %v1831_v8 = vrot.slane %v1830_v14, 1  ;;  %v1838_v0 = vrot.slane %v1837_v17, 1 }
 0x25e   :  { %v1800_v2 = vmax.f32 %v1713_v51, 0.0  ;;  %v1801_v34 = vmax.f32 %v1762_v55, 0.0  ;;  %v1448_v27 = vmax.f32 %v1446_v37, %v1447_v18  ;;  %v1455_v30 = vmax.f32 %v1453_v48, %v1454_v21 }
 0x25f   :  { %v1832_v62 = vmax.f32 %v1830_v14, %v1831_v8  ;;  %v1839_v46 = vmax.f32 %v1837_v17, %v1838_v0 }
 0x260   :  { %v1840_v60 = vmax.f32 %v1798_v56, %v1800_v2  ;;  %v1847_v26 = vmax.f32 %v1799_v32, %v1801_v34  ;;  %v1330_v23 = vpop.f32.mrf.mxu2  ;;  %v1379_v28 = vpop.f32.mrf.mxu3  ;;  %v1449_v51 = vrot.slane %v1448_v27, 1  ;;  %v1456_v55 = vrot.slane %v1455_v30, 1 }
 0x261   :  { %v1331_v12 = vadd.f32 %v1330_v23, %v7412_v22  ;;  %v1380_v50 = vadd.f32 %v1379_v28, %v7418_v6 }
 0x262   :  { %v1841_v16 = vrot.slane %v1840_v60, 4  ;;  %v1848_v15 = vrot.slane %v1847_v26, 4  ;;  %v1450_v18 = vmax.f32 %v1448_v27, %v1449_v51  ;;  %v1457_v21 = vmax.f32 %v1455_v30, %v1456_v55 }
 0x263   :  { %v1418_v10 = vmax.f32 %v1331_v12, 0.0  ;;  %v1419_v54 = vmax.f32 %v1380_v50, 0.0  ;;  %v1715_v44 = vpop.f32.mrf.mxu0  ;;  %v1764_v5 = vpop.f32.mrf.mxu1 }
 0x264   :  { %v1842_v41 = vmax.f32 %v1840_v60, %v1841_v16  ;;  %v1849_v11 = vmax.f32 %v1847_v26, %v1848_v15  ;;  %v1716_v53 = vadd.f32 %v1715_v44, %v7357_v57  ;;  %v1765_v43 = vadd.f32 %v1764_v5, %v7390_v52 }
 0x265   :  { %v1458_v20 = vmax.f32 %v1416_v58, %v1418_v10  ;;  %v1465_v35 = vmax.f32 %v1417_v3, %v1419_v54 }
 0x266   :  { %v1843_v39 = vrot.slane %v1842_v41, 2  ;;  %v1850_v29 = vrot.slane %v1849_v11, 2  ;;  %3575 = vmatmul.bf16.vlgmr.msrb.gmra.mxu2 %v7493_v19  ;;  %3588 = vmatmul.bf16.vlgmr.msrb.gmra.mxu3 %v7495_v33  ;;  %v1802_v37 = vmax.f32 %v1716_v53, 0.0  ;;  %v1803_v48 = vmax.f32 %v1765_v43, 0.0 }
 0x267   :  { %v1459_v13 = vrot.slane %v1458_v20, 4  ;;  %v1466_v42 = vrot.slane %v1465_v35, 4 }
 0x268   :  { %v1844_v59 = vmax.f32 %v1842_v41, %v1843_v39  ;;  %v1851_v45 = vmax.f32 %v1849_v11, %v1850_v29  ;;  %v1333_v63 = vpop.f32.mrf.mxu2  ;;  %v1382_v49 = vpop.f32.mrf.mxu3 }
 0x269   :  { %v1460_v24 = vmax.f32 %v1458_v20, %v1459_v13  ;;  %v1467_v25 = vmax.f32 %v1465_v35, %v1466_v42  ;;  %v1334_v23 = vadd.f32 %v1333_v63, %v7412_v22  ;;  %v1383_v28 = vadd.f32 %v1382_v49, %v7418_v6 }
 0x26a   :  { %v1845_v9 = vrot.slane %v1844_v59, 1  ;;  %v1852_v47 = vrot.slane %v1851_v45, 1 }
 0x26b   :  { %v1461_v56 = vrot.slane %v1460_v24, 2  ;;  %v1468_v32 = vrot.slane %v1467_v25, 2  ;;  %v1717_v2 = vpop.f32.mrf.mxu0  ;;  %v1766_v34 = vpop.f32.mrf.mxu1  ;;  %v1420_v41 = vmax.f32 %v1334_v23, 0.0  ;;  %v1421_v11 = vmax.f32 %v1383_v28, 0.0 }
 0x26c   :  { %v1846_v61 = vmax.f32 %v1844_v59, %v1845_v9  ;;  %v1853_v38 = vmax.f32 %v1851_v45, %v1852_v47  ;;  %v1718_v4 = vadd.f32 %v1717_v2, %v7357_v57  ;;  %v1767_v7 = vadd.f32 %v1766_v34, %v7390_v52 }
 0x26d   :  { %v1462_v60 = vmax.f32 %v1460_v24, %v1461_v56  ;;  %v1469_v26 = vmax.f32 %v1467_v25, %v1468_v32 }
 0x26e   :  { %v1956_v36 = vsel %vm803_vm4, %v1846_v61, %v1832_v62  ;;  %v1963_v31 = vsel %vm803_vm4, %v1853_v38, %v1839_v46  ;;  %v1804_v14 = vmax.f32 %v1718_v4, 0.0  ;;  %v1805_v17 = vmax.f32 %v1767_v7, 0.0 }
 0x26f   :  { %v1463_v12 = vrot.slane %v1462_v60, 1  ;;  %v1470_v50 = vrot.slane %v1469_v26, 1 }
 0x270   :  { %v1854_v16 = vmax.f32 %v1802_v37, %v1804_v14  ;;  %v1861_v15 = vmax.f32 %v1803_v48, %v1805_v17  ;;  %v1335_v58 = vpop.f32.mrf.mxu2  ;;  %v1384_v3 = vpop.f32.mrf.mxu3 }
 0x271   :  { %v1464_v10 = vmax.f32 %v1462_v60, %v1463_v12  ;;  %v1471_v54 = vmax.f32 %v1469_v26, %v1470_v50  ;;  %v1336_v44 = vadd.f32 %v1335_v58, %v7412_v22  ;;  %v1385_v5 = vadd.f32 %v1384_v3, %v7418_v6 }
 0x272   :  { %v1855_v8 = vrot.slane %v1854_v16, 4  ;;  %v1862_v0 = vrot.slane %v1861_v15, 4 }
 0x273   :  { %v1574_v20 = vsel %vm803_vm4, %v1464_v10, %v1450_v18  ;;  %v1581_v35 = vsel %vm803_vm4, %v1471_v54, %v1457_v21  ;;  %v1422_v27 = vmax.f32 %v1336_v44, 0.0  ;;  %v1423_v30 = vmax.f32 %v1385_v5, 0.0  ;;  %v1720_v39 = vpop.f32.mrf.mxu0  ;;  %v1769_v29 = vpop.f32.mrf.mxu1 }
 0x274   :  { %v1856_v13 = vmax.f32 %v1854_v16, %v1855_v8  ;;  %v1863_v42 = vmax.f32 %v1861_v15, %v1862_v0  ;;  %v1721_v62 = vadd.f32 %v1720_v39, %v7357_v57  ;;  %v1770_v46 = vadd.f32 %v1769_v29, %v7390_v52 }
 0x275   :  { %v1472_v53 = vmax.f32 %v1420_v41, %v1422_v27  ;;  %v1479_v43 = vmax.f32 %v1421_v11, %v1423_v30 }
 0x276   :  { %v1857_v59 = vrot.slane %v1856_v13, 2  ;;  %v1864_v45 = vrot.slane %v1863_v42, 2  ;;  %v1806_v2 = vmax.f32 %v1721_v62, 0.0  ;;  %v1807_v34 = vmax.f32 %v1770_v46, 0.0  ;;  %v6499_v62 = vld [vmem:[#allocation11 + $0x4e4] sm:$0xf] }
 0x277   :  { %v1473_v63 = vrot.slane %v1472_v53, 4  ;;  %v1480_v49 = vrot.slane %v1479_v43, 4 }
 0x278   :  { %v1858_v24 = vmax.f32 %v1856_v13, %v1857_v59  ;;  %v1865_v25 = vmax.f32 %v1863_v42, %v1864_v45  ;;  %v1338_v51 = vpop.f32.mrf.mxu2  ;;  %v1387_v55 = vpop.f32.mrf.mxu3 }
 0x279   :  { %v1474_v9 = vmax.f32 %v1472_v53, %v1473_v63  ;;  %v1481_v47 = vmax.f32 %v1479_v43, %v1480_v49  ;;  %v1339_v14 = vadd.f32 %v1338_v51, %v7412_v22  ;;  %v1388_v17 = vadd.f32 %v1387_v55, %v7418_v6  ;;  %v5557_v53 = vld [vmem:[#allocation11 + $0x4e0] sm:$0xf]  ;;  %v6501_v43 = vld [vmem:[#allocation11 + $0x4ec] sm:$0xf0]  ;;  %v6531_v55 = vld [vmem:[#allocation11 + $0x5e4] sm:$0xf] }
 0x27a   :  { %v1859_v56 = vrot.slane %v1858_v24, 1  ;;  %v1866_v32 = vrot.slane %v1865_v25, 1  ;;  %v5685_v63 = vld [vmem:[#allocation11 + $0x5e0] sm:$0xf]  ;;  %v6533_v49 = vld [vmem:[#allocation11 + $0x5ec] sm:$0xf0] }
 0x27b   :  { %v1475_v37 = vrot.slane %v1474_v9, 2  ;;  %v1482_v48 = vrot.slane %v1481_v47, 2  ;;  %v1722_v61 = vpop.f32.mrf.mxu0  ;;  %v1771_v38 = vpop.f32.mrf.mxu1  ;;  %v1424_v8 = vmax.f32 %v1339_v14, 0.0  ;;  %v5686_v51 = vor.u32 %v6533_v49, %v5685_v63  ;;  %v6491_v49 = vld [vmem:[#allocation11 + $0x4a4] sm:$0xf] }
 0x27c   :  { %v1860_v4 = vmax.f32 %v1858_v24, %v1859_v56  ;;  %v1867_v7 = vmax.f32 %v1865_v25, %v1866_v32  ;;  %v1723_v60 = vadd.f32 %v1722_v61, %v7357_v57  ;;  %v1772_v26 = vadd.f32 %v1771_v38, %v7390_v52 }
 0x27d   :  { %v1476_v23 = vmax.f32 %v1474_v9, %v1475_v37  ;;  %v1483_v28 = vmax.f32 %v1481_v47, %v1482_v48  ;;  %v5558_v25 = vor.u32 %v6501_v43, %v5557_v53  ;;  %v5687_v9 = vld [vmem:[#allocation11 + $0x5f0] sm:$0xf0]  ;;  %3606 = vmatpush.bf16.msra.mxu3 %v5686_v51  ;;  %v5653_v53 = vld [vmem:[#allocation11 + $0x5a0] sm:$0xf]  ;;  %v6525_v43 = vld [vmem:[#allocation11 + $0x5ac] sm:$0xf0] }
 0x27e   :  { %v7518_v12 = vsel %vm805_vm5, %v1860_v4, %v1956_v36  ;;  %v7521_v50 = vsel %vm805_vm5, %v1867_v7, %v1963_v31  ;;  %v1808_v18 = vmax.f32 %v1723_v60, 0.0  ;;  %v1809_v21 = vmax.f32 %v1772_v26, 0.0  ;;  %v5669_v26 = vld [vmem:[#allocation11 + $0x5c0] sm:$0xf] }
 0x27f   :  { %v1477_v16 = vrot.slane %v1476_v23, 1  ;;  %v1484_v15 = vrot.slane %v1483_v28, 1  ;;  %v1425_v36 = vmax.f32 %v1388_v17, 0.0  ;;  %3593 = vmatpush.bf16.msra.mxu2 %v5558_v25  ;;  %v5690_v48 = vor.u32 %v6531_v55, %v5687_v9  ;;  %v5655_v55 = vld [vmem:[#allocation11 + $0x5b0] sm:$0xf0] }
 0x280   :  { %v1868_v58 = vmax.f32 %v1806_v2, %v1808_v18  ;;  %v1875_v3 = vmax.f32 %v1807_v34, %v1809_v21  ;;  %v1340_v10 = vpop.f32.mrf.mxu2  ;;  %v1389_v54 = vpop.f32.mrf.mxu3  ;;  %v5541_v2 = vld [vmem:[#allocation11 + $0x4c0] sm:$0xf]  ;;  %v6497_v34 = vld [vmem:[#allocation11 + $0x4cc] sm:$0xf0]  ;;  %v5543_v21 = vld [vmem:[#allocation11 + $0x4d0] sm:$0xf0] }
 0x281   :  { %v1478_v44 = vmax.f32 %v1476_v23, %v1477_v16  ;;  %v1485_v5 = vmax.f32 %v1483_v28, %v1484_v15  ;;  %v1341_v41 = vadd.f32 %v1340_v10, %v7412_v22  ;;  %v1390_v11 = vadd.f32 %v1389_v54, %v7418_v6  ;;  %v6529_v23 = vld [vmem:[#allocation11 + $0x5cc] sm:$0xf0]  ;;  %v6495_v28 = vld [vmem:[#allocation11 + $0x4c4] sm:$0xf]  ;;  %3710 = vmatpush.bf16.msra.mxu1 %v5690_v48  ;;  %v5671_v54 = vld [vmem:[#allocation11 + $0x5d0] sm:$0xf0] }
 0x282   :  { %v1869_v0 = vrot.slane %v1868_v58, 4  ;;  %v1876_v27 = vrot.slane %v1875_v3, 4  ;;  %v5542_v60 = vor.u32 %v6497_v34, %v5541_v2  ;;  %v6527_v10 = vld [vmem:[#allocation11 + $0x5c4] sm:$0xf] }
 0x283   :  { %v7526_v31 = vsel %vm805_vm5, %v1478_v44, %v1574_v20  ;;  %v7529_v30 = vsel %vm805_vm5, %v1485_v5, %v1581_v35  ;;  %v1426_v39 = vmax.f32 %v1341_v41, 0.0  ;;  %v1427_v29 = vmax.f32 %v1390_v11, 0.0  ;;  %v1725_v13 = vpop.f32.mrf.mxu0  ;;  %v1774_v42 = vpop.f32.mrf.mxu1  ;;  %v5559_v20 = vld [vmem:[#allocation11 + $0x4f0] sm:$0xf0] }
 0x284   :  { %v1870_v59 = vmax.f32 %v1868_v58, %v1869_v0  ;;  %v1877_v45 = vmax.f32 %v1875_v3, %v1876_v27  ;;  %v5562_v37 = vor.u32 %v6499_v62, %v5559_v20  ;;  %v1726_v18 = vadd.f32 %v1725_v13, %v7357_v57  ;;  %3594 = vmatpush.bf16.msra.mxu2 %v5542_v60  ;;  %v6493_v13 = vld [vmem:[#allocation11 + $0x4ac] sm:$0xf0]  ;;  %v5527_v62 = vld [vmem:[#allocation11 + $0x4b0] sm:$0xf0]  ;;  %v6487_v60 = vld [vmem:[#allocation11 + $0x484] sm:$0xf] }
 0x285   :  { %v1486_v46 = vmax.f32 %v1424_v8, %v1426_v39  ;;  %v1493_v24 = vmax.f32 %v1425_v36, %v1427_v29  ;;  %v5670_v58 = vor.u32 %v6529_v23, %v5669_v26  ;;  %v5546_v3 = vor.u32 %v6495_v28, %v5543_v21  ;;  %v5525_v36 = vld [vmem:[#allocation11 + $0x4a0] sm:$0xf]  ;;  %v5511_v28 = vld [vmem:[#allocation11 + $0x490] sm:$0xf0]  ;;  %v6519_v21 = vld [vmem:[#allocation11 + $0x584] sm:$0xf] }
 0x286   :  { %v1871_v35 = vrot.slane %v1870_v59, 2  ;;  %v1878_v47 = vrot.slane %v1877_v45, 2  ;;  %3697 = vmatpush.bf16.msra.mxu0 %v5562_v37  ;;  %v7537_v41 = vadd.f32 %v1774_v42, %v7390_v52  ;;  %v5674_v63 = vor.u32 %v6527_v10, %v5671_v54  ;;  %v6489_v37 = vld [vmem:[#allocation11 + $0x48c] sm:$0xf0] }
 0x287   :  { %v1487_v56 = vrot.slane %v1486_v46, 4  ;;  %v1494_v32 = vrot.slane %v1493_v24, 4  ;;  %3607 = vmatpush.bf16.msra.mxu3 %v5670_v58  ;;  %v5526_v42 = vor.u32 %v6493_v13, %v5525_v36  ;;  %v1810_v51 = vmax.f32 %v1726_v18, 0.0  ;;  %v6483_v36 = vld [vmem:[#allocation11 + $0x464] sm:$0xf] }
 0x288   :  { %v1872_v61 = vmax.f32 %v1870_v59, %v1871_v35  ;;  %v1879_v38 = vmax.f32 %v1877_v45, %v1878_v47  ;;  %v7531_v4 = vpop.f32.mrf.mxu2  ;;  %v7533_v7 = vpop.f32.mrf.mxu3  ;;  %3711 = vmatpush.bf16.msra.mxu1 %v5674_v63  ;;  %v5654_v47 = vor.u32 %v6525_v43, %v5653_v53  ;;  %v5514_v18 = vor.u32 %v6487_v60, %v5511_v28  ;;  %v5477_v63 = vld [vmem:[#allocation11 + $0x440] sm:$0xf]  ;;  %v6509_v28 = vld [vmem:[#allocation11 + $0x52c] sm:$0xf0] }
 0x289   :  { %v1488_v14 = vmax.f32 %v1486_v46, %v1487_v56  ;;  %v1495_v17 = vmax.f32 %v1493_v24, %v1494_v32  ;;  %v6523_v46 = vld [vmem:[#allocation11 + $0x5a4] sm:$0xf]  ;;  %3595 = vmatpush.bf16.msra.mxu2 %v5526_v42  ;;  %v5530_v56 = vor.u32 %v6491_v49, %v5527_v62  ;;  %v5509_v32 = vld [vmem:[#allocation11 + $0x480] sm:$0xf]  ;;  %v6481_v42 = vld [vmem:[#allocation11 + $0x44c] sm:$0xf0] }
 0x28a   :  { %v1873_v16 = vrot.slane %v1872_v61, 1  ;;  %v1880_v15 = vrot.slane %v1879_v38, 1  ;;  %3698 = vmatpush.bf16.msra.mxu0 %v5546_v3  ;;  %v5658_v34 = vor.u32 %v6523_v46, %v5655_v55  ;;  %v1811_v3 = vmax.f32 %v7537_v41, 0.0  ;;  %v6479_v55 = vld [vmem:[#allocation11 + $0x444] sm:$0xf] }
 0x28b   :  { %v1489_v44 = vrot.slane %v1488_v14, 2  ;;  %v1496_v5 = vrot.slane %v1495_v17, 2  ;;  %v1727_v11 = vpop.f32.mrf.mxu0  ;;  %v1776_v8 = vpop.f32.mrf.mxu1  ;;  %3608 = vmatpush.bf16.msra.mxu3 %v5654_v47  ;;  %v1344_v41 = vadd.f32 %v7531_v4, %v7412_v22  ;;  %v5605_v4 = vld [vmem:[#allocation11 + $0x540] sm:$0xf] }
 0x28c   :  { %v1874_v0 = vmax.f32 %v1872_v61, %v1873_v16  ;;  %v1881_v27 = vmax.f32 %v1879_v38, %v1880_v15  ;;  %v1728_v39 = vadd.f32 %v1727_v11, %v7357_v57  ;;  %v1777_v29 = vadd.f32 %v1776_v8, %v7390_v52  ;;  %v5637_v61 = vld [vmem:[#allocation11 + $0x580] sm:$0xf]  ;;  %v6521_v38 = vld [vmem:[#allocation11 + $0x58c] sm:$0xf0]  ;;  %v5639_v16 = vld [vmem:[#allocation11 + $0x590] sm:$0xf0]  ;;  %3712 = vmatpush.bf16.msra.mxu1 %v5658_v34 }
 0x28d   :  { %v1490_v59 = vmax.f32 %v1488_v14, %v1489_v44  ;;  %v1497_v45 = vmax.f32 %v1495_v17, %v1496_v5  ;;  %v5638_v17 = vor.u32 %v6521_v38, %v5637_v61  ;;  %v5493_v44 = vld [vmem:[#allocation11 + $0x460] sm:$0xf]  ;;  %v6485_v5 = vld [vmem:[#allocation11 + $0x46c] sm:$0xf0]  ;;  %v1393_v34 = vadd.f32 %v7533_v7, %v7418_v6 }
 0x28e   :  { %v7543_v24 = vsel %vm807_vm6, %v1874_v0, %v7518_v12  ;;  %v7547_v25 = vsel %vm807_vm6, %v1881_v27, %v7521_v50  ;;  %v1812_v20 = vmax.f32 %v1728_v39, 0.0  ;;  %v5510_v12 = vor.u32 %v6489_v37, %v5509_v32  ;;  %3699 = vmatpush.bf16.msra.mxu0 %v5530_v56  ;;  %v5621_v11 = vld [vmem:[#allocation11 + $0x560] sm:$0xf]  ;;  %v6517_v8 = vld [vmem:[#allocation11 + $0x56c] sm:$0xf0] }
 0x28f   :  { %v1491_v9 = vrot.slane %v1490_v59, 1  ;;  %v1498_v35 = vrot.slane %v1497_v45, 1  ;;  %v1813_v23 = vmax.f32 %v1777_v29, 0.0  ;;  %3609 = vmatpush.bf16.msra.mxu3 %v5638_v17  ;;  %v5494_v27 = vor.u32 %v6485_v5, %v5493_v44  ;;  %v5495_v39 = vld [vmem:[#allocation11 + $0x470] sm:$0xf0] }
 0x290   :  { %v1345_v48 = vpop.f32.mrf.mxu2  ;;  %v1394_v2 = vpop.f32.mrf.mxu3  ;;  %v1882_v14 = vmax.f32 %v1810_v51, %v1812_v20  ;;  %3596 = vmatpush.bf16.msra.mxu2 %v5510_v12  ;;  %v6515_v29 = vld [vmem:[#allocation11 + $0x564] sm:$0xf]  ;;  %v5478_v51 = vor.u32 %v6481_v42, %v5477_v63  ;;  %v6513_v20 = vld [vmem:[#allocation11 + $0x54c] sm:$0xf0]  ;;  %v5447_v63 = vld [vmem:[#allocation11 + $0x410] sm:$0xf0] }
 0x291   :  { %v1492_v50 = vmax.f32 %v1490_v59, %v1491_v9  ;;  %v1499_v26 = vmax.f32 %v1497_v45, %v1498_v35  ;;  %v1889_v0 = vmax.f32 %v1811_v3, %v1813_v23  ;;  %v1346_v53 = vadd.f32 %v1345_v48, %v7412_v22  ;;  %v5479_v35 = vld [vmem:[#allocation11 + $0x450] sm:$0xf0]  ;;  %v6511_v37 = vld [vmem:[#allocation11 + $0x544] sm:$0xf]  ;;  %v5589_v23 = vld [vmem:[#allocation11 + $0x520] sm:$0xf] }
 0x292   :  { %v1883_v13 = vrot.slane %v1882_v14, 4  ;;  %3700 = vmatpush.bf16.msra.mxu0 %v5514_v18  ;;  %v7564_v43 = vadd.f32 %v1394_v2, %v7418_v6  ;;  %v5622_v59 = vor.u32 %v6517_v8, %v5621_v11  ;;  %v5498_v45 = vor.u32 %v6483_v36, %v5495_v39  ;;  %v5607_v48 = vld [vmem:[#allocation11 + $0x550] sm:$0xf0]  ;;  %v6507_v3 = vld [vmem:[#allocation11 + $0x524] sm:$0xf] }
 0x293   :  { %v7551_v15 = vsel %vm807_vm6, %v1492_v50, %v7526_v31  ;;  %v7555_v58 = vsel %vm807_vm6, %v1499_v26, %v7529_v30  ;;  %v1730_v10 = vpop.f32.mrf.mxu0  ;;  %v7558_v54 = vpop.f32.mrf.mxu1  ;;  %v5642_v31 = vor.u32 %v6519_v21, %v5639_v16  ;;  %v5623_v30 = vld [vmem:[#allocation11 + $0x570] sm:$0xf0]  ;;  %v1890_v9 = vrot.slane %v1889_v0, 4  ;;  %v5461_v50 = vld [vmem:[#allocation11 + $0x420] sm:$0xf] }
 0x294   :  { %3597 = vmatpush.bf16.msra.mxu2 %v5494_v27  ;;  %v5626_v46 = vor.u32 %v6515_v29, %v5623_v30  ;;  %3610 = vmatpush.bf16.msra.mxu3 %v5622_v59  ;;  %v1884_v47 = vmax.f32 %v1882_v14, %v1883_v13  ;;  %v5606_v56 = vor.u32 %v6513_v20, %v5605_v4  ;;  %v1428_v2 = vmax.f32 %v1344_v41, 0.0  ;;  %v6477_v26 = vld [vmem:[#allocation11 + $0x42c] sm:$0xf0]  ;;  %v6475_v21 = vld [vmem:[#allocation11 + $0x424] sm:$0xf] }
 0x295   :  { %3713 = vmatpush.bf16.msra.mxu1 %v5642_v31  ;;  %v5482_v32 = vor.u32 %v6479_v55, %v5479_v35  ;;  %v1430_v12 = vmax.f32 %v1346_v53, 0.0  ;;  %v1431_v61 = vmax.f32 %v7564_v43, 0.0  ;;  %v1891_v14 = vmax.f32 %v1889_v0, %v1890_v9  ;;  %v5463_v16 = vld [vmem:[#allocation11 + $0x430] sm:$0xf0]  ;;  %v5445_v31 = vld [vmem:[#allocation11 + $0x400] sm:$0xf] }
 0x296   :  { %3701 = vmatpush.bf16.msra.mxu0 %v5498_v45  ;;  %v7578_v17 = vadd.f32 %v1730_v10, %v7357_v57  ;;  %v5610_v18 = vor.u32 %v6511_v37, %v5607_v48  ;;  %v5462_v7 = vor.u32 %v6477_v26, %v5461_v50  ;;  %v1885_v44 = vrot.slane %v1884_v47, 2  ;;  %v5591_v11 = vld [vmem:[#allocation11 + $0x530] sm:$0xf0]  ;;  %v6473_v27 = vld [vmem:[#allocation11 + $0x40c] sm:$0xf0] }
 0x297   :  { %v7582_v5 = vadd.f32 %v7558_v54, %v7390_v52  ;;  %v1429_v8 = vmax.f32 %v1393_v34, 0.0  ;;  %v1500_v36 = vmax.f32 %v1428_v2, %v1430_v12  ;;  %v5590_v0 = vor.u32 %v6509_v28, %v5589_v23  ;;  %v5573_v13 = vld [vmem:[#allocation11 + $0x500] sm:$0xf]  ;;  %v6505_v53 = vld [vmem:[#allocation11 + $0x50c] sm:$0xf0] }
 0x298   :  { %v7566_v49 = vpop.f32.mrf.mxu2  ;;  %v7568_v62 = vpop.f32.mrf.mxu3  ;;  %3598 = vmatpush.bf16.msra.mxu2 %v5478_v51  ;;  %3611 = vmatpush.bf16.msra.mxu3 %v5606_v56  ;;  %v5466_v10 = vor.u32 %v6475_v21, %v5463_v16  ;;  %v5594_v30 = vor.u32 %v6507_v3, %v5591_v11  ;;  %v5446_v41 = vor.u32 %v6473_v27, %v5445_v31  ;;  %v6471_v43 = vld [vmem:[#allocation11 + $0x404] sm:$0xf]  ;;  %v1892_v59 = vrot.slane %v1891_v14, 2  ;;  %v5575_v55 = vld [vmem:[#allocation11 + $0x510] sm:$0xf0] }
 0x299   :  { %3714 = vmatpush.bf16.msra.mxu1 %v5626_v46  ;;  %v7584_v54 = vmax.f32 %v1429_v8, %v1431_v61  ;;  %v1814_v45 = vmax.f32 %v7578_v17, 0.0  ;;  %v6503_v42 = vld [vmem:[#allocation11 + $0x504] sm:$0xf]  ;;  %v7587_v46 = vmax.f32 %v1884_v47, %v1885_v44  ;;  %v5574_v4 = vor.u32 %v6505_v53, %v5573_v13  ;;  %v5813_v9 = vld [vmem:[#allocation11 + $0x6e0] sm:$0xf] }
 0x29a   :  { %3702 = vmatpush.bf16.msra.mxu0 %v5482_v32  ;;  %v5450_v20 = vor.u32 %v6471_v43, %v5447_v63  ;;  %v6565_v35 = vld [vmem:[#allocation11 + $0x6ec] sm:$0xf0]  ;;  %v1501_v56 = vrot.slane %v1500_v36, 4  ;;  %v1815_v32 = vmax.f32 %v7582_v5, 0.0  ;;  %v5941_v2 = vld [vmem:[#allocation11 + $0x7e0] sm:$0xf]  ;;  %v1349_v47 = vadd.f32 %v7566_v49, %v7412_v22 }
 0x29b   :  { %v7573_v38 = vpop.f32.mrf.mxu0  ;;  %v7575_v60 = vpop.f32.mrf.mxu1  ;;  %v6597_v34 = vld [vmem:[#allocation11 + $0x7ec] sm:$0xf0]  ;;  %v5053_v61 = vld [vmem:[#allocation11 + $0xe8] sm:$0xf]  ;;  %v6374_v50 = vld [vmem:[#allocation11 + $0xf4] sm:$0xf0]  ;;  %v1398_v23 = vadd.f32 %v7568_v62, %v7418_v6  ;;  %v5578_v28 = vor.u32 %v6503_v42, %v5575_v55  ;;  %v7599_v44 = vmax.f32 %v1891_v14, %v1892_v59 }
 0x29c   :  { %3599 = vmatpush.bf16.msra.mxu2 %v5462_v7  ;;  %3612 = vmatpush.bf16.msra.mxu3 %v5590_v0  ;;  %v5181_v26 = vld [vmem:[#allocation11 + $0x1e8] sm:$0xf]  ;;  %v6406_v7 = vld [vmem:[#allocation11 + $0x1f4] sm:$0xf0]  ;;  %v5797_v21 = vld [vmem:[#allocation11 + $0x6c0] sm:$0xf]  ;;  %v7602_v8 = vmax.f32 %v1500_v36, %v1501_v56  ;;  %v5942_v0 = vor.u32 %v6597_v34, %v5941_v2  ;;  %v5054_v62 = vor.u32 %v6374_v50, %v5053_v61 }
 0x29d   :  { %3715 = vmatpush.bf16.msra.mxu1 %v5610_v18  ;;  %v5814_v18 = vor.u32 %v6565_v35, %v5813_v9  ;;  %v6561_v16 = vld [vmem:[#allocation11 + $0x6cc] sm:$0xf0]  ;;  %v1887_v3 = vrot.slane %v7587_v46, 1  ;;  %v1508_v49 = vrot.slane %v7584_v54, 4  ;;  %v5037_v27 = vld [vmem:[#allocation11 + $0xc8] sm:$0xf]  ;;  %v5182_v13 = vor.u32 %v6406_v7, %v5181_v26 }
 0x29e   :  { %3703 = vmatpush.bf16.msra.mxu0 %v5466_v10  ;;  %v5925_v10 = vld [vmem:[#allocation11 + $0x7c0] sm:$0xf]  ;;  %v6593_v31 = vld [vmem:[#allocation11 + $0x7cc] sm:$0xf0]  ;;  %v5798_v14 = vor.u32 %v6561_v16, %v5797_v21  ;;  %v6370_v53 = vld [vmem:[#allocation11 + $0xd4] sm:$0xf0]  ;;  %v7606_v59 = vadd.f32 %v7573_v38, %v7357_v57  ;;  %v7610_v36 = vadd.f32 %v7575_v60, %v7390_v52 }
 0x29f   :  { %v1433_v43 = vmax.f32 %v1398_v23, 0.0  ;;  %v5165_v42 = vld [vmem:[#allocation11 + $0x1c8] sm:$0xf]  ;;  %v6402_v55 = vld [vmem:[#allocation11 + $0x1d4] sm:$0xf0]  ;;  %v1894_v38 = vrot.slane %v7599_v44, 1 }
 0x2a0   :  { %v1350_v39 = vpop.f32.mrf.mxu2  ;;  %v1399_v29 = vpop.f32.mrf.mxu3  ;;  %3600 = vmatpush.bf16.msra.mxu2 %v5446_v41  ;;  %3613 = vmatpush.bf16.msra.mxu3 %v5574_v4  ;;  %v5926_v4 = vor.u32 %v6593_v31, %v5925_v10  ;;  %v5781_v9 = vld [vmem:[#allocation11 + $0x6a0] sm:$0xf]  ;;  %v6557_v35 = vld [vmem:[#allocation11 + $0x6ac] sm:$0xf0]  ;;  %v1503_v56 = vrot.slane %v7602_v8, 2 }
 0x2a1   :  { %v1351_v51 = vadd.f32 %v1350_v39, %v7412_v22  ;;  %3716 = vmatpush.bf16.msra.mxu1 %v5594_v30  ;;  %v1400_v12 = vadd.f32 %v1399_v29, %v7418_v6  ;;  %v1432_v39 = vmax.f32 %v1349_v47, 0.0  ;;  %v6589_v34 = vld [vmem:[#allocation11 + $0x7ac] sm:$0xf0]  ;;  %v5021_v61 = vld [vmem:[#allocation11 + $0xa8] sm:$0xf]  ;;  %v5782_v7 = vor.u32 %v6557_v35, %v5781_v9 }
 0x2a2   :  { %3704 = vmatpush.bf16.msra.mxu0 %v5450_v20  ;;  %v5038_v20 = vor.u32 %v6370_v53, %v5037_v27  ;;  %v6366_v50 = vld [vmem:[#allocation11 + $0xb4] sm:$0xf0]  ;;  %v5149_v26 = vld [vmem:[#allocation11 + $0x1a8] sm:$0xf]  ;;  %v5765_v16 = vld [vmem:[#allocation11 + $0x680] sm:$0xf] }
 0x2a3   :  { %v1735_v37 = vpop.f32.mrf.mxu0  ;;  %v7591_v48 = vpop.f32.mrf.mxu1  ;;  %v1434_v11 = vmax.f32 %v1351_v51, 0.0  ;;  %v1435_v29 = vmax.f32 %v1400_v12, 0.0  ;;  %v6398_v21 = vld [vmem:[#allocation11 + $0x1b4] sm:$0xf0]  ;;  %v5893_v27 = vld [vmem:[#allocation11 + $0x780] sm:$0xf] }
 0x2a4   :  { %3619 = vmatpush.bf16.msrb.mxu2 %v5814_v18  ;;  %v7613_v63 = vadd.f32 %v1735_v37, %v7357_v57  ;;  %3632 = vmatpush.bf16.msrb.mxu3 %v5942_v0  ;;  %v5909_v37 = vld [vmem:[#allocation11 + $0x7a0] sm:$0xf]  ;;  %v5166_v18 = vor.u32 %v6402_v55, %v5165_v42  ;;  %v1816_v0 = vmax.f32 %v7606_v59, 0.0  ;;  %v5150_v59 = vor.u32 %v6398_v21, %v5149_v26  ;;  %v5133_v9 = vld [vmem:[#allocation11 + $0x188] sm:$0xf] }
 0x2a5   :  { %3717 = vmatpush.bf16.msra.mxu1 %v5578_v28  ;;  %v7615_v51 = vmax.f32 %v1432_v39, %v1434_v11  ;;  %v1521_v47 = vmax.f32 %v1433_v43, %v1435_v29  ;;  %v6553_v11 = vld [vmem:[#allocation11 + $0x68c] sm:$0xf0]  ;;  %v5910_v39 = vor.u32 %v6589_v34, %v5909_v37  ;;  %v5022_v29 = vor.u32 %v6366_v50, %v5021_v61  ;;  %v6394_v37 = vld [vmem:[#allocation11 + $0x194] sm:$0xf0]  ;;  %v5749_v34 = vld [vmem:[#allocation11 + $0x660] sm:$0xf] }
 0x2a6   :  { %3749 = vmatpush.bf16.msrb.mxu0 %v5054_v62  ;;  %v1817_v62 = vmax.f32 %v7610_v36, 0.0  ;;  %v1818_v31 = vmax.f32 %v7613_v63, 0.0  ;;  %v6549_v61 = vld [vmem:[#allocation11 + $0x66c] sm:$0xf0]  ;;  %v7640_v50 = vmax.f32 %v1814_v45, %v1816_v0  ;;  %v7653_v17 = vadd.f32 %v7591_v48, %v7390_v52  ;;  %v4989_v45 = vld [vmem:[#allocation11 + $0x68] sm:$0xf] }
 0x2a7   :  { %v1515_v10 = vrot.slane %v7615_v51, 4  ;;  %v6581_v21 = vld [vmem:[#allocation11 + $0x76c] sm:$0xf0]  ;;  %v5117_v0 = vld [vmem:[#allocation11 + $0x168] sm:$0xf] }
 0x2a8   :  { %v1353_v30 = vpop.f32.mrf.mxu2  ;;  %v1402_v41 = vpop.f32.mrf.mxu3  ;;  %3620 = vmatpush.bf16.msrb.mxu2 %v5798_v14  ;;  %3633 = vmatpush.bf16.msrb.mxu3 %v5926_v4  ;;  %v1522_v14 = vrot.slane %v1521_v47, 4  ;;  %v5766_v4 = vor.u32 %v6553_v11, %v5765_v16  ;;  %v7644_v16 = vmax.f32 %v1815_v32, %v1817_v62  ;;  %v6390_v5 = vld [vmem:[#allocation11 + $0x174] sm:$0xf0]  ;;  %v5733_v32 = vld [vmem:[#allocation11 + $0x640] sm:$0xf] }
 0x2a9   :  { %3762 = vmatpush.bf16.msrb.mxu1 %v5182_v13  ;;  %v1354_v12 = vadd.f32 %v1353_v30, %v7412_v22  ;;  %v1403_v23 = vadd.f32 %v1402_v41, %v7418_v6  ;;  %v6585_v30 = vld [vmem:[#allocation11 + $0x78c] sm:$0xf0]  ;;  %v5005_v41 = vld [vmem:[#allocation11 + $0x88] sm:$0xf]  ;;  %v6362_v13 = vld [vmem:[#allocation11 + $0x94] sm:$0xf0]  ;;  %v7647_v11 = vmax.f32 %v7615_v51, %v1515_v10 }
 0x2aa   :  { %3750 = vmatpush.bf16.msrb.mxu0 %v5038_v20  ;;  %v5894_v35 = vor.u32 %v6585_v30, %v5893_v27  ;;  %v5750_v30 = vor.u32 %v6549_v61, %v5749_v34  ;;  %v6545_v62 = vld [vmem:[#allocation11 + $0x64c] sm:$0xf0]  ;;  %v5861_v10 = vld [vmem:[#allocation11 + $0x740] sm:$0xf]  ;;  %v5101_v34 = vld [vmem:[#allocation11 + $0x148] sm:$0xf] }
 0x2ab   :  { %v1737_v60 = vpop.f32.mrf.mxu0  ;;  %v7619_v2 = vpop.f32.mrf.mxu1  ;;  %v1436_v53 = vmax.f32 %v1354_v12, 0.0  ;;  %v1437_v36 = vmax.f32 %v1403_v23, 0.0  ;;  %v7636_v12 = vmax.f32 %v7584_v54, %v1508_v49  ;;  %v7649_v54 = vmax.f32 %v1521_v47, %v1522_v14  ;;  %v6358_v49 = vld [vmem:[#allocation11 + $0x74] sm:$0xf0] }
 0x2ac   :  { %v7624_v28 = vadd.f32 %v1737_v60, %v7357_v57  ;;  %3621 = vmatpush.bf16.msrb.mxu2 %v5782_v7  ;;  %3634 = vmatpush.bf16.msrb.mxu3 %v5910_v39  ;;  %v5006_v60 = vor.u32 %v6362_v13, %v5005_v41  ;;  %v5877_v7 = vld [vmem:[#allocation11 + $0x760] sm:$0xf]  ;;  %v7659_v51 = vadd.f32 %v7619_v2, %v7390_v52  ;;  %v6577_v13 = vld [vmem:[#allocation11 + $0x74c] sm:$0xf0] }
 0x2ad   :  { %3763 = vmatpush.bf16.msrb.mxu1 %v5166_v18  ;;  %v1510_v2 = vrot.slane %v7636_v12, 2 }
 0x2ae   :  { %v1820_v55 = vmax.f32 %v7624_v28, 0.0  ;;  %3751 = vmatpush.bf16.msrb.mxu0 %v5022_v29  ;;  %v5134_v29 = vor.u32 %v6394_v37, %v5133_v9  ;;  %v1904_v9 = vrot.slane %v7644_v16, 4  ;;  %v1819_v37 = vmax.f32 %v7653_v17, 0.0 }
 0x2b0   :  { %v1355_v43 = vpop.f32.mrf.mxu2  ;;  %v1404_v42 = vpop.f32.mrf.mxu3  ;;  %3622 = vmatpush.bf16.msrb.mxu2 %v5766_v4  ;;  %3635 = vmatpush.bf16.msrb.mxu3 %v5894_v35  ;;  %v7655_v41 = vmax.f32 %v1818_v31, %v1820_v55  ;;  %v4990_v31 = vor.u32 %v6358_v49, %v4989_v45  ;;  %v1897_v4 = vrot.slane %v7640_v50, 4  ;;  %v1517_v35 = vrot.slane %v7647_v11, 2 }
 0x2b1   :  { %v1356_v63 = vadd.f32 %v1355_v43, %v7412_v22  ;;  %v1405_v20 = vadd.f32 %v1404_v42, %v7418_v6  ;;  %3764 = vmatpush.bf16.msrb.mxu1 %v5150_v59  ;;  %v5878_v43 = vor.u32 %v6581_v21, %v5877_v7  ;;  %v4973_v42 = vld [vmem:[#allocation11 + $0x48] sm:$0xf]  ;;  %v6354_v59 = vld [vmem:[#allocation11 + $0x54] sm:$0xf0]  ;;  %v5717_v7 = vld [vmem:[#allocation11 + $0x620] sm:$0xf] }
 0x2b2   :  { %3752 = vmatpush.bf16.msrb.mxu0 %v5006_v60  ;;  %v1524_v60 = vrot.slane %v7649_v54, 2  ;;  %v6541_v21 = vld [vmem:[#allocation11 + $0x62c] sm:$0xf0]  ;;  %v1911_v45 = vrot.slane %v7655_v41, 4  ;;  %v1821_v49 = vmax.f32 %v7659_v51, 0.0 }
 0x2b3   :  { %v1438_v26 = vmax.f32 %v1356_v63, 0.0  ;;  %v1439_v23 = vmax.f32 %v1405_v20, 0.0  ;;  %v1740_v28 = vpop.f32.mrf.mxu0  ;;  %v1789_v18 = vpop.f32.mrf.mxu1  ;;  %v5118_v63 = vor.u32 %v6390_v5, %v5117_v0  ;;  %v5734_v20 = vor.u32 %v6545_v62, %v5733_v32  ;;  %v6573_v5 = vld [vmem:[#allocation11 + $0x72c] sm:$0xf0]  ;;  %v4957_v32 = vld [vmem:[#allocation11 + $0x28] sm:$0xf] }
 0x2b4   :  { %v7662_v48 = vadd.f32 %v1740_v28, %v7357_v57  ;;  %v7665_v47 = vadd.f32 %v1789_v18, %v7390_v52  ;;  %3623 = vmatpush.bf16.msrb.mxu2 %v5750_v30  ;;  %3636 = vmatpush.bf16.msrb.mxu3 %v5878_v43  ;;  %v4974_v28 = vor.u32 %v6354_v59, %v4973_v42  ;;  %v6386_v18 = vld [vmem:[#allocation11 + $0x154] sm:$0xf0]  ;;  %v6537_v42 = vld [vmem:[#allocation11 + $0x60c] sm:$0xf0] }
 0x2b5   :  { %v1528_v27 = vmax.f32 %v1436_v53, %v1438_v26  ;;  %v1535_v39 = vmax.f32 %v1437_v36, %v1439_v23  ;;  %3765 = vmatpush.bf16.msrb.mxu1 %v5134_v29  ;;  %v5862_v23 = vor.u32 %v6577_v13, %v5861_v10  ;;  %v6350_v62 = vld [vmem:[#allocation11 + $0x34] sm:$0xf0]  ;;  %v5085_v13 = vld [vmem:[#allocation11 + $0x128] sm:$0xf] }
 0x2b6   :  { %3753 = vmatpush.bf16.msrb.mxu0 %v4990_v31  ;;  %v1822_v0 = vmax.f32 %v7662_v48, 0.0  ;;  %v1823_v17 = vmax.f32 %v7665_v47, 0.0  ;;  %v5102_v48 = vor.u32 %v6386_v18, %v5101_v34  ;;  %v5718_v47 = vor.u32 %v6541_v21, %v5717_v7  ;;  %v4941_v34 = vld [vmem:[#allocation11 + $0x8] sm:$0xf]  ;;  %v6346_v21 = vld [vmem:[#allocation11 + $0x14] sm:$0xf0] }
 0x2b7   :  { %v1529_v14 = vrot.slane %v1528_v27, 4  ;;  %v1536_v53 = vrot.slane %v1535_v39, 4  ;;  %v4958_v59 = vor.u32 %v6350_v62, %v4957_v32  ;;  %v1905_v18 = vmax.f32 %v7644_v16, %v1904_v9 }
 0x2b8   :  { %v1358_v36 = vpop.f32.mrf.mxu2  ;;  %v1407_v55 = vpop.f32.mrf.mxu3  ;;  %3624 = vmatpush.bf16.msrb.mxu2 %v5734_v20  ;;  %3637 = vmatpush.bf16.msrb.mxu3 %v5862_v23  ;;  %v6569_v20 = vld [vmem:[#allocation11 + $0x70c] sm:$0xf0]  ;;  %v1898_v23 = vmax.f32 %v7640_v50, %v1897_v4 }
 0x2b9   :  { %v7673_v61 = vmax.f32 %v1528_v27, %v1529_v14  ;;  %v7675_v26 = vmax.f32 %v1535_v39, %v1536_v53  ;;  %3766 = vmatpush.bf16.msrb.mxu1 %v5118_v63  ;;  %v5845_v27 = vld [vmem:[#allocation11 + $0x720] sm:$0xf]  ;;  %v7684_v39 = vmax.f32 %v7602_v8, %v1503_v56  ;;  %v6382_v14 = vld [vmem:[#allocation11 + $0x134] sm:$0xf0]  ;;  %v1359_v31 = vadd.f32 %v1358_v36, %v7412_v22 }
 0x2ba   :  { %v1408_v8 = vadd.f32 %v1407_v55, %v7418_v6  ;;  %3754 = vmatpush.bf16.msrb.mxu0 %v4974_v28  ;;  %v5701_v56 = vld [vmem:[#allocation11 + $0x600] sm:$0xf]  ;;  %v1917_v36 = vmax.f32 %v1819_v37, %v1821_v49  ;;  %v5086_v28 = vor.u32 %v6382_v14, %v5085_v13  ;;  %v4942_v37 = vor.u32 %v6346_v21, %v4941_v34 }
 0x2bb   :  { %v1742_v29 = vpop.f32.mrf.mxu0  ;;  %v1791_v30 = vpop.f32.mrf.mxu1  ;;  %v1531_v53 = vrot.slane %v7673_v61, 2  ;;  %v1538_v43 = vrot.slane %v7675_v26, 2  ;;  %v5829_v63 = vld [vmem:[#allocation11 + $0x700] sm:$0xf]  ;;  %v5702_v50 = vor.u32 %v6537_v42, %v5701_v56  ;;  %v1899_v62 = vrot.slane %v1898_v23, 2 }
 0x2bc   :  { %v1743_v10 = vadd.f32 %v1742_v29, %v7357_v57  ;;  %v1792_v51 = vadd.f32 %v1791_v30, %v7390_v52  ;;  %v7693_v57 = vmax.f32 %v7636_v12, %v1510_v2  ;;  %3625 = vmatpush.bf16.msrb.mxu2 %v5718_v47  ;;  %v5846_v52 = vor.u32 %v6573_v5, %v5845_v27  ;;  %v5069_v29 = vld [vmem:[#allocation11 + $0x108] sm:$0xf]  ;;  %v6378_v30 = vld [vmem:[#allocation11 + $0x114] sm:$0xf0] }
 0x2bd   :  { %3767 = vmatpush.bf16.msrb.mxu1 %v5102_v48  ;;  %v1440_v5 = vmax.f32 %v1359_v31, 0.0  ;;  %v1441_v32 = vmax.f32 %v1408_v8, 0.0  ;;  %v5830_v4 = vor.u32 %v6569_v20, %v5829_v63  ;;  %v5070_v49 = vor.u32 %v6378_v30, %v5069_v29 }
 0x2be   :  { %v1824_v12 = vmax.f32 %v1743_v10, 0.0  ;;  %v1825_v2 = vmax.f32 %v1792_v51, 0.0  ;;  %3638 = vmatpush.bf16.msrb.mxu3 %v5846_v52  ;;  %3755 = vmatpush.bf16.msrb.mxu0 %v4958_v59  ;;  %v1518_v10 = vmax.f32 %v7647_v11, %v1517_v35  ;;  %v1906_v31 = vrot.slane %v1905_v18, 2 }
 0x2bf   :  { %v1918_v8 = vrot.slane %v1917_v36, 4  ;;  %v1532_v56 = vmax.f32 %v7673_v61, %v1531_v53  ;;  %v1539_v42 = vmax.f32 %v7675_v26, %v1538_v43  ;;  %v1505_v11 = vrot.slane %v7684_v39, 1 }
 0x2c0   :  { %v1360_v7 = vpop.f32.mrf.mxu2  ;;  %v1409_v55 = vpop.f32.mrf.mxu3  ;;  %3626 = vmatpush.bf16.msrb.mxu2 %v5702_v50  ;;  %v1924_v51 = vmax.f32 %v1822_v0, %v1824_v12  ;;  %v1931_v47 = vmax.f32 %v1823_v17, %v1825_v2  ;;  %v1512_v35 = vrot.slane %v7693_v57, 1  ;;  %v7712_v61 = vmax.f32 %v1905_v18, %v1906_v31  ;;  %v5565_v31 = vld [vmem:[#allocation11 + $0x4e8] sm:$0xf] }
 0x2c1   :  { %v1361_v48 = vadd.f32 %v1360_v7, %v7412_v22  ;;  %v1410_v27 = vadd.f32 %v1409_v55, %v7418_v6  ;;  %3768 = vmatpush.bf16.msrb.mxu1 %v5086_v28  ;;  %v1525_v22 = vmax.f32 %v7649_v54, %v1524_v60  ;;  %v1912_v6 = vmax.f32 %v7655_v41, %v1911_v45 }
 0x2c2   :  { %3639 = vmatpush.bf16.msrb.mxu3 %v5830_v4  ;;  %3756 = vmatpush.bf16.msrb.mxu0 %v4942_v37  ;;  %v7710_v41 = vmax.f32 %v1898_v23, %v1899_v62  ;;  %v1519_v45 = vrot.slane %v1518_v10, 1  ;;  %v1925_v52 = vrot.slane %v1924_v51, 4  ;;  %v1932_v59 = vrot.slane %v1931_v47, 4  ;;  %v5303_v37 = vld [vmem:[#allocation11 + $0x2f0] sm:$0xf0] }
 0x2c3   :  { %v1442_v16 = vmax.f32 %v1361_v48, 0.0  ;;  %v1443_v9 = vmax.f32 %v1410_v27, 0.0  ;;  %v1526_v0 = vrot.slane %v1525_v22, 1  ;;  %v1913_v17 = vrot.slane %v1912_v6, 2  ;;  %v7719_v27 = vld [vmem:[#allocation12] sm:$0xf] }
 0x2c4   :  { %v1919_v26 = vmax.f32 %v1917_v36, %v1918_v8  ;;  %v1533_v53 = vrot.slane %v1532_v56, 1  ;;  %v1540_v43 = vrot.slane %v1539_v42, 1  ;;  %v1506_v34 = vmax.f32 %v7684_v39, %v1505_v11  ;;  %v5693_v11 = vld [vmem:[#allocation11 + $0x5e8] sm:$0xf] }
 0x2c5   :  { %v1542_v13 = vmax.f32 %v1440_v5, %v1442_v16  ;;  %v1549_v14 = vmax.f32 %v1441_v32, %v1443_v9  ;;  %3769 = vmatpush.bf16.msrb.mxu1 %v5070_v49  ;;  %v1513_v7 = vmax.f32 %v7693_v57, %v1512_v35  ;;  %v1901_v23 = vrot.slane %v7710_v41, 1  ;;  %v6435_v9 = vld [vmem:[#allocation11 + $0x2e4] sm:$0xf]  ;;  %v6534_v35 = vld [vmem:[#allocation11 + $0x5f4] sm:$0xf0] }
 0x2c6   :  { %v1520_v21 = vmax.f32 %v1518_v10, %v1519_v45  ;;  %v1527_v29 = vmax.f32 %v1525_v22, %v1526_v0  ;;  %v7717_v30 = vmax.f32 %v1912_v6, %v1913_v17  ;;  %v1926_v12 = vmax.f32 %v1924_v51, %v1925_v52  ;;  %v6467_v6 = vld [vmem:[#allocation11 + $0x3e4] sm:$0xf]  ;;  %v5431_v51 = vld [vmem:[#allocation11 + $0x3f0] sm:$0xf0] }
 0x2c7   :  { %v1543_v54 = vrot.slane %v1542_v13, 4  ;;  %v1550_v60 = vrot.slane %v1549_v14, 4  ;;  %v1933_v2 = vmax.f32 %v1931_v47, %v1932_v59  ;;  %v1908_v36 = vrot.slane %v7712_v61, 1  ;;  %v6431_v17 = vld [vmem:[#allocation11 + $0x2c4] sm:$0xf] }
 0x2c8   :  { %v1920_v5 = vrot.slane %v1919_v26, 2  ;;  %v1534_v39 = vmax.f32 %v1532_v56, %v1533_v53  ;;  %v1541_v32 = vmax.f32 %v1539_v42, %v1540_v43  ;;  %v1577_v57 = vsel %vm809_vm7, %v1506_v34, %v7551_v15  ;;  %v6502_v42 = vld [vmem:[#allocation11 + $0x4f4] sm:$0xf0] }
 0x2c9   :  { %v1544_v63 = vmax.f32 %v1542_v13, %v1543_v54  ;;  %v1551_v20 = vmax.f32 %v1549_v14, %v1550_v60  ;;  %v1584_v50 = vsel %vm809_vm7, %v1513_v7, %v7555_v58  ;;  %v1578_v49 = vsel %vm811_vm8, %v1520_v21, %v1577_v57  ;;  %v5549_v21 = vld [vmem:[#allocation11 + $0x4c8] sm:$0xf] }
 0x2ca   :  { %v1585_v62 = vsel %vm811_vm8, %v1527_v29, %v1584_v50  ;;  %v1915_v10 = vrot.slane %v7717_v30, 1  ;;  %v2254_v22 = vperm.slane %v7719_v27, 1  ;;  %v1927_v47 = vrot.slane %v1926_v12, 2  ;;  %v6498_v29 = vld [vmem:[#allocation11 + $0x4d4] sm:$0xf0] }
 0x2cb   :  { %v1545_v55 = vrot.slane %v1544_v63, 2  ;;  %v1552_v28 = vrot.slane %v1551_v20, 2  ;;  %v1934_v13 = vrot.slane %v1933_v2, 2  ;;  %v7730_v58 = vmax.f32 %v1919_v26, %v1920_v5  ;;  %v5415_v26 = vld [vmem:[#allocation11 + $0x3d0] sm:$0xf0] }
 0x2cc   :  { %v1579_v8 = vsel %vm813_vm9, %v1534_v39, %v1578_v49  ;;  %v1586_v56 = vsel %vm813_vm9, %v1541_v32, %v1585_v62  ;;  %v5306_v45 = vor.u32 %v6435_v9, %v5303_v37  ;;  %v5434_v0 = vor.u32 %v6467_v6, %v5431_v51  ;;  %v5677_v5 = vld [vmem:[#allocation11 + $0x5c8] sm:$0xf]  ;;  %v6530_v39 = vld [vmem:[#allocation11 + $0x5d4] sm:$0xf0]  ;;  %v6427_v32 = vld [vmem:[#allocation11 + $0x2a4] sm:$0xf] }
 0x2cd   :  { %v1546_v48 = vmax.f32 %v1544_v63, %v1545_v55  ;;  %v1553_v18 = vmax.f32 %v1551_v20, %v1552_v28  ;;  %v5287_v63 = vld [vmem:[#allocation11 + $0x2d0] sm:$0xf0]  ;;  %v6463_v20 = vld [vmem:[#allocation11 + $0x3c4] sm:$0xf]  ;;  %v1928_v53 = vmax.f32 %v1926_v12, %v1927_v47  ;;  %v1935_v43 = vmax.f32 %v1933_v2, %v1934_v13  ;;  %v6494_v37 = vld [vmem:[#allocation11 + $0x4b4] sm:$0xf0] }
 0x2ce   :  { %v5566_v55 = vor.u32 %v6502_v42, %v5565_v31  ;;  %v5694_v28 = vor.u32 %v6534_v35, %v5693_v11  ;;  %v1922_v12 = vrot.slane %v7730_v58, 1  ;;  %v2253_v2 = vperm.slane %v7719_v27, 0  ;;  %v5661_v27 = vld [vmem:[#allocation11 + $0x5a8] sm:$0xf]  ;;  %v6526_v51 = vld [vmem:[#allocation11 + $0x5b4] sm:$0xf0] }
 0x2cf   :  { %v1547_v4 = vrot.slane %v1546_v48, 1  ;;  %v1554_v16 = vrot.slane %v1553_v18, 1  ;;  %v5290_v57 = vor.u32 %v6431_v17, %v5287_v63  ;;  %v5418_v50 = vor.u32 %v6463_v20, %v5415_v26  ;;  %v5517_v63 = vld [vmem:[#allocation11 + $0x488] sm:$0xf]  ;;  %v6490_v20 = vld [vmem:[#allocation11 + $0x494] sm:$0xf0] }
 0x2d0   :  { %v1929_v49 = vrot.slane %v1928_v53, 1  ;;  %v1936_v62 = vrot.slane %v1935_v43, 1  ;;  %v5678_v6 = vor.u32 %v6530_v39, %v5677_v5  ;;  %v1895_v13 = vmax.f32 %v7599_v44, %v1894_v38  ;;  %v6522_v26 = vld [vmem:[#allocation11 + $0x594] sm:$0xf0] }
 0x2d1   :  { %v1548_v15 = vmax.f32 %v1546_v48, %v1547_v4  ;;  %v1555_v14 = vmax.f32 %v1553_v18, %v1554_v16  ;;  %v1888_v48 = vmax.f32 %v7587_v46, %v1887_v3  ;;  %v5271_v4 = vld [vmem:[#allocation11 + $0x2b0] sm:$0xf0]  ;;  %v6459_v16 = vld [vmem:[#allocation11 + $0x3a4] sm:$0xf]  ;;  %v5533_v3 = vld [vmem:[#allocation11 + $0x4a8] sm:$0xf]  ;;  %v1916_v44 = vmax.f32 %v7717_v30, %v1915_v10 }
 0x2d2   :  { %v5399_v46 = vld [vmem:[#allocation11 + $0x3b0] sm:$0xf0]  ;;  %v5274_v42 = vor.u32 %v6427_v32, %v5271_v4  ;;  %v1923_v38 = vmax.f32 %v7730_v58, %v1922_v12  ;;  %v5534_v35 = vor.u32 %v6494_v37, %v5533_v3  ;;  %v1966_v30 = vsel %vm809_vm7, %v1895_v13, %v7547_v25  ;;  %v5645_v58 = vld [vmem:[#allocation11 + $0x588] sm:$0xf]  ;;  %v6518_v4 = vld [vmem:[#allocation11 + $0x574] sm:$0xf0] }
 0x2d3   :  { %v1580_v54 = vsel %vm815_vm10, %v1548_v15, %v1579_v8  ;;  %v1587_v60 = vsel %vm815_vm10, %v1555_v14, %v1586_v56  ;;  %v1959_v47 = vsel %vm809_vm7, %v1888_v48, %v7543_v24  ;;  %v1902_v15 = vmax.f32 %v7710_v41, %v1901_v23  ;;  %v6423_v24 = vld [vmem:[#allocation11 + $0x284] sm:$0xf]  ;;  %v5255_v23 = vld [vmem:[#allocation11 + $0x290] sm:$0xf0]  ;;  %v5501_v32 = vld [vmem:[#allocation11 + $0x468] sm:$0xf] }
 0x2d4   :  { %v7736_v52 = vpack.c.bf16 %v1580_v54, %v1580_v54  ;;  %v7738_v59 = vpack.c.bf16 %v1587_v60, %v1587_v60  ;;  %v3654_v34 = vpop.f32.mrf.mxu0  ;;  %v3667_v7 = vpop.f32.mrf.mxu1  ;;  %v1909_v14 = vmax.f32 %v7712_v61, %v1908_v36  ;;  %v5402_v11 = vor.u32 %v6459_v16, %v5399_v46  ;;  %v6455_v54 = vld [vmem:[#allocation11 + $0x384] sm:$0xf]  ;;  %v5383_v60 = vld [vmem:[#allocation11 + $0x390] sm:$0xf0]  ;;  %v6482_v13 = vld [vmem:[#allocation11 + $0x454] sm:$0xf0] }
 0x2d5   :  { %v3655_v18 = vadd.f32 %v3654_v34, %v2254_v22  ;;  %v5550_v22 = vor.u32 %v6498_v29, %v5549_v21  ;;  %v5662_v41 = vor.u32 %v6526_v51, %v5661_v27  ;;  %v1930_v61 = vmax.f32 %v1928_v53, %v1929_v49  ;;  %v5239_v29 = vld [vmem:[#allocation11 + $0x270] sm:$0xf0]  ;;  %v6451_v48 = vld [vmem:[#allocation11 + $0x364] sm:$0xf] }
 0x2d6   :  { %3601 = vmatmul.bf16.vlgmr.msra.gmra.mxu2 %v7736_v52  ;;  %3614 = vmatmul.bf16.vlgmr.msra.gmra.mxu3 %v7738_v59  ;;  %v1937_v36 = vmax.f32 %v1935_v43, %v1936_v62  ;;  %v1960_v10 = vsel %vm811_vm8, %v1902_v15, %v1959_v47  ;;  %v1967_v34 = vsel %vm811_vm8, %v1909_v14, %v1966_v30  ;;  %v6415_v3 = vld [vmem:[#allocation11 + $0x244] sm:$0xf]  ;;  %v5223_v62 = vld [vmem:[#allocation11 + $0x250] sm:$0xf0]  ;;  %v5485_v47 = vld [vmem:[#allocation11 + $0x448] sm:$0xf] }
 0x2d7   :  { %3671 = vmatpush.bf16.msra.mxu2 %v5306_v45  ;;  %3684 = vmatpush.bf16.msra.mxu3 %v5434_v0  ;;  %v7747_v9 = vadd.f32 %v3667_v7, %v3655_v18  ;;  %v5258_v53 = vor.u32 %v6423_v24, %v5255_v23  ;;  %v5386_v43 = vor.u32 %v6455_v54, %v5383_v60  ;;  %v6419_v7 = vld [vmem:[#allocation11 + $0x264] sm:$0xf]  ;;  %v5367_v18 = vld [vmem:[#allocation11 + $0x370] sm:$0xf0]  ;;  %v5613_v15 = vld [vmem:[#allocation11 + $0x548] sm:$0xf] }
 0x2d8   :  { %3705 = vmatmul.bf16.vlgmr.msra.gmra.mxu0 %v7736_v52  ;;  %3718 = vmatmul.bf16.vlgmr.msra.gmra.mxu1 %v7738_v59  ;;  %v5518_v21 = vor.u32 %v6490_v20, %v5517_v63  ;;  %v5646_v25 = vor.u32 %v6522_v26, %v5645_v58  ;;  %v5242_v16 = vor.u32 %v6419_v7, %v5239_v29  ;;  %v6514_v14 = vld [vmem:[#allocation11 + $0x554] sm:$0xf0]  ;;  %v5335_v24 = vld [vmem:[#allocation11 + $0x330] sm:$0xf0]  ;;  %v5597_v60 = vld [vmem:[#allocation11 + $0x528] sm:$0xf] }
 0x2d9   :  { %3801 = vmatpush.bf16.msra.mxu0 %v5566_v55  ;;  %3814 = vmatpush.bf16.msra.mxu1 %v5694_v28  ;;  %v3550_v31 = vpop.f32.mrf.mxu2  ;;  %v3563_v8 = vpop.f32.mrf.mxu3  ;;  %v1961_v55 = vsel %vm813_vm9, %v1916_v44, %v1960_v10  ;;  %v1968_v28 = vsel %vm813_vm9, %v1923_v38, %v1967_v34  ;;  %v5370_v46 = vor.u32 %v6451_v48, %v5367_v18  ;;  %v5191_v20 = vld [vmem:[#allocation11 + $0x210] sm:$0xf0]  ;;  %v6439_v30 = vld [vmem:[#allocation11 + $0x304] sm:$0xf]  ;;  %v5453_v58 = vld [vmem:[#allocation11 + $0x408] sm:$0xf] }
 0x2da   :  { %v3551_v56 = vadd.f32 %v3550_v31, %v2253_v2  ;;  %v1962_v5 = vsel %vm815_vm10, %v1930_v61, %v1961_v55  ;;  %v1969_v39 = vsel %vm815_vm10, %v1937_v36, %v1968_v28  ;;  %v5226_v31 = vor.u32 %v6415_v3, %v5223_v62  ;;  %v6510_v61 = vld [vmem:[#allocation11 + $0x534] sm:$0xf0]  ;;  %v6407_v36 = vld [vmem:[#allocation11 + $0x204] sm:$0xf]  ;;  %v5319_v10 = vld [vmem:[#allocation11 + $0x310] sm:$0xf0] }
 0x2db   :  { %3672 = vmatpush.bf16.msra.mxu2 %v5290_v57  ;;  %3685 = vmatpush.bf16.msra.mxu3 %v5418_v50  ;;  %v6486_v57 = vld [vmem:[#allocation11 + $0x474] sm:$0xf0]  ;;  %v5629_v50 = vld [vmem:[#allocation11 + $0x568] sm:$0xf]  ;;  %v7776_v37 = vpack.c.bf16 %v1962_v5, %v1962_v5  ;;  %v7778_v49 = vpack.c.bf16 %v1969_v39, %v1969_v39  ;;  %v5486_v44 = vor.u32 %v6482_v13, %v5485_v47  ;;  %v6563_v34 = vld [vmem:[#allocation11 + $0x6e4] sm:$0xf] }
 0x2dc   :  { %v7766_v45 = vadd.f32 %v3563_v8, %v3551_v56  ;;  %v3656_v0 = vpop.f32.mrf.mxu0  ;;  %v3669_v17 = vpop.f32.mrf.mxu1  ;;  %v5502_v27 = vor.u32 %v6486_v57, %v5501_v32  ;;  %v5630_v51 = vor.u32 %v6518_v4, %v5629_v50  ;;  %v6411_v56 = vld [vmem:[#allocation11 + $0x224] sm:$0xf]  ;;  %v5614_v38 = vor.u32 %v6514_v14, %v5613_v15  ;;  %v6474_v26 = vld [vmem:[#allocation11 + $0x414] sm:$0xf0]  ;;  %v5815_v55 = vld [vmem:[#allocation11 + $0x6f0] sm:$0xf0] }
 0x2dd   :  { %3802 = vmatpush.bf16.msra.mxu0 %v5550_v22  ;;  %3815 = vmatpush.bf16.msra.mxu1 %v5678_v6  ;;  %v6447_v22 = vld [vmem:[#allocation11 + $0x344] sm:$0xf]  ;;  %v5351_v6 = vld [vmem:[#allocation11 + $0x350] sm:$0xf0]  ;;  %v5598_v7 = vor.u32 %v6510_v61, %v5597_v60  ;;  %v6506_v29 = vld [vmem:[#allocation11 + $0x514] sm:$0xf0]  ;;  %v5194_v18 = vor.u32 %v6407_v36, %v5191_v20  ;;  %v5454_v57 = vor.u32 %v6474_v26, %v5453_v58 }
 0x2de   :  { %v5354_v8 = vor.u32 %v6447_v22, %v5351_v6  ;;  %v6595_v28 = vld [vmem:[#allocation11 + $0x7e4] sm:$0xf]  ;;  %v6372_v48 = vld [vmem:[#allocation11 + $0xec] sm:$0xf]  ;;  %v5055_v5 = vld [vmem:[#allocation11 + $0xf8] sm:$0xf0] }
 0x2df   :  { %3673 = vmatpush.bf16.msra.mxu2 %v5274_v42  ;;  %3686 = vmatpush.bf16.msra.mxu3 %v5402_v11  ;;  %v5207_v42 = vld [vmem:[#allocation11 + $0x230] sm:$0xf0]  ;;  %v6443_v11 = vld [vmem:[#allocation11 + $0x324] sm:$0xf]  ;;  %v6404_v39 = vld [vmem:[#allocation11 + $0x1ec] sm:$0xf]  ;;  %v5058_v62 = vor.u32 %v6372_v48, %v5055_v5 }
 0x2e0   :  { %v5210_v17 = vor.u32 %v6411_v56, %v5207_v42  ;;  %v5338_v63 = vor.u32 %v6443_v11, %v5335_v24  ;;  %v5183_v32 = vld [vmem:[#allocation11 + $0x1f8] sm:$0xf0]  ;;  %v6559_v4 = vld [vmem:[#allocation11 + $0x6c4] sm:$0xf]  ;;  %v6400_v13 = vld [vmem:[#allocation11 + $0x1cc] sm:$0xf] }
 0x2e1   :  { %3803 = vmatpush.bf16.msra.mxu0 %v5534_v35  ;;  %3816 = vmatpush.bf16.msra.mxu1 %v5662_v41  ;;  %v3552_v12 = vpop.f32.mrf.mxu2  ;;  %v3565_v2 = vpop.f32.mrf.mxu3  ;;  %v5469_v35 = vld [vmem:[#allocation11 + $0x428] sm:$0xf]  ;;  %v6478_v41 = vld [vmem:[#allocation11 + $0x434] sm:$0xf0]  ;;  %v5186_v22 = vor.u32 %v6404_v39, %v5183_v32  ;;  %v6591_v6 = vld [vmem:[#allocation11 + $0x7c4] sm:$0xf] }
 0x2e2   :  { %v5818_v12 = vor.u32 %v6563_v34, %v5815_v55  ;;  %v5039_v47 = vld [vmem:[#allocation11 + $0xd8] sm:$0xf0]  ;;  %v5783_v56 = vld [vmem:[#allocation11 + $0x6b0] sm:$0xf0]  ;;  %v6587_v24 = vld [vmem:[#allocation11 + $0x7a4] sm:$0xf] }
 0x2e3   :  { %3674 = vmatpush.bf16.msra.mxu2 %v5258_v53  ;;  %3687 = vmatpush.bf16.msra.mxu3 %v5386_v43  ;;  %v5470_v43 = vor.u32 %v6478_v41, %v5469_v35  ;;  %v5167_v15 = vld [vmem:[#allocation11 + $0x1d8] sm:$0xf0]  ;;  %v6396_v41 = vld [vmem:[#allocation11 + $0x1ac] sm:$0xf]  ;;  %v6551_v61 = vld [vmem:[#allocation11 + $0x684] sm:$0xf] }
 0x2e4   :  { %v5170_v11 = vor.u32 %v6400_v13, %v5167_v15  ;;  %v5023_v35 = vld [vmem:[#allocation11 + $0xb8] sm:$0xf0]  ;;  %v5767_v36 = vld [vmem:[#allocation11 + $0x690] sm:$0xf0]  ;;  %v6392_v58 = vld [vmem:[#allocation11 + $0x18c] sm:$0xf] }
 0x2e5   :  { %3804 = vmatpush.bf16.msra.mxu0 %v5518_v21  ;;  %3817 = vmatpush.bf16.msra.mxu1 %v5646_v25  ;;  %v5943_v21 = vld [vmem:[#allocation11 + $0x7f0] sm:$0xf0]  ;;  %v5322_v25 = vor.u32 %v6439_v30, %v5319_v10  ;;  %v6360_v30 = vld [vmem:[#allocation11 + $0x8c] sm:$0xf]  ;;  %v5007_v10 = vld [vmem:[#allocation11 + $0x98] sm:$0xf0]  ;;  %v5770_v34 = vor.u32 %v6551_v61, %v5767_v36 }
 0x2e6   :  { %3627 = vmatmul.bf16.vlgmr.msrb.gmra.mxu2 %v7776_v37  ;;  %3640 = vmatmul.bf16.vlgmr.msrb.gmra.mxu3 %v7778_v49  ;;  %v5946_v2 = vor.u32 %v6595_v28, %v5943_v21  ;;  %v5895_v20 = vld [vmem:[#allocation11 + $0x790] sm:$0xf0]  ;;  %v5135_v26 = vld [vmem:[#allocation11 + $0x198] sm:$0xf0]  ;;  %v5010_v28 = vor.u32 %v6360_v30, %v5007_v10  ;;  %v6356_v48 = vld [vmem:[#allocation11 + $0x6c] sm:$0xf] }
 0x2e7   :  { %3675 = vmatpush.bf16.msra.mxu2 %v5242_v16  ;;  %3688 = vmatpush.bf16.msra.mxu3 %v5370_v46  ;;  %v5799_v16 = vld [vmem:[#allocation11 + $0x6d0] sm:$0xf0]  ;;  %v5138_v21 = vor.u32 %v6392_v58, %v5135_v26  ;;  %v5119_v5 = vld [vmem:[#allocation11 + $0x178] sm:$0xf0]  ;;  %v6344_v61 = vld [vmem:[#allocation11 + $0xc] sm:$0xf] }
 0x2e8   :  { %3757 = vmatmul.bf16.vlgmr.msrb.gmra.mxu0 %v7453_v1  ;;  %3770 = vmatmul.bf16.vlgmr.msrb.gmra.mxu1 %v7455_v40  ;;  %v5802_v14 = vor.u32 %v6559_v4, %v5799_v16  ;;  %v5751_v55 = vld [vmem:[#allocation11 + $0x670] sm:$0xf0]  ;;  %v6575_v4 = vld [vmem:[#allocation11 + $0x744] sm:$0xf]  ;;  %v4943_v36 = vld [vmem:[#allocation11 + $0x18] sm:$0xf0] }
 0x2e9   :  { %3805 = vmatpush.bf16.msra.mxu0 %v5502_v27  ;;  %3818 = vmatpush.bf16.msra.mxu1 %v5630_v51  ;;  %v3576_v23 = vpop.f32.mrf.mxu2  ;;  %v3589_v54 = vpop.f32.mrf.mxu3  ;;  %v5927_v27 = vld [vmem:[#allocation11 + $0x7d0] sm:$0xf0]  ;;  %v6368_v51 = vld [vmem:[#allocation11 + $0xcc] sm:$0xf]  ;;  %v5437_v30 = vld [vmem:[#allocation11 + $0x3e8] sm:$0xf] }
 0x2ea   :  { %v3577_v0 = vadd.f32 %v3576_v23, %v7766_v45  ;;  %v5581_v45 = vld [vmem:[#allocation11 + $0x508] sm:$0xf]  ;;  %v5042_v42 = vor.u32 %v6368_v51, %v5039_v47  ;;  %v5151_v23 = vld [vmem:[#allocation11 + $0x1b8] sm:$0xf0]  ;;  %v5863_v16 = vld [vmem:[#allocation11 + $0x750] sm:$0xf0] }
 0x2eb   :  { %3676 = vmatpush.bf16.msra.mxu2 %v5226_v31  ;;  %3689 = vmatpush.bf16.msra.mxu3 %v5354_v8  ;;  %v5582_v50 = vor.u32 %v6506_v29, %v5581_v45  ;;  %v5930_v31 = vor.u32 %v6591_v6, %v5927_v27  ;;  %v6555_v8 = vld [vmem:[#allocation11 + $0x6a4] sm:$0xf]  ;;  %v5879_v29 = vld [vmem:[#allocation11 + $0x770] sm:$0xf0]  ;;  %v5866_v27 = vor.u32 %v6575_v4, %v5863_v16  ;;  %v6470_v10 = vld [vmem:[#allocation11 + $0x3f4] sm:$0xf0] }
 0x2ec   :  { %v7785_v53 = vadd.f32 %v3589_v54, %v3577_v0  ;;  %v5786_v54 = vor.u32 %v6555_v8, %v5783_v56  ;;  %v6579_v45 = vld [vmem:[#allocation11 + $0x764] sm:$0xf]  ;;  %v5719_v47 = vld [vmem:[#allocation11 + $0x630] sm:$0xf0]  ;;  %v6348_v8 = vld [vmem:[#allocation11 + $0x2c] sm:$0xf] }
 0x2ed   :  { %3806 = vmatpush.bf16.msra.mxu0 %v5486_v44  ;;  %3819 = vmatpush.bf16.msra.mxu1 %v5614_v38  ;;  %v5911_v44 = vld [vmem:[#allocation11 + $0x7b0] sm:$0xf0]  ;;  %v6364_v38 = vld [vmem:[#allocation11 + $0xac] sm:$0xf]  ;;  %v5882_v32 = vor.u32 %v6579_v45, %v5879_v29  ;;  %v6539_v51 = vld [vmem:[#allocation11 + $0x624] sm:$0xf]  ;;  %v5438_v29 = vor.u32 %v6470_v10, %v5437_v30 }
 0x2ee   :  { %v5914_v60 = vor.u32 %v6587_v24, %v5911_v44  ;;  %v5026_v0 = vor.u32 %v6364_v38, %v5023_v35  ;;  %v4959_v56 = vld [vmem:[#allocation11 + $0x38] sm:$0xf0]  ;;  %v6535_v24 = vld [vmem:[#allocation11 + $0x604] sm:$0xf]  ;;  %v5722_v44 = vor.u32 %v6539_v51, %v5719_v47  ;;  %v5703_v35 = vld [vmem:[#allocation11 + $0x610] sm:$0xf0] }
 0x2ef   :  { %3677 = vmatpush.bf16.msra.mxu2 %v5210_v17  ;;  %3690 = vmatpush.bf16.msra.mxu3 %v5338_v63  ;;  %v5154_v17 = vor.u32 %v6396_v41, %v5151_v23  ;;  %v6583_v63 = vld [vmem:[#allocation11 + $0x784] sm:$0xf]  ;;  %v5831_v23 = vld [vmem:[#allocation11 + $0x710] sm:$0xf0]  ;;  %v6500_v58 = vld [vmem:[#allocation11 + $0x4ec] sm:$0xf]  ;;  %v5706_v26 = vor.u32 %v6535_v24, %v5703_v35 }
 0x2f0   :  { %v6567_v41 = vld [vmem:[#allocation11 + $0x704] sm:$0xf]  ;;  %v6492_v51 = vld [vmem:[#allocation11 + $0x4ac] sm:$0xf]  ;;  %v5535_v47 = vld [vmem:[#allocation11 + $0x4b8] sm:$0xf0] }
 0x2f1   :  { %3807 = vmatpush.bf16.msra.mxu0 %v5470_v43  ;;  %3820 = vmatpush.bf16.msra.mxu1 %v5598_v7  ;;  %v3578_v46 = vpop.f32.mrf.mxu2  ;;  %v3591_v3 = vpop.f32.mrf.mxu3  ;;  %v5898_v43 = vor.u32 %v6583_v63, %v5895_v20  ;;  %v6547_v7 = vld [vmem:[#allocation11 + $0x664] sm:$0xf]  ;;  %v5309_v63 = vld [vmem:[#allocation11 + $0x2e8] sm:$0xf]  ;;  %v6438_v20 = vld [vmem:[#allocation11 + $0x2f4] sm:$0xf0] }
 0x2f2   :  { %v5754_v39 = vor.u32 %v6547_v7, %v5751_v55  ;;  %v6352_v46 = vld [vmem:[#allocation11 + $0x4c] sm:$0xf]  ;;  %v4975_v3 = vld [vmem:[#allocation11 + $0x58] sm:$0xf0]  ;;  %v5310_v45 = vor.u32 %v6438_v20, %v5309_v63  ;;  %v5389_v24 = vld [vmem:[#allocation11 + $0x388] sm:$0xf] }
 0x2f3   :  { %3678 = vmatpush.bf16.msra.mxu2 %v5194_v18  ;;  %3691 = vmatpush.bf16.msra.mxu3 %v5322_v25  ;;  %v4991_v18 = vld [vmem:[#allocation11 + $0x78] sm:$0xf0]  ;;  %v6388_v25 = vld [vmem:[#allocation11 + $0x16c] sm:$0xf]  ;;  %v4978_v13 = vor.u32 %v6352_v46, %v4975_v3  ;;  %v5277_v46 = vld [vmem:[#allocation11 + $0x2a8] sm:$0xf] }
 0x2f4   :  { %v6532_v7 = vld [vmem:[#allocation11 + $0x5ec] sm:$0xf]  ;;  %v5695_v55 = vld [vmem:[#allocation11 + $0x5f8] sm:$0xf0]  ;;  %v6430_v3 = vld [vmem:[#allocation11 + $0x2b4] sm:$0xf0] }
 0x2f5   :  { %3808 = vmatpush.bf16.msra.mxu0 %v5454_v57  ;;  %3821 = vmatpush.bf16.msra.mxu1 %v5582_v50  ;;  %v4994_v57 = vor.u32 %v6356_v48, %v4991_v18  ;;  %v5122_v50 = vor.u32 %v6388_v25, %v5119_v5  ;;  %v5293_v48 = vld [vmem:[#allocation11 + $0x2c8] sm:$0xf]  ;;  %v6434_v18 = vld [vmem:[#allocation11 + $0x2d4] sm:$0xf0]  ;;  %v5698_v5 = vor.u32 %v6532_v7, %v5695_v55  ;;  %v5519_v35 = vld [vmem:[#allocation11 + $0x498] sm:$0xf0] }
 0x2f6   :  { %3679 = vmatmul.bf16.vlgmr.msra.gmra.mxu2 %v7493_v19  ;;  %3692 = vmatmul.bf16.vlgmr.msra.gmra.mxu3 %v7495_v33  ;;  %v5294_v4 = vor.u32 %v6434_v18, %v5293_v48  ;;  %v6484_v63 = vld [vmem:[#allocation11 + $0x46c] sm:$0xf]  ;;  %v5503_v20 = vld [vmem:[#allocation11 + $0x478] sm:$0xf0] }
 0x2f7   :  { %3723 = vmatpush.bf16.msrb.mxu2 %v5818_v12  ;;  %3736 = vmatpush.bf16.msrb.mxu3 %v5946_v2  ;;  %v6543_v12 = vld [vmem:[#allocation11 + $0x644] sm:$0xf]  ;;  %v5735_v2 = vld [vmem:[#allocation11 + $0x650] sm:$0xf0]  ;;  %v6516_v30 = vld [vmem:[#allocation11 + $0x56c] sm:$0xf]  ;;  %v5506_v7 = vor.u32 %v6484_v63, %v5503_v20 }
 0x2f8   :  { %3809 = vmatmul.bf16.vlgmr.msra.gmra.mxu0 %v7736_v52  ;;  %3822 = vmatmul.bf16.vlgmr.msra.gmra.mxu1 %v7738_v59  ;;  %v5738_v6 = vor.u32 %v6543_v12, %v5735_v2  ;;  %v6496_v12 = vld [vmem:[#allocation11 + $0x4cc] sm:$0xf]  ;;  %v5551_v2 = vld [vmem:[#allocation11 + $0x4d8] sm:$0xf0] }
 0x2f9   :  { %3853 = vmatpush.bf16.msrb.mxu0 %v5058_v62  ;;  %3866 = vmatpush.bf16.msrb.mxu1 %v5186_v22  ;;  %v6384_v62 = vld [vmem:[#allocation11 + $0x14c] sm:$0xf]  ;;  %v5103_v22 = vld [vmem:[#allocation11 + $0x158] sm:$0xf0] }
 0x2fa   :  { %v5106_v15 = vor.u32 %v6384_v62, %v5103_v22  ;;  %v5554_v62 = vor.u32 %v6496_v12, %v5551_v2  ;;  %v5631_v10 = vld [vmem:[#allocation11 + $0x578] sm:$0xf0]  ;;  %v6512_v48 = vld [vmem:[#allocation11 + $0x54c] sm:$0xf] }
 0x2fb   :  { %3724 = vmatpush.bf16.msrb.mxu2 %v5802_v14  ;;  %3737 = vmatpush.bf16.msrb.mxu3 %v5930_v31  ;;  %v6571_v14 = vld [vmem:[#allocation11 + $0x724] sm:$0xf]  ;;  %v5847_v31 = vld [vmem:[#allocation11 + $0x730] sm:$0xf0]  ;;  %v5634_v55 = vor.u32 %v6516_v30, %v5631_v10  ;;  %v5615_v18 = vld [vmem:[#allocation11 + $0x558] sm:$0xf0] }
 0x2fc   :  { %v5850_v38 = vor.u32 %v6571_v14, %v5847_v31  ;;  %v5278_v14 = vor.u32 %v6430_v3, %v5277_v46  ;;  %v5618_v2 = vor.u32 %v6512_v48, %v5615_v18  ;;  %v6508_v46 = vld [vmem:[#allocation11 + $0x52c] sm:$0xf]  ;;  %v5599_v3 = vld [vmem:[#allocation11 + $0x538] sm:$0xf0]  ;;  %v5789_v10 = vld [vmem:[#allocation11 + $0x6a8] sm:$0xf] }
 0x2fd   :  { %3854 = vmatpush.bf16.msrb.mxu0 %v5042_v42  ;;  %3867 = vmatpush.bf16.msrb.mxu1 %v5170_v11  ;;  %v6380_v42 = vld [vmem:[#allocation11 + $0x12c] sm:$0xf]  ;;  %v5087_v11 = vld [vmem:[#allocation11 + $0x138] sm:$0xf0]  ;;  %v6554_v18 = vld [vmem:[#allocation11 + $0x694] sm:$0xf0] }
 0x2fe   :  { %v6610_v48 = vld [vmem:[#allocation14 + $0x54] sm:$0xf0] }
 0x2ff   :  { %3725 = vmatpush.bf16.msrb.mxu2 %v5786_v54  ;;  %3738 = vmatpush.bf16.msrb.mxu3 %v5914_v60  ;;  %v4962_v54 = vor.u32 %v6348_v8, %v4959_v56  ;;  %v5090_v60 = vor.u32 %v6380_v42, %v5087_v11  ;;  %v5261_v8 = vld [vmem:[#allocation11 + $0x288] sm:$0xf]  ;;  %v6426_v56 = vld [vmem:[#allocation11 + $0x294] sm:$0xf0]  ;;  %v5538_v42 = vor.u32 %v6492_v51, %v5535_v47 }
 0x300   :  { %v5325_v51 = vld [vmem:[#allocation11 + $0x308] sm:$0xf] }
 0x301   :  { %3855 = vmatpush.bf16.msrb.mxu0 %v5026_v0  ;;  %3868 = vmatpush.bf16.msrb.mxu1 %v5154_v17  ;;  %v6376_v0 = vld [vmem:[#allocation11 + $0x10c] sm:$0xf]  ;;  %v5071_v17 = vld [vmem:[#allocation11 + $0x118] sm:$0xf0] }
 0x303   :  { %3726 = vmatpush.bf16.msrb.mxu2 %v5770_v34  ;;  %3739 = vmatpush.bf16.msrb.mxu3 %v5898_v43  ;;  %v5834_v34 = vor.u32 %v6567_v41, %v5831_v23  ;;  %v5567_v43 = vld [vmem:[#allocation11 + $0x4f8] sm:$0xf0]  ;;  %v6520_v41 = vld [vmem:[#allocation11 + $0x58c] sm:$0xf] }
 0x304   :  { %v5570_v25 = vor.u32 %v6500_v58, %v5567_v43  ;;  %v5647_v23 = vld [vmem:[#allocation11 + $0x598] sm:$0xf0]  ;;  %v6418_v43 = vld [vmem:[#allocation11 + $0x254] sm:$0xf0] }
 0x305   :  { %3856 = vmatpush.bf16.msrb.mxu0 %v5010_v28  ;;  %3869 = vmatpush.bf16.msrb.mxu1 %v5138_v21  ;;  %v4946_v28 = vor.u32 %v6344_v61, %v4943_v36  ;;  %v5074_v21 = vor.u32 %v6376_v0, %v5071_v17  ;;  %v5650_v36 = vor.u32 %v6520_v41, %v5647_v23  ;;  %v5373_v0 = vld [vmem:[#allocation11 + $0x368] sm:$0xf]  ;;  %v6454_v17 = vld [vmem:[#allocation11 + $0x374] sm:$0xf0] }
 0x307   :  { %3727 = vmatpush.bf16.msrb.mxu2 %v5754_v39  ;;  %3740 = vmatpush.bf16.msrb.mxu3 %v5882_v32  ;;  %v5421_v39 = vld [vmem:[#allocation11 + $0x3c8] sm:$0xf]  ;;  %v6466_v32 = vld [vmem:[#allocation11 + $0x3d4] sm:$0xf0] }
 0x308   :  { %v5422_v16 = vor.u32 %v6466_v32, %v5421_v39  ;;  %v5213_v39 = vld [vmem:[#allocation11 + $0x228] sm:$0xf]  ;;  %v6414_v32 = vld [vmem:[#allocation11 + $0x234] sm:$0xf0] }
 0x309   :  { %3857 = vmatpush.bf16.msrb.mxu0 %v4994_v57  ;;  %3870 = vmatpush.bf16.msrb.mxu1 %v5122_v50  ;;  %v6528_v57 = vld [vmem:[#allocation11 + $0x5cc] sm:$0xf]  ;;  %v5679_v50 = vld [vmem:[#allocation11 + $0x5d8] sm:$0xf0] }
 0x30a   :  { %v5682_v22 = vor.u32 %v6528_v57, %v5679_v50  ;;  %v5341_v57 = vld [vmem:[#allocation11 + $0x328] sm:$0xf]  ;;  %v6446_v50 = vld [vmem:[#allocation11 + $0x334] sm:$0xf0] }
 0x30b   :  { %3728 = vmatpush.bf16.msrb.mxu2 %v5738_v6  ;;  %3741 = vmatpush.bf16.msrb.mxu3 %v5866_v27  ;;  %v5405_v6 = vld [vmem:[#allocation11 + $0x3a8] sm:$0xf]  ;;  %v6462_v27 = vld [vmem:[#allocation11 + $0x3b4] sm:$0xf0] }
 0x30c   :  { %v5406_v31 = vor.u32 %v6462_v27, %v5405_v6  ;;  %v5197_v6 = vld [vmem:[#allocation11 + $0x208] sm:$0xf]  ;;  %v6410_v27 = vld [vmem:[#allocation11 + $0x214] sm:$0xf0] }
 0x30d   :  { %3858 = vmatpush.bf16.msrb.mxu0 %v4978_v13  ;;  %3871 = vmatpush.bf16.msrb.mxu1 %v5106_v15  ;;  %v6524_v13 = vld [vmem:[#allocation11 + $0x5ac] sm:$0xf]  ;;  %v5663_v15 = vld [vmem:[#allocation11 + $0x5b8] sm:$0xf0] }
 0x30e   :  { %v5666_v11 = vor.u32 %v6524_v13, %v5663_v15  ;;  %v5602_v13 = vor.u32 %v6508_v46, %v5599_v3  ;;  %v6442_v15 = vld [vmem:[#allocation11 + $0x314] sm:$0xf0] }
 0x30f   :  { %3729 = vmatpush.bf16.msrb.mxu2 %v5722_v44  ;;  %3742 = vmatpush.bf16.msrb.mxu3 %v5850_v38  ;;  %v6458_v44 = vld [vmem:[#allocation11 + $0x394] sm:$0xf0]  ;;  %v6488_v38 = vld [vmem:[#allocation11 + $0x48c] sm:$0xf] }
 0x310   :  { %v5522_v61 = vor.u32 %v6488_v38, %v5519_v35  ;;  %v5198_v38 = vor.u32 %v6410_v27, %v5197_v6  ;;  %v5326_v35 = vor.u32 %v6442_v15, %v5325_v51  ;;  %v6606_v6 = vld [vmem:[#allocation14 + $0x34] sm:$0xf0]  ;;  %v6546_v27 = vld [vmem:[#allocation11 + $0x654] sm:$0xf0]  ;;  %v5869_v51 = vld [vmem:[#allocation11 + $0x748] sm:$0xf] }
 0x311   :  { %3859 = vmatpush.bf16.msrb.mxu0 %v4962_v54  ;;  %3872 = vmatpush.bf16.msrb.mxu1 %v5090_v60  ;;  %v5245_v54 = vld [vmem:[#allocation11 + $0x268] sm:$0xf]  ;;  %v6422_v60 = vld [vmem:[#allocation11 + $0x274] sm:$0xf0] }
 0x312   :  { %v5246_v58 = vor.u32 %v6422_v60, %v5245_v54  ;;  %v5805_v54 = vld [vmem:[#allocation11 + $0x6c8] sm:$0xf]  ;;  %v6013_v60 = vld [vmem:[#allocation14 + $0x70] sm:$0xf] }
 0x313   :  { %3730 = vmatpush.bf16.msrb.mxu2 %v5706_v26  ;;  %3743 = vmatpush.bf16.msrb.mxu3 %v5834_v34  ;;  %v5374_v26 = vor.u32 %v6454_v17, %v5373_v0  ;;  %v5229_v34 = vld [vmem:[#allocation11 + $0x248] sm:$0xf]  ;;  %v6594_v17 = vld [vmem:[#allocation11 + $0x7d4] sm:$0xf0] }
 0x314   :  { %v5933_v0 = vld [vmem:[#allocation11 + $0x7c8] sm:$0xf] }
 0x315   :  { %3860 = vmatpush.bf16.msrb.mxu0 %v4946_v28  ;;  %3873 = vmatpush.bf16.msrb.mxu1 %v5074_v21  ;;  %v5357_v28 = vld [vmem:[#allocation11 + $0x348] sm:$0xf]  ;;  %v6450_v21 = vld [vmem:[#allocation11 + $0x354] sm:$0xf0]  ;;  %v5934_v30 = vor.u32 %v6594_v17, %v5933_v0  ;;  %v6468_v0 = vld [vmem:[#allocation11 + $0x3ec] sm:$0xf] }
 0x316   :  { %3731 = vmatmul.bf16.vlgmr.msrb.gmra.mxu2 %v7776_v37  ;;  %3744 = vmatmul.bf16.vlgmr.msrb.gmra.mxu3 %v7778_v49  ;;  %v5439_v17 = vld [vmem:[#allocation11 + $0x3f8] sm:$0xf0] }
 0x317   :  { %3775 = vmatpush.bf16.msra.mxu2 %v5310_v45  ;;  %3788 = vmatpush.bf16.msra.mxu3 %v5438_v29  ;;  %v6480_v45 = vld [vmem:[#allocation11 + $0x44c] sm:$0xf]  ;;  %v5487_v29 = vld [vmem:[#allocation11 + $0x458] sm:$0xf0] }
 0x318   :  { %3861 = vmatmul.bf16.vlgmr.msrb.gmra.mxu0 %v7453_v1  ;;  %3874 = vmatmul.bf16.vlgmr.msrb.gmra.mxu1 %v7455_v40  ;;  %v5262_v1 = vor.u32 %v6426_v56, %v5261_v8  ;;  %v5390_v40 = vor.u32 %v6458_v44, %v5389_v24  ;;  %v5490_v12 = vor.u32 %v6480_v45, %v5487_v29  ;;  %v6504_v8 = vld [vmem:[#allocation11 + $0x50c] sm:$0xf]  ;;  %v5583_v56 = vld [vmem:[#allocation11 + $0x518] sm:$0xf0]  ;;  %v5949_v24 = vld [vmem:[#allocation11 + $0x7e8] sm:$0xf] }
 0x319   :  { %3905 = vmatpush.bf16.msra.mxu0 %v5570_v25  ;;  %3918 = vmatpush.bf16.msra.mxu1 %v5698_v5  ;;  %v5230_v25 = vor.u32 %v6418_v43, %v5229_v34  ;;  %v5358_v5 = vor.u32 %v6450_v21, %v5357_v28  ;;  %v6598_v44 = vld [vmem:[#allocation11 + $0x7f4] sm:$0xf0]  ;;  %v5586_v23 = vor.u32 %v6504_v8, %v5583_v56  ;;  %v5917_v43 = vld [vmem:[#allocation11 + $0x7a8] sm:$0xf]  ;;  %v5997_v29 = vld [vmem:[#allocation14 + $0x50] sm:$0xf] }
 0x31a   :  { %v6558_v34 = vld [vmem:[#allocation11 + $0x6b4] sm:$0xf0]  ;;  %v5773_v45 = vld [vmem:[#allocation11 + $0x688] sm:$0xf]  ;;  %v5973_v8 = vld [vmem:[#allocation14 + $0x20] sm:$0xf] }
 0x31b   :  { %3776 = vmatpush.bf16.msra.mxu2 %v5294_v4  ;;  %3789 = vmatpush.bf16.msra.mxu3 %v5422_v16  ;;  %v6476_v4 = vld [vmem:[#allocation11 + $0x42c] sm:$0xf]  ;;  %v5471_v16 = vld [vmem:[#allocation11 + $0x438] sm:$0xf0]  ;;  %v5790_v28 = vor.u32 %v6558_v34, %v5789_v10  ;;  %v5957_v34 = vld [vmem:[#allocation14] sm:$0xf] }
 0x31c   :  { %v5474_v47 = vor.u32 %v6476_v4, %v5471_v16  ;;  %v6582_v4 = vld [vmem:[#allocation11 + $0x774] sm:$0xf0]  ;;  %v6604_v56 = vld [vmem:[#allocation14 + $0x24] sm:$0xf0] }
 0x31d   :  { %3906 = vmatpush.bf16.msra.mxu0 %v5554_v62  ;;  %3919 = vmatpush.bf16.msra.mxu1 %v5682_v22  ;;  %v5214_v62 = vor.u32 %v6414_v32, %v5213_v39  ;;  %v5342_v22 = vor.u32 %v6446_v50, %v5341_v57  ;;  %v5998_v39 = vor.u32 %v6610_v48, %v5997_v29  ;;  %v6550_v57 = vld [vmem:[#allocation11 + $0x674] sm:$0xf0]  ;;  %v5885_v50 = vld [vmem:[#allocation11 + $0x768] sm:$0xf] }
 0x31e   :  { %v5774_v32 = vor.u32 %v6554_v18, %v5773_v45  ;;  %v5886_v3 = vor.u32 %v6582_v4, %v5885_v50  ;;  %v6015_v45 = vld [vmem:[#allocation14 + $0x78] sm:$0xf0]  ;;  %v6424_v50 = vld [vmem:[#allocation11 + $0x28c] sm:$0xf]  ;;  %v5263_v4 = vld [vmem:[#allocation11 + $0x298] sm:$0xf0] }
 0x31f   :  { %3777 = vmatpush.bf16.msra.mxu2 %v5278_v14  ;;  %3790 = vmatpush.bf16.msra.mxu3 %v5406_v31  ;;  %v6472_v14 = vld [vmem:[#allocation11 + $0x40c] sm:$0xf]  ;;  %v5455_v31 = vld [vmem:[#allocation11 + $0x418] sm:$0xf0] }
 0x320   :  { %v5458_v41 = vor.u32 %v6472_v14, %v5455_v31  ;;  %v5725_v31 = vld [vmem:[#allocation11 + $0x628] sm:$0xf] }
 0x321   :  { %3907 = vmatpush.bf16.msra.mxu0 %v5538_v42  ;;  %3920 = vmatpush.bf16.msra.mxu1 %v5666_v11  ;;  %v5821_v42 = vld [vmem:[#allocation11 + $0x6e8] sm:$0xf]  ;;  %v6566_v11 = vld [vmem:[#allocation11 + $0x6f4] sm:$0xf0] }
 0x323   :  { %3778 = vmatpush.bf16.msra.mxu2 %v5262_v1  ;;  %3791 = vmatpush.bf16.msra.mxu3 %v5390_v40  ;;  %v5822_v1 = vor.u32 %v6566_v11, %v5821_v42  ;;  %v5950_v40 = vor.u32 %v6598_v44, %v5949_v24  ;;  %v6542_v42 = vld [vmem:[#allocation11 + $0x634] sm:$0xf0]  ;;  %v5853_v11 = vld [vmem:[#allocation11 + $0x728] sm:$0xf] }
 0x324   :  { %v6574_v24 = vld [vmem:[#allocation11 + $0x734] sm:$0xf0]  ;;  %v5709_v44 = vld [vmem:[#allocation11 + $0x608] sm:$0xf] }
 0x325   :  { %3908 = vmatpush.bf16.msra.mxu0 %v5522_v61  ;;  %3921 = vmatpush.bf16.msra.mxu1 %v5650_v36  ;;  %v6614_v61 = vld [vmem:[#allocation14 + $0x74] sm:$0xf0]  ;;  %v6562_v36 = vld [vmem:[#allocation11 + $0x6d4] sm:$0xf0] }
 0x326   :  { %v6014_v63 = vor.u32 %v6614_v61, %v6013_v60  ;;  %v5806_v20 = vor.u32 %v6562_v36, %v5805_v54  ;;  %v5837_v54 = vld [vmem:[#allocation11 + $0x708] sm:$0xf]  ;;  %v6570_v60 = vld [vmem:[#allocation11 + $0x714] sm:$0xf0]  ;;  %v6436_v61 = vld [vmem:[#allocation11 + $0x2ec] sm:$0xf] }
 0x327   :  { %3779 = vmatpush.bf16.msra.mxu2 %v5246_v58  ;;  %3792 = vmatpush.bf16.msra.mxu3 %v5374_v26  ;;  %v6005_v58 = vld [vmem:[#allocation14 + $0x60] sm:$0xf]  ;;  %v6612_v26 = vld [vmem:[#allocation14 + $0x64] sm:$0xf0]  ;;  %v5311_v36 = vld [vmem:[#allocation11 + $0x2f8] sm:$0xf0] }
 0x328   :  { %v5314_v10 = vor.u32 %v6436_v61, %v5311_v36  ;;  %v5231_v61 = vld [vmem:[#allocation11 + $0x258] sm:$0xf0]  ;;  %v6448_v36 = vld [vmem:[#allocation11 + $0x34c] sm:$0xf] }
 0x329   :  { %3909 = vmatpush.bf16.msra.mxu0 %v5506_v7  ;;  %3922 = vmatpush.bf16.msra.mxu1 %v5634_v55  ;;  %v6590_v7 = vld [vmem:[#allocation11 + $0x7b4] sm:$0xf0]  ;;  %v6006_v55 = vor.u32 %v6612_v26, %v6005_v58  ;;  %v5442_v58 = vor.u32 %v6468_v0, %v5439_v17  ;;  %v6432_v26 = vld [vmem:[#allocation11 + $0x2cc] sm:$0xf]  ;;  %v5359_v0 = vld [vmem:[#allocation11 + $0x358] sm:$0xf0] }
 0x32a   :  { %v5918_v21 = vor.u32 %v6590_v7, %v5917_v43  ;;  %v6600_v43 = vld [vmem:[#allocation14 + $0x4] sm:$0xf0]  ;;  %v5295_v7 = vld [vmem:[#allocation11 + $0x2d8] sm:$0xf0] }
 0x32b   :  { %3780 = vmatpush.bf16.msra.mxu2 %v5230_v25  ;;  %3793 = vmatpush.bf16.msra.mxu3 %v5358_v5  ;;  %v5901_v25 = vld [vmem:[#allocation11 + $0x788] sm:$0xf]  ;;  %v6586_v5 = vld [vmem:[#allocation11 + $0x794] sm:$0xf0]  ;;  %v5958_v29 = vor.u32 %v6600_v43, %v5957_v34  ;;  %v5298_v48 = vor.u32 %v6432_v26, %v5295_v7  ;;  %v5362_v26 = vor.u32 %v6448_v36, %v5359_v0  ;;  %v6412_v34 = vld [vmem:[#allocation11 + $0x22c] sm:$0xf] }
 0x32c   :  { %v5215_v43 = vld [vmem:[#allocation11 + $0x238] sm:$0xf0]  ;;  %v6444_v7 = vld [vmem:[#allocation11 + $0x32c] sm:$0xf] }
 0x32d   :  { %3910 = vmatpush.bf16.msra.mxu0 %v5490_v12  ;;  %3923 = vmatpush.bf16.msra.mxu1 %v5618_v2  ;;  %v5757_v12 = vld [vmem:[#allocation11 + $0x668] sm:$0xf]  ;;  %v6608_v2 = vld [vmem:[#allocation14 + $0x44] sm:$0xf0] }
 0x32e   :  { %v5758_v46 = vor.u32 %v6550_v57, %v5757_v12  ;;  %v6611_v12 = vld [vmem:[#allocation14 + $0x64] sm:$0xf] }
 0x32f   :  { %3781 = vmatpush.bf16.msra.mxu2 %v5214_v62  ;;  %3794 = vmatpush.bf16.msra.mxu3 %v5342_v22  ;;  %v5741_v62 = vld [vmem:[#allocation11 + $0x648] sm:$0xf]  ;;  %v5981_v22 = vld [vmem:[#allocation14 + $0x30] sm:$0xf] }
 0x330   :  { %v5742_v15 = vor.u32 %v6546_v27, %v5741_v62  ;;  %v6609_v62 = vld [vmem:[#allocation14 + $0x54] sm:$0xf]  ;;  %v6630_v27 = vld [vmem:[#allocation14 + $0xf4] sm:$0xf0] }
 0x331   :  { %3911 = vmatpush.bf16.msra.mxu0 %v5474_v47  ;;  %3924 = vmatpush.bf16.msra.mxu1 %v5602_v13  ;;  %v6578_v47 = vld [vmem:[#allocation11 + $0x754] sm:$0xf0]  ;;  %v5982_v13 = vor.u32 %v6606_v6, %v5981_v22  ;;  %v5999_v22 = vld [vmem:[#allocation14 + $0x58] sm:$0xf0]  ;;  %v6077_v6 = vld [vmem:[#allocation14 + $0xf0] sm:$0xf] }
 0x332   :  { %v5870_v14 = vor.u32 %v6578_v47, %v5869_v51 }
 0x333   :  { %3782 = vmatpush.bf16.msra.mxu2 %v5198_v38  ;;  %3795 = vmatpush.bf16.msra.mxu3 %v5326_v35  ;;  %v5974_v38 = vor.u32 %v6604_v56, %v5973_v8  ;;  %v5726_v35 = vor.u32 %v6542_v42, %v5725_v31  ;;  %v6420_v31 = vld [vmem:[#allocation11 + $0x26c] sm:$0xf]  ;;  %v5247_v8 = vld [vmem:[#allocation11 + $0x278] sm:$0xf0] }
 0x334   :  { %v6452_v56 = vld [vmem:[#allocation11 + $0x36c] sm:$0xf]  ;;  %v5375_v42 = vld [vmem:[#allocation11 + $0x378] sm:$0xf0] }
 0x335   :  { %3912 = vmatpush.bf16.msra.mxu0 %v5458_v41  ;;  %3925 = vmatpush.bf16.msra.mxu1 %v5586_v23  ;;  %v5854_v41 = vor.u32 %v6574_v24, %v5853_v11  ;;  %v6538_v23 = vld [vmem:[#allocation11 + $0x614] sm:$0xf0]  ;;  %v6002_v11 = vor.u32 %v6609_v62, %v5999_v22  ;;  %v6607_v24 = vld [vmem:[#allocation14 + $0x44] sm:$0xf] }
 0x336   :  { %3783 = vmatmul.bf16.vlgmr.msra.gmra.mxu2 %v7493_v19  ;;  %3796 = vmatmul.bf16.vlgmr.msra.gmra.mxu3 %v7495_v33 }
 0x337   :  { %3827 = vmatpush.bf16.msrb.mxu2 %v5822_v1  ;;  %3840 = vmatpush.bf16.msrb.mxu3 %v5950_v40  ;;  %v5965_v1 = vld [vmem:[#allocation14 + $0x10] sm:$0xf]  ;;  %v6602_v40 = vld [vmem:[#allocation14 + $0x14] sm:$0xf0] }
 0x338   :  { %3913 = vmatmul.bf16.vlgmr.msra.gmra.mxu0 %v7736_v52  ;;  %3926 = vmatmul.bf16.vlgmr.msra.gmra.mxu1 %v7738_v59  ;;  %v5902_v52 = vor.u32 %v6586_v5, %v5901_v25  ;;  %v5989_v59 = vld [vmem:[#allocation14 + $0x40] sm:$0xf]  ;;  %v6428_v25 = vld [vmem:[#allocation11 + $0x2ac] sm:$0xf]  ;;  %v5279_v5 = vld [vmem:[#allocation11 + $0x2b8] sm:$0xf0] }
 0x339   :  { %4355 = vmatpush.bf16.msrb.mxu0 %v6014_v63  ;;  %v5990_v16 = vor.u32 %v6608_v2, %v5989_v59  ;;  %v5966_v63 = vor.u32 %v6602_v40, %v5965_v1  ;;  %v6007_v59 = vld [vmem:[#allocation14 + $0x68] sm:$0xf0]  ;;  %v5282_v2 = vor.u32 %v6428_v25, %v5279_v5  ;;  %v5250_v40 = vor.u32 %v6420_v31, %v5247_v8  ;;  %v5967_v8 = vld [vmem:[#allocation14 + $0x18] sm:$0xf0] }
 0x33b   :  { %3828 = vmatpush.bf16.msrb.mxu2 %v5806_v20  ;;  %3841 = vmatpush.bf16.msrb.mxu3 %v5934_v30  ;;  %v5710_v20 = vor.u32 %v6538_v23, %v5709_v44  ;;  %v5838_v30 = vor.u32 %v6570_v60, %v5837_v54  ;;  %v5991_v44 = vld [vmem:[#allocation14 + $0x48] sm:$0xf0]  ;;  %v5378_v54 = vor.u32 %v6452_v56, %v5375_v42  ;;  %v6416_v60 = vld [vmem:[#allocation11 + $0x24c] sm:$0xf]  ;;  %v6045_v56 = vld [vmem:[#allocation14 + $0xb0] sm:$0xf] }
 0x33c   :  { %v5994_v17 = vor.u32 %v6607_v24, %v5991_v44  ;;  %v6622_v42 = vld [vmem:[#allocation14 + $0xb4] sm:$0xf0] }
 0x33d   :  { %4356 = vmatpush.bf16.msrb.mxu0 %v6006_v55  ;;  %v6464_v55 = vld [vmem:[#allocation11 + $0x3cc] sm:$0xf]  ;;  %v6046_v36 = vor.u32 %v6622_v42, %v6045_v56  ;;  %v6079_v56 = vld [vmem:[#allocation14 + $0xf8] sm:$0xf0]  ;;  %v6627_v42 = vld [vmem:[#allocation14 + $0xe4] sm:$0xf] }
 0x33f   :  { %3829 = vmatpush.bf16.msrb.mxu2 %v5790_v28  ;;  %3842 = vmatpush.bf16.msrb.mxu3 %v5918_v21  ;;  %v5423_v28 = vld [vmem:[#allocation11 + $0x3d8] sm:$0xf0]  ;;  %v6613_v21 = vld [vmem:[#allocation14 + $0x74] sm:$0xf] }
 0x340   :  { %v5426_v18 = vor.u32 %v6464_v55, %v5423_v28  ;;  %v5343_v55 = vld [vmem:[#allocation11 + $0x338] sm:$0xf0] }
 0x341   :  { %4357 = vmatpush.bf16.msrb.mxu0 %v5998_v39  ;;  %v6460_v39 = vld [vmem:[#allocation11 + $0x3ac] sm:$0xf] }
 0x343   :  { %3830 = vmatpush.bf16.msrb.mxu2 %v5774_v32  ;;  %3843 = vmatpush.bf16.msrb.mxu3 %v5902_v52  ;;  %v5407_v32 = vld [vmem:[#allocation11 + $0x3b8] sm:$0xf0]  ;;  %v6018_v52 = vor.u32 %v6613_v21, %v6015_v45  ;;  %v6061_v21 = vld [vmem:[#allocation14 + $0xd0] sm:$0xf] }
 0x344   :  { %v5410_v57 = vor.u32 %v6460_v39, %v5407_v32  ;;  %v6626_v45 = vld [vmem:[#allocation14 + $0xd4] sm:$0xf0]  ;;  %v7807_v39 = vld [vmem:[#allocation12] sm:$0xf] }
 0x345   :  { %4358 = vmatpush.bf16.msrb.mxu0 %v5990_v16  ;;  %v6456_v16 = vld [vmem:[#allocation11 + $0x38c] sm:$0xf]  ;;  %v2255_v32 = vperm.slane %v7807_v39, 2 }
 0x347   :  { %3831 = vmatpush.bf16.msrb.mxu2 %v5758_v46  ;;  %3844 = vmatpush.bf16.msrb.mxu3 %v5886_v3  ;;  %v5391_v46 = vld [vmem:[#allocation11 + $0x398] sm:$0xf0]  ;;  %v6010_v3 = vor.u32 %v6611_v12, %v6007_v59  ;;  %v6053_v12 = vld [vmem:[#allocation14 + $0xc0] sm:$0xf]  ;;  %v5218_v59 = vor.u32 %v6412_v34, %v5215_v43  ;;  %v6556_v34 = vld [vmem:[#allocation11 + $0x6ac] sm:$0xf] }
 0x349   :  { %4359 = vmatpush.bf16.msrb.mxu0 %v5982_v13  ;;  %v6078_v13 = vor.u32 %v6630_v27, %v6077_v6  ;;  %v6596_v27 = vld [vmem:[#allocation11 + $0x7ec] sm:$0xf] }
 0x34b   :  { %3832 = vmatpush.bf16.msrb.mxu2 %v5742_v15  ;;  %3845 = vmatpush.bf16.msrb.mxu3 %v5870_v14  ;;  %v5266_v15 = vor.u32 %v6424_v50, %v5263_v4  ;;  %v5394_v14 = vor.u32 %v6456_v16, %v5391_v46  ;;  %v6440_v50 = vld [vmem:[#allocation11 + $0x30c] sm:$0xf]  ;;  %v5327_v16 = vld [vmem:[#allocation11 + $0x318] sm:$0xf0] }
 0x34c   :  { %4368 = vmatpush.bf16.msrb.mxu1 %v6078_v13  ;;  %v6624_v4 = vld [vmem:[#allocation14 + $0xc4] sm:$0xf0]  ;;  %v5951_v13 = vld [vmem:[#allocation11 + $0x7f8] sm:$0xf0]  ;;  %v5330_v44 = vor.u32 %v6440_v50, %v5327_v16  ;;  %v6021_v16 = vld [vmem:[#allocation14 + $0x80] sm:$0xf] }
 0x34d   :  { %4360 = vmatpush.bf16.msrb.mxu0 %v5974_v38  ;;  %v6069_v38 = vld [vmem:[#allocation14 + $0xe0] sm:$0xf]  ;;  %v6564_v46 = vld [vmem:[#allocation11 + $0x6ec] sm:$0xf]  ;;  %v6054_v22 = vor.u32 %v6624_v4, %v6053_v12  ;;  %v5903_v50 = vld [vmem:[#allocation11 + $0x798] sm:$0xf0] }
 0x34e   :  { %v6552_v12 = vld [vmem:[#allocation11 + $0x68c] sm:$0xf] }
 0x34f   :  { %3833 = vmatpush.bf16.msrb.mxu2 %v5726_v35  ;;  %3846 = vmatpush.bf16.msrb.mxu3 %v5854_v41  ;;  %v6628_v35 = vld [vmem:[#allocation14 + $0xe4] sm:$0xf0] }
 0x350   :  { %v6070_v1 = vor.u32 %v6628_v35, %v6069_v38  ;;  %v5954_v35 = vor.u32 %v6596_v27, %v5951_v13  ;;  %v6580_v27 = vld [vmem:[#allocation11 + $0x76c] sm:$0xf]  ;;  %v5887_v13 = vld [vmem:[#allocation11 + $0x778] sm:$0xf0] }
 0x351   :  { %4361 = vmatpush.bf16.msrb.mxu0 %v5966_v63  ;;  %v6605_v63 = vld [vmem:[#allocation14 + $0x34] sm:$0xf] }
 0x352   :  { %4369 = vmatpush.bf16.msrb.mxu1 %v6070_v1  ;;  %v6560_v1 = vld [vmem:[#allocation11 + $0x6cc] sm:$0xf] }
 0x353   :  { %3834 = vmatpush.bf16.msrb.mxu2 %v5710_v20  ;;  %3847 = vmatpush.bf16.msrb.mxu3 %v5838_v30  ;;  %v5983_v20 = vld [vmem:[#allocation14 + $0x38] sm:$0xf0] }
 0x354   :  { %v5986_v28 = vor.u32 %v6605_v63, %v5983_v20  ;;  %v6599_v63 = vld [vmem:[#allocation14 + $0x4] sm:$0xf]  ;;  %v5959_v20 = vld [vmem:[#allocation14 + $0x8] sm:$0xf0] }
 0x355   :  { %4362 = vmatpush.bf16.msrb.mxu0 %v5958_v29  ;;  %v7801_v51 = vpop.f32.mrf.mxu0  ;;  %v7803_v47 = vpop.f32.mrf.mxu1  ;;  %v6603_v29 = vld [vmem:[#allocation14 + $0x24] sm:$0xf] }
 0x356   :  { %3835 = vmatmul.bf16.vlgmr.msrb.gmra.mxu2 %v7776_v37  ;;  %3848 = vmatmul.bf16.vlgmr.msrb.gmra.mxu3 %v7778_v49 }
 0x357   :  { %3879 = vmatpush.bf16.msra.mxu2 %v5314_v10  ;;  %3892 = vmatpush.bf16.msra.mxu3 %v5442_v58  ;;  %v5234_v58 = vor.u32 %v6416_v60, %v5231_v61  ;;  %v5935_v60 = vld [vmem:[#allocation11 + $0x7d8] sm:$0xf0] }
 0x359   :  { %4407 = vmatpush.bf16.msra.mxu0 %v6018_v52  ;;  %v3602_v41 = vpop.f32.mrf.mxu2  ;;  %v7805_v23 = vpop.f32.mrf.mxu3  ;;  %v6408_v52 = vld [vmem:[#allocation11 + $0x20c] sm:$0xf] }
 0x35a   :  { %v3603_v6 = vadd.f32 %v3602_v41, %v7785_v53 }
 0x35b   :  { %3880 = vmatpush.bf16.msra.mxu2 %v5298_v48  ;;  %3893 = vmatpush.bf16.msra.mxu3 %v5426_v18  ;;  %v5975_v48 = vld [vmem:[#allocation14 + $0x28] sm:$0xf0]  ;;  %v6062_v18 = vor.u32 %v6626_v45, %v6061_v21  ;;  %v5962_v21 = vor.u32 %v6599_v63, %v5959_v20  ;;  %v6540_v63 = vld [vmem:[#allocation11 + $0x62c] sm:$0xf]  ;;  %v5727_v20 = vld [vmem:[#allocation11 + $0x638] sm:$0xf0] }
 0x35c   :  { %v5978_v62 = vor.u32 %v6603_v29, %v5975_v48  ;;  %v3616_v53 = vadd.f32 %v7805_v23, %v3603_v6  ;;  %v5759_v6 = vld [vmem:[#allocation11 + $0x678] sm:$0xf0] }
 0x35d   :  { %4408 = vmatpush.bf16.msra.mxu0 %v6010_v3  ;;  %v3708_v30 = vpop.f32.mrf.mxu0  ;;  %v3721_v10 = vpop.f32.mrf.mxu1  ;;  %v5823_v3 = vld [vmem:[#allocation11 + $0x6f8] sm:$0xf0]  ;;  %4370 = vmatpush.bf16.msrb.mxu1 %v6062_v18  ;;  %v6029_v18 = vld [vmem:[#allocation14 + $0x90] sm:$0xf] }
 0x35e   :  { %v5826_v38 = vor.u32 %v6564_v46, %v5823_v3  ;;  %v6037_v10 = vld [vmem:[#allocation14 + $0xa0] sm:$0xf]  ;;  %v6616_v46 = vld [vmem:[#allocation14 + $0x84] sm:$0xf0] }
 0x35f   :  { %3881 = vmatpush.bf16.msra.mxu2 %v5282_v2  ;;  %3894 = vmatpush.bf16.msra.mxu3 %v5410_v57  ;;  %v5346_v2 = vor.u32 %v6444_v7, %v5343_v55  ;;  %v5199_v57 = vld [vmem:[#allocation11 + $0x218] sm:$0xf0]  ;;  %v6588_v55 = vld [vmem:[#allocation11 + $0x7ac] sm:$0xf] }
 0x360   :  { %v5202_v24 = vor.u32 %v6408_v52, %v5199_v57  ;;  %v5791_v7 = vld [vmem:[#allocation11 + $0x6b8] sm:$0xf0]  ;;  %v6584_v57 = vld [vmem:[#allocation11 + $0x78c] sm:$0xf] }
 0x361   :  { %4409 = vmatpush.bf16.msra.mxu0 %v6002_v11  ;;  %v3604_v25 = vpop.f32.mrf.mxu2  ;;  %v3617_v5 = vpop.f32.mrf.mxu3  ;;  %4371 = vmatpush.bf16.msrb.mxu1 %v6054_v22  ;;  %v6548_v22 = vld [vmem:[#allocation11 + $0x66c] sm:$0xf] }
 0x362   :  { %v6618_v25 = vld [vmem:[#allocation14 + $0x94] sm:$0xf0] }
 0x363   :  { %3882 = vmatpush.bf16.msra.mxu2 %v5266_v15  ;;  %3895 = vmatpush.bf16.msra.mxu3 %v5394_v14  ;;  %v6601_v15 = vld [vmem:[#allocation14 + $0x14] sm:$0xf] }
 0x364   :  { %v5970_v61 = vor.u32 %v6601_v15, %v5967_v8  ;;  %v6022_v15 = vor.u32 %v6616_v46, %v6021_v16  ;;  %v6629_v8 = vld [vmem:[#allocation14 + $0xf4] sm:$0xf] }
 0x365   :  { %4410 = vmatpush.bf16.msra.mxu0 %v5994_v17  ;;  %v3758_v14 = vpop.f32.mrf.mxu0  ;;  %v3771_v31 = vpop.f32.mrf.mxu1  ;;  %4372 = vmatpush.bf16.msrb.mxu1 %v6046_v36  ;;  %v6617_v16 = vld [vmem:[#allocation14 + $0x94] sm:$0xf] }
 0x366   :  { %v3759_v11 = vadd.f32 %v3758_v14, %v2255_v32  ;;  %v5794_v32 = vor.u32 %v6556_v34, %v5791_v7  ;;  %v5730_v34 = vor.u32 %v6540_v63, %v5727_v20  ;;  %v6063_v7 = vld [vmem:[#allocation14 + $0xd8] sm:$0xf0]  ;;  %v6109_v63 = vld [vmem:[#allocation14 + $0x130] sm:$0xf]  ;;  %v6638_v20 = vld [vmem:[#allocation14 + $0x134] sm:$0xf0] }
 0x367   :  { %3883 = vmatpush.bf16.msra.mxu2 %v5250_v40  ;;  %3896 = vmatpush.bf16.msra.mxu3 %v5378_v54  ;;  %v5807_v40 = vld [vmem:[#allocation11 + $0x6d8] sm:$0xf0]  ;;  %v6592_v54 = vld [vmem:[#allocation11 + $0x7cc] sm:$0xf] }
 0x368   :  { %v7812_v41 = vadd.f32 %v3771_v31, %v3759_v11  ;;  %v5938_v23 = vor.u32 %v6592_v54, %v5935_v60  ;;  %v5762_v11 = vor.u32 %v6548_v22, %v5759_v6  ;;  %v2256_v22 = vperm.slane %v7807_v39, 3  ;;  %v6141_v6 = vld [vmem:[#allocation14 + $0x170] sm:$0xf] }
 0x369   :  { %4411 = vmatpush.bf16.msra.mxu0 %v5986_v28  ;;  %v3628_v0 = vpop.f32.mrf.mxu2  ;;  %v3641_v17 = vpop.f32.mrf.mxu3  ;;  %v5919_v28 = vld [vmem:[#allocation11 + $0x7b8] sm:$0xf0]  ;;  %v6125_v39 = vld [vmem:[#allocation14 + $0x150] sm:$0xf] }
 0x36a   :  { %v3629_v30 = vadd.f32 %v3628_v0, %v3616_v53  ;;  %v5922_v52 = vor.u32 %v6588_v55, %v5919_v28  ;;  %v6576_v53 = vld [vmem:[#allocation11 + $0x74c] sm:$0xf] }
 0x36b   :  { %3884 = vmatpush.bf16.msra.mxu2 %v5234_v58  ;;  %3897 = vmatpush.bf16.msra.mxu3 %v5362_v26  ;;  %v6620_v58 = vld [vmem:[#allocation14 + $0xa4] sm:$0xf0]  ;;  %v5810_v26 = vor.u32 %v6560_v1, %v5807_v40  ;;  %v5743_v1 = vld [vmem:[#allocation11 + $0x658] sm:$0xf0] }
 0x36c   :  { %v3642_v43 = vadd.f32 %v3641_v17, %v3629_v30  ;;  %v6038_v45 = vor.u32 %v6620_v58, %v6037_v10  ;;  %v5871_v40 = vld [vmem:[#allocation11 + $0x758] sm:$0xf0]  ;;  %v6572_v30 = vld [vmem:[#allocation11 + $0x72c] sm:$0xf] }
 0x36d   :  { %4412 = vmatpush.bf16.msra.mxu0 %v5978_v62  ;;  %v3760_v29 = vpop.f32.mrf.mxu0  ;;  %v3773_v48 = vpop.f32.mrf.mxu1  ;;  %v5906_v62 = vor.u32 %v6584_v57, %v5903_v50  ;;  %v5874_v17 = vor.u32 %v6576_v53, %v5871_v40  ;;  %v5855_v10 = vld [vmem:[#allocation11 + $0x738] sm:$0xf0]  ;;  %v6117_v53 = vld [vmem:[#allocation14 + $0x140] sm:$0xf] }
 0x36e   :  { %v3957_v5 = vmax.f32 %v3642_v43, 0.0  ;;  %4373 = vmatpush.bf16.msrb.mxu1 %v6038_v45  ;;  %v6625_v43 = vld [vmem:[#allocation14 + $0xd4] sm:$0xf]  ;;  %v5858_v28 = vor.u32 %v6572_v30, %v5855_v10  ;;  %v6623_v45 = vld [vmem:[#allocation14 + $0xc4] sm:$0xf] }
 0x36f   :  { %3885 = vmatpush.bf16.msra.mxu2 %v5218_v59  ;;  %3898 = vmatpush.bf16.msra.mxu3 %v5346_v2  ;;  %v5775_v2 = vld [vmem:[#allocation11 + $0x698] sm:$0xf0]  ;;  %v6055_v29 = vld [vmem:[#allocation14 + $0xc8] sm:$0xf0] }
 0x370   :  { %v7816_v59 = vpack.c.bf16 %v3957_v5, %v3957_v5  ;;  %v5778_v3 = vor.u32 %v6552_v12, %v5775_v2  ;;  %v5711_v48 = vld [vmem:[#allocation11 + $0x618] sm:$0xf0]  ;;  %v6621_v2 = vld [vmem:[#allocation14 + $0xb4] sm:$0xf] }
 0x371   :  { %4413 = vmatpush.bf16.msra.mxu0 %v5970_v61  ;;  %v3630_v4 = vpop.f32.mrf.mxu2 }
 0x372   :  { %4363 = vmatmul.bf16.vlgmr.msrb.gmra.mxu0 %v7816_v59  ;;  %v6619_v4 = vld [vmem:[#allocation14 + $0xa4] sm:$0xf] }
 0x373   :  { %3886 = vmatpush.bf16.msra.mxu2 %v5202_v24  ;;  %3899 = vmatpush.bf16.msra.mxu3 %v5330_v44  ;;  %v5890_v24 = vor.u32 %v6580_v27, %v5887_v13  ;;  %v6544_v44 = vld [vmem:[#allocation11 + $0x64c] sm:$0xf]  ;;  %v6646_v27 = vld [vmem:[#allocation14 + $0x174] sm:$0xf0] }
 0x374   :  { %v5746_v0 = vor.u32 %v6544_v44, %v5743_v1  ;;  %v6642_v1 = vld [vmem:[#allocation14 + $0x154] sm:$0xf0] }
 0x375   :  { %4414 = vmatpush.bf16.msra.mxu0 %v5962_v21  ;;  %v7819_v14 = vpop.f32.mrf.mxu0  ;;  %v7821_v31 = vpop.f32.mrf.mxu1  ;;  %v6536_v21 = vld [vmem:[#allocation11 + $0x60c] sm:$0xf] }
 0x376   :  { %3887 = vmatmul.bf16.vlgmr.msra.gmra.mxu2 %v7493_v19  ;;  %3900 = vmatmul.bf16.vlgmr.msra.gmra.mxu3 %v7495_v33  ;;  %v6030_v19 = vor.u32 %v6618_v25, %v6029_v18  ;;  %v3643_v33 = vpop.f32.mrf.mxu3  ;;  %v6568_v18 = vld [vmem:[#allocation11 + $0x70c] sm:$0xf]  ;;  %v5839_v25 = vld [vmem:[#allocation11 + $0x718] sm:$0xf0]  ;;  %v5714_v57 = vor.u32 %v6536_v21, %v5711_v48  ;;  %v6085_v21 = vld [vmem:[#allocation14 + $0x100] sm:$0xf] }
 0x377   :  { %3931 = vmatpush.bf16.msrb.mxu2 %v5826_v38  ;;  %3944 = vmatpush.bf16.msrb.mxu3 %v5954_v35  ;;  %v6082_v38 = vor.u32 %v6629_v8, %v6079_v56  ;;  %v6071_v35 = vld [vmem:[#allocation14 + $0xe8] sm:$0xf0]  ;;  %v5842_v50 = vor.u32 %v6568_v18, %v5839_v25  ;;  %v6133_v8 = vld [vmem:[#allocation14 + $0x160] sm:$0xf]  ;;  %v6644_v56 = vld [vmem:[#allocation14 + $0x164] sm:$0xf0] }
 0x378   :  { %4374 = vmatpush.bf16.msrb.mxu1 %v6030_v19  ;;  %v6074_v54 = vor.u32 %v6627_v42, %v6071_v35  ;;  %v6039_v33 = vld [vmem:[#allocation14 + $0xa8] sm:$0xf0]  ;;  %v6643_v25 = vld [vmem:[#allocation14 + $0x164] sm:$0xf] }
 0x379   :  { %v3680_v60 = vpop.f32.mrf.mxu2 }
 0x37a   :  { %v3681_v36 = vadd.f32 %v3680_v60, %v7747_v9  ;;  %v6066_v9 = vor.u32 %v6625_v43, %v6063_v7  ;;  %v6093_v7 = vld [vmem:[#allocation14 + $0x110] sm:$0xf] }
 0x37b   :  { %3932 = vmatpush.bf16.msrb.mxu2 %v5810_v26  ;;  %3945 = vmatpush.bf16.msrb.mxu3 %v5938_v23 }
 0x37c   :  { %4375 = vmatpush.bf16.msrb.mxu1 %v6022_v15  ;;  %v6142_v15 = vor.u32 %v6646_v27, %v6141_v6  ;;  %v6637_v6 = vld [vmem:[#allocation14 + $0x134] sm:$0xf]  ;;  %v6111_v27 = vld [vmem:[#allocation14 + $0x138] sm:$0xf0] }
 0x37d   :  { %v3812_v26 = vpop.f32.mrf.mxu0  ;;  %v3825_v23 = vpop.f32.mrf.mxu1 }
 0x37e   :  { %v3693_v61 = vpop.f32.mrf.mxu3  ;;  %v6110_v26 = vor.u32 %v6638_v20, %v6109_v63  ;;  %v6101_v23 = vld [vmem:[#allocation14 + $0x120] sm:$0xf] }
 0x37f   :  { %3933 = vmatpush.bf16.msrb.mxu2 %v5794_v32  ;;  %3946 = vmatpush.bf16.msrb.mxu3 %v5922_v52  ;;  %v3694_v58 = vadd.f32 %v3693_v61, %v3681_v36  ;;  %v6058_v32 = vor.u32 %v6623_v45, %v6055_v29  ;;  %v6126_v61 = vor.u32 %v6642_v1, %v6125_v39  ;;  %v6640_v36 = vld [vmem:[#allocation14 + $0x144] sm:$0xf0]  ;;  %v6645_v45 = vld [vmem:[#allocation14 + $0x174] sm:$0xf]  ;;  %v6143_v29 = vld [vmem:[#allocation14 + $0x178] sm:$0xf0] }
 0x380   :  { %4420 = vmatpush.bf16.msra.mxu1 %v6082_v38  ;;  %v6146_v18 = vor.u32 %v6645_v45, %v6143_v29  ;;  %v6197_v1 = vld [vmem:[#allocation14 + $0x1e0] sm:$0xf]  ;;  %v6157_v45 = vld [vmem:[#allocation14 + $0x190] sm:$0xf]  ;;  %v6650_v29 = vld [vmem:[#allocation14 + $0x194] sm:$0xf0] }
 0x381   :  { %v3707_v55 = vadd.f32 %v7801_v51, %v3694_v58  ;;  %v3682_v52 = vpop.f32.mrf.mxu2  ;;  %v6047_v51 = vld [vmem:[#allocation14 + $0xb8] sm:$0xf0]  ;;  %v6181_v20 = vld [vmem:[#allocation14 + $0x1c0] sm:$0xf] }
 0x382   :  { %4415 = vmatmul.bf16.vlgmr.msra.gmra.mxu0 %v7816_v59  ;;  %v6050_v19 = vor.u32 %v6621_v2, %v6047_v51  ;;  %v6031_v59 = vld [vmem:[#allocation14 + $0x98] sm:$0xf0] }
 0x383   :  { %3934 = vmatpush.bf16.msrb.mxu2 %v5778_v3  ;;  %3947 = vmatpush.bf16.msrb.mxu3 %v5906_v62  ;;  %v3720_v5 = vadd.f32 %v7803_v47, %v3707_v55  ;;  %v6042_v47 = vor.u32 %v6619_v4, %v6039_v33  ;;  %v6034_v46 = vor.u32 %v6617_v16, %v6031_v59  ;;  %v6615_v3 = vld [vmem:[#allocation14 + $0x84] sm:$0xf]  ;;  %v6023_v62 = vld [vmem:[#allocation14 + $0x88] sm:$0xf0]  ;;  %v6634_v55 = vld [vmem:[#allocation14 + $0x114] sm:$0xf0] }
 0x384   :  { %4421 = vmatpush.bf16.msra.mxu1 %v6074_v54  ;;  %v6026_v13 = vor.u32 %v6615_v3, %v6023_v62  ;;  %v6641_v33 = vld [vmem:[#allocation14 + $0x154] sm:$0xf]  ;;  %v6119_v3 = vld [vmem:[#allocation14 + $0x148] sm:$0xf0] }
 0x386   :  { %v3695_v12 = vpop.f32.mrf.mxu3 }
 0x387   :  { %3935 = vmatpush.bf16.msrb.mxu2 %v5762_v11  ;;  %3948 = vmatpush.bf16.msrb.mxu3 %v5890_v24 }
 0x388   :  { %4422 = vmatpush.bf16.msra.mxu1 %v6066_v9  ;;  %v6632_v9 = vld [vmem:[#allocation14 + $0x104] sm:$0xf0] }
 0x389   :  { %v6086_v48 = vor.u32 %v6632_v9, %v6085_v21  ;;  %v6652_v21 = vld [vmem:[#allocation14 + $0x1a4] sm:$0xf0] }
 0x38b   :  { %3936 = vmatpush.bf16.msrb.mxu2 %v5746_v0  ;;  %3949 = vmatpush.bf16.msrb.mxu3 %v5874_v17  ;;  %v6118_v17 = vor.u32 %v6640_v36, %v6117_v53  ;;  %v6660_v53 = vld [vmem:[#allocation14 + $0x1e4] sm:$0xf0]  ;;  %v6189_v36 = vld [vmem:[#allocation14 + $0x1d0] sm:$0xf] }
 0x38c   :  { %4423 = vmatpush.bf16.msra.mxu1 %v6058_v32 }
 0x38f   :  { %3937 = vmatpush.bf16.msrb.mxu2 %v5730_v34  ;;  %3950 = vmatpush.bf16.msrb.mxu3 %v5858_v28  ;;  %v6636_v34 = vld [vmem:[#allocation14 + $0x124] sm:$0xf0]  ;;  %v6094_v28 = vor.u32 %v6634_v55, %v6093_v7 }
 0x390   :  { %4424 = vmatpush.bf16.msra.mxu1 %v6050_v19  ;;  %v6102_v43 = vor.u32 %v6636_v34, %v6101_v23  ;;  %v6654_v23 = vld [vmem:[#allocation14 + $0x1b4] sm:$0xf0] }
 0x393   :  { %3938 = vmatpush.bf16.msrb.mxu2 %v5714_v57  ;;  %3951 = vmatpush.bf16.msrb.mxu3 %v5842_v50 }
 0x394   :  { %4425 = vmatpush.bf16.msra.mxu1 %v6042_v47  ;;  %v6127_v47 = vld [vmem:[#allocation14 + $0x158] sm:$0xf0] }
 0x395   :  { %v3862_v42 = vpop.f32.mrf.mxu0  ;;  %v3875_v11 = vpop.f32.mrf.mxu1  ;;  %v6130_v16 = vor.u32 %v6641_v33, %v6127_v47 }
 0x396   :  { %3939 = vmatmul.bf16.vlgmr.msrb.gmra.mxu2 %v7776_v37  ;;  %3952 = vmatmul.bf16.vlgmr.msrb.gmra.mxu3 %v7778_v49  ;;  %v6134_v37 = vor.u32 %v6644_v56, %v6133_v8  ;;  %v3863_v49 = vadd.f32 %v3862_v42, %v2256_v22  ;;  %v6114_v8 = vor.u32 %v6637_v6, %v6111_v27  ;;  %v6662_v56 = vld [vmem:[#allocation14 + $0x1f4] sm:$0xf0]  ;;  %v6635_v42 = vld [vmem:[#allocation14 + $0x124] sm:$0xf]  ;;  %v6183_v6 = vld [vmem:[#allocation14 + $0x1c8] sm:$0xf0] }
 0x397   :  { %4381 = vmatpush.bf16.msra.mxu2 %v6142_v15 }
 0x398   :  { %4426 = vmatpush.bf16.msra.mxu1 %v6034_v46  ;;  %v7830_v24 = vadd.f32 %v3875_v11, %v3863_v49  ;;  %v6639_v46 = vld [vmem:[#allocation14 + $0x144] sm:$0xf]  ;;  %v6103_v11 = vld [vmem:[#allocation14 + $0x128] sm:$0xf0]  ;;  %v6633_v49 = vld [vmem:[#allocation14 + $0x114] sm:$0xf] }
 0x399   :  { %v3732_v44 = vpop.f32.mrf.mxu2  ;;  %v3745_v38 = vpop.f32.mrf.mxu3  ;;  %v6122_v62 = vor.u32 %v6639_v46, %v6119_v3  ;;  %v6191_v46 = vld [vmem:[#allocation14 + $0x1d8] sm:$0xf0] }
 0x39a   :  { %v3733_v35 = vadd.f32 %v3732_v44, %v3720_v5  ;;  %v6135_v5 = vld [vmem:[#allocation14 + $0x168] sm:$0xf0]  ;;  %v6095_v44 = vld [vmem:[#allocation14 + $0x118] sm:$0xf0] }
 0x39b   :  { %4382 = vmatpush.bf16.msra.mxu2 %v6134_v37  ;;  %v6138_v12 = vor.u32 %v6643_v25, %v6135_v5  ;;  %v6648_v25 = vld [vmem:[#allocation14 + $0x184] sm:$0xf0]  ;;  %v6661_v5 = vld [vmem:[#allocation14 + $0x1f4] sm:$0xf] }
 0x39c   :  { %4427 = vmatpush.bf16.msra.mxu1 %v6026_v13  ;;  %v3746_v40 = vadd.f32 %v3745_v38, %v3733_v35  ;;  %v6098_v38 = vor.u32 %v6633_v49, %v6095_v44  ;;  %v6631_v35 = vld [vmem:[#allocation14 + $0x104] sm:$0xf] }
 0x39d   :  { %v3864_v54 = vpop.f32.mrf.mxu0  ;;  %v3877_v60 = vpop.f32.mrf.mxu1 }
 0x39e   :  { %v3958_v0 = vmax.f32 %v3746_v40, 0.0  ;;  %v6198_v40 = vor.u32 %v6660_v53, %v6197_v1 }
 0x39f   :  { %4383 = vmatpush.bf16.msra.mxu2 %v6126_v61 }
 0x3a0   :  { %v3962_v30 = vpack.c.bf16 %v3958_v0, %v3958_v0  ;;  %v6658_v0 = vld [vmem:[#allocation14 + $0x1d4] sm:$0xf0] }
 0x3a1   :  { %v3734_v10 = vpop.f32.mrf.mxu2  ;;  %v3747_v58 = vpop.f32.mrf.mxu3  ;;  %v6190_v63 = vor.u32 %v6658_v0, %v6189_v36 }
 0x3a2   :  { %4376 = vmatmul.bf16.vlgmr.msrb.gmra.mxu1 %v3962_v30 }
 0x3a3   :  { %4384 = vmatpush.bf16.msra.mxu2 %v6118_v17 }
 0x3a7   :  { %4385 = vmatpush.bf16.msra.mxu2 %v6110_v26  ;;  %v6173_v26 = vld [vmem:[#allocation14 + $0x1b0] sm:$0xf] }
 0x3a8   :  { %v6174_v55 = vor.u32 %v6654_v23, %v6173_v26 }
 0x3ab   :  { %4386 = vmatpush.bf16.msra.mxu2 %v6102_v43 }
 0x3af   :  { %4387 = vmatpush.bf16.msra.mxu2 %v6094_v28  ;;  %v6165_v28 = vld [vmem:[#allocation14 + $0x1a0] sm:$0xf] }
 0x3b0   :  { %v6166_v9 = vor.u32 %v6652_v21, %v6165_v28  ;;  %v6670_v28 = vld [vmem:[%s7907_s11 + $0x38] sm:$0xff] }
 0x3b1   :  { %v6678_v21 = vld [vmem:[%s7907_s11 + $0x78] sm:$0xff]  ;;  %4595 = vmatpush.bf16.msrb.mxu0 %v6670_v28 }
 0x3b2   :  { %4428 = vmatmul.bf16.vlgmr.msra.gmra.mxu1 %v3962_v30  ;;  %v6656_v30 = vld [vmem:[#allocation14 + $0x1c4] sm:$0xf0] }
 0x3b3   :  { %4388 = vmatpush.bf16.msra.mxu2 %v6086_v48  ;;  %v6182_v58 = vor.u32 %v6656_v30, %v6181_v20  ;;  %v6158_v48 = vor.u32 %v6650_v29, %v6157_v45  ;;  %4608 = vmatpush.bf16.msrb.mxu1 %v6678_v21  ;;  %v6677_v45 = vld [vmem:[%s7907_s11 + $0x70] sm:$0xff]  ;;  %v6668_v29 = vld [vmem:[%s7907_s11 + $0x28] sm:$0xff] }
 0x3b5   :  { %v7832_v32 = vpop.f32.mrf.mxu0  ;;  %v7834_v52 = vpop.f32.mrf.mxu1 }
 0x3b7   :  { %4433 = vmatpush.bf16.msrb.mxu2 %v6146_v18  ;;  %v6149_v18 = vld [vmem:[#allocation14 + $0x180] sm:$0xf]  ;;  %4609 = vmatpush.bf16.msrb.mxu1 %v6677_v45 }
 0x3b9   :  { %v3784_v2 = vpop.f32.mrf.mxu2  ;;  %v3797_v51 = vpop.f32.mrf.mxu3 }
 0x3ba   :  { %v3785_v57 = vadd.f32 %v3784_v2, %v7812_v41  ;;  %v6205_v41 = vld [vmem:[#allocation14 + $0x1f0] sm:$0xf]  ;;  %v6150_v2 = vor.u32 %v6648_v25, %v6149_v18  ;;  %v6666_v25 = vld [vmem:[%s7907_s11 + $0x18] sm:$0xff] }
 0x3bb   :  { %4434 = vmatpush.bf16.msrb.mxu2 %v6138_v12  ;;  %v6206_v37 = vor.u32 %v6662_v56, %v6205_v41  ;;  %v6207_v12 = vld [vmem:[#allocation14 + $0x1f8] sm:$0xf0]  ;;  %v6667_v18 = vld [vmem:[%s7907_s11 + $0x20] sm:$0xff] }
 0x3bc   :  { %v3798_v50 = vadd.f32 %v3797_v51, %v3785_v57  ;;  %v6210_v51 = vor.u32 %v6661_v5, %v6207_v12  ;;  %v6659_v57 = vld [vmem:[#allocation14 + $0x1e4] sm:$0xf]  ;;  %v6175_v41 = vld [vmem:[#allocation14 + $0x1b8] sm:$0xf0] }
 0x3bd   :  { %v3916_v19 = vpop.f32.mrf.mxu0  ;;  %v3929_v4 = vpop.f32.mrf.mxu1  ;;  %4394 = vmatpush.bf16.msra.mxu3 %v6206_v37  ;;  %v6651_v37 = vld [vmem:[#allocation14 + $0x1a4] sm:$0xf] }
 0x3be   :  { %v3811_v59 = vadd.f32 %v7819_v14, %v3798_v50  ;;  %v6106_v14 = vor.u32 %v6635_v42, %v6103_v11  ;;  %v6199_v50 = vld [vmem:[#allocation14 + $0x1e8] sm:$0xf0]  ;;  %v6665_v12 = vld [vmem:[%s7907_s11 + $0x10] sm:$0xff] }
 0x3bf   :  { %4435 = vmatpush.bf16.msrb.mxu2 %v6130_v16  ;;  %v6202_v19 = vor.u32 %v6659_v57, %v6199_v50  ;;  %v6664_v57 = vld [vmem:[%s7907_s11 + $0x8] sm:$0xff] }
 0x3c0   :  { %v3824_v22 = vadd.f32 %v7821_v31, %v3811_v59  ;;  %v6087_v31 = vld [vmem:[#allocation14 + $0x108] sm:$0xf0]  ;;  %v6657_v59 = vld [vmem:[#allocation14 + $0x1d4] sm:$0xf]  ;;  %v6676_v50 = vld [vmem:[%s7907_s11 + $0x68] sm:$0xff] }
 0x3c1   :  { %v3786_v13 = vpop.f32.mrf.mxu2  ;;  %v3799_v15 = vpop.f32.mrf.mxu3  ;;  %v6090_v39 = vor.u32 %v6631_v35, %v6087_v31  ;;  %4395 = vmatpush.bf16.msra.mxu3 %v6198_v40  ;;  %v6159_v35 = vld [vmem:[#allocation14 + $0x198] sm:$0xf0]  ;;  %v6647_v31 = vld [vmem:[#allocation14 + $0x184] sm:$0xf]  ;;  %4610 = vmatpush.bf16.msrb.mxu1 %v6676_v50 }
 0x3c2   :  { %v6653_v15 = vld [vmem:[#allocation14 + $0x1b4] sm:$0xf] }
 0x3c3   :  { %4436 = vmatpush.bf16.msrb.mxu2 %v6122_v62  ;;  %v6194_v62 = vor.u32 %v6657_v59, %v6191_v46  ;;  %v6671_v59 = vld [vmem:[%s7907_s11 + $0x40] sm:$0xff] }
 0x3c5   :  { %4396 = vmatpush.bf16.msra.mxu3 %v6190_v63  ;;  %v4029_v63 = vld [vmem:[#allocation15] sm:$0x3] }
 0x3c6   :  { %v4031_v20 = vperm.slane %v4029_v63, 0  ;;  %v4032_v23 = vperm.slane %v4029_v63, 1 }
 0x3c7   :  { %4437 = vmatpush.bf16.msrb.mxu2 %v6114_v8 }
 0x3c9   :  { %4397 = vmatpush.bf16.msra.mxu3 %v6182_v58 }
 0x3cb   :  { %4438 = vmatpush.bf16.msrb.mxu2 %v6106_v14  ;;  %v6167_v14 = vld [vmem:[#allocation14 + $0x1a8] sm:$0xf0] }
 0x3cc   :  { %v6170_v49 = vor.u32 %v6651_v37, %v6167_v14  ;;  %v6697_v37 = vld [vmem:[%s7908_s12] ss:$0 sm:$0xff] }
 0x3cd   :  { %4398 = vmatpush.bf16.msra.mxu3 %v6174_v55 }
 0x3cf   :  { %4439 = vmatpush.bf16.msrb.mxu2 %v6098_v38  ;;  %v6649_v38 = vld [vmem:[#allocation14 + $0x194] sm:$0xf] }
 0x3d1   :  { %4399 = vmatpush.bf16.msra.mxu3 %v6166_v9  ;;  %v6669_v9 = vld [vmem:[%s7907_s11 + $0x30] sm:$0xff] }
 0x3d2   :  { %4596 = vmatpush.bf16.msrb.mxu0 %v6669_v9 }
 0x3d3   :  { %4440 = vmatpush.bf16.msrb.mxu2 %v6090_v39  ;;  %v6151_v39 = vld [vmem:[#allocation14 + $0x188] sm:$0xf0] }
 0x3d4   :  { %v6154_v1 = vor.u32 %v6647_v31, %v6151_v39 }
 0x3d5   :  { %4400 = vmatpush.bf16.msra.mxu3 %v6158_v48 }
 0x3d6   :  { %4597 = vmatpush.bf16.msrb.mxu0 %v6668_v29 }
 0x3d9   :  { %v3836_v54 = vpop.f32.mrf.mxu2  ;;  %v3849_v60 = vpop.f32.mrf.mxu3  ;;  %4401 = vmatpush.bf16.msra.mxu3 %v6150_v2 }
 0x3da   :  { %v3837_v61 = vadd.f32 %v3836_v54, %v3824_v22  ;;  %v6655_v22 = vld [vmem:[#allocation14 + $0x1c4] sm:$0xf]  ;;  %4598 = vmatpush.bf16.msrb.mxu0 %v6667_v18 }
 0x3db   :  { %v6186_v13 = vor.u32 %v6655_v22, %v6183_v6 }
 0x3dc   :  { %v3850_v17 = vadd.f32 %v3849_v60, %v3837_v61 }
 0x3dd   :  { %4446 = vmatpush.bf16.msrb.mxu3 %v6210_v51 }
 0x3de   :  { %v3959_v10 = vmax.f32 %v3850_v17, 0.0  ;;  %4599 = vmatpush.bf16.msrb.mxu0 %v6666_v25 }
 0x3e0   :  { %v3963_v34 = vpack.c.bf16 %v3959_v10, %v3959_v10 }
 0x3e1   :  { %v3838_v43 = vpop.f32.mrf.mxu2  ;;  %v3851_v7 = vpop.f32.mrf.mxu3  ;;  %4447 = vmatpush.bf16.msrb.mxu3 %v6202_v19  ;;  %v6663_v19 = vld [vmem:[%s7907_s11] sm:$0xff] }
 0x3e2   :  { %4389 = vmatmul.bf16.vlgmr.msra.gmra.mxu2 %v3963_v34  ;;  %4600 = vmatpush.bf16.msrb.mxu0 %v6665_v12 }
 0x3e5   :  { %4448 = vmatpush.bf16.msrb.mxu3 %v6194_v62 }
 0x3e6   :  { %4601 = vmatpush.bf16.msrb.mxu0 %v6664_v57 }
 0x3e9   :  { %4449 = vmatpush.bf16.msrb.mxu3 %v6186_v13 }
 0x3ea   :  { %4602 = vmatpush.bf16.msrb.mxu0 %v6663_v19 }
 0x3ef   :  { %v4364_v4 = vpop.f32.mrf.mxu0 }
 0x3f0   :  { %v4365_v30 = vadd.f32 %v4364_v4, %v4031_v20  ;;  %v6675_v4 = vld [vmem:[%s7907_s11 + $0x60] sm:$0xff] }
 0x3f1   :  { %4611 = vmatpush.bf16.msrb.mxu1 %v6675_v4 }
 0x3f2   :  { %4441 = vmatmul.bf16.vlgmr.msrb.gmra.mxu2 %v3963_v34 }
 0x3f7   :  { %v4366_v8 = vpop.f32.mrf.mxu0 }
 0x3f9   :  { %v3888_v33 = vpop.f32.mrf.mxu2  ;;  %v3901_v47 = vpop.f32.mrf.mxu3 }
 0x3fa   :  { %v3889_v16 = vadd.f32 %v3888_v33, %v7830_v24  ;;  %v6178_v24 = vor.u32 %v6653_v15, %v6175_v41  ;;  %v6674_v33 = vld [vmem:[%s7907_s11 + $0x58] sm:$0xff] }
 0x3fb   :  { %4612 = vmatpush.bf16.msrb.mxu1 %v6674_v33 }
 0x3fc   :  { %v3902_v3 = vadd.f32 %v3901_v47, %v3889_v16  ;;  %4450 = vmatpush.bf16.msrb.mxu3 %v6178_v24  ;;  %v6673_v47 = vld [vmem:[%s7907_s11 + $0x50] sm:$0xff]  ;;  %v6672_v16 = vld [vmem:[%s7907_s11 + $0x48] sm:$0xff]  ;;  %s6942_s11 = smov [#allocation17]  }
 0x3fd   :  { %s4627_s7 = sshll.u32 %s6942_s11, 4  ;;  %s4628_s7 = int_to_ptr.vmem [resolvable:$true] %s4627_s7 }
 0x3fe   :  { %v3915_v27 = vadd.f32 %v7832_v32, %v3902_v3  ;;  %v6162_v32 = vor.u32 %v6649_v38, %v6159_v35 }
 0x3ff   :  { %v4416_v44 = vpop.f32.mrf.mxu0  ;;  %4613 = vmatpush.bf16.msrb.mxu1 %v6673_v47 }
 0x400   :  { %v3928_v56 = vadd.f32 %v7834_v52, %v3915_v27  ;;  %4451 = vmatpush.bf16.msrb.mxu3 %v6170_v49  ;;  %v4417_v34 = vadd.f32 %v4416_v44, %v4032_v23 }
 0x401   :  { %v3890_v42 = vpop.f32.mrf.mxu2  ;;  %v3903_v11 = vpop.f32.mrf.mxu3 }
 0x403   :  { %4614 = vmatpush.bf16.msrb.mxu1 %v6672_v16 }
 0x404   :  { %4452 = vmatpush.bf16.msrb.mxu3 %v6162_v32 }
 0x407   :  { %v4418_v53 = vpop.f32.mrf.mxu0  ;;  %4615 = vmatpush.bf16.msrb.mxu1 %v6671_v59 }
 0x408   :  { %4453 = vmatpush.bf16.msrb.mxu3 %v6154_v1 }
 0x419   :  { %v3940_v52 = vpop.f32.mrf.mxu2  ;;  %v3953_v40 = vpop.f32.mrf.mxu3 }
 0x41a   :  { %v3941_v54 = vadd.f32 %v3940_v52, %v3928_v56 }
 0x41c   :  { %v3954_v60 = vadd.f32 %v3953_v40, %v3941_v54 }
 0x41e   :  { %v3960_v61 = vmax.f32 %v3954_v60, 0.0 }
 0x41f   :  { %v4377_v10 = vpop.f32.mrf.mxu1 }
 0x420   :  { %v3964_v36 = vpack.c.bf16 %v3960_v61, %v3960_v61  ;;  %v4378_v58 = vadd.f32 %v4377_v10, %v4365_v30 }
 0x421   :  { %v3942_v0 = vpop.f32.mrf.mxu2  ;;  %v3955_v17 = vpop.f32.mrf.mxu3 }
 0x422   :  { %4402 = vmatmul.bf16.vlgmr.msra.gmra.mxu3 %v3964_v36 }
 0x427   :  { %v4379_v26 = vpop.f32.mrf.mxu1 }
 0x42f   :  { %v4429_v43 = vpop.f32.mrf.mxu1 }
 0x430   :  { %v4430_v7 = vadd.f32 %v4429_v43, %v4417_v34 }
 0x432   :  { %4454 = vmatmul.bf16.vlgmr.msrb.gmra.mxu3 %v3964_v36 }
 0x437   :  { %v4431_v55 = vpop.f32.mrf.mxu1 }
 0x465   :  { %v4390_v48 = vpop.f32.mrf.mxu2 }
 0x466   :  { %v4391_v46 = vadd.f32 %v4390_v48, %v4378_v58 }
 0x46d   :  { %v4392_v5 = vpop.f32.mrf.mxu2 }
 0x475   :  { %v4442_v2 = vpop.f32.mrf.mxu2 }
 0x476   :  { %v4443_v13 = vadd.f32 %v4442_v2, %v4430_v7 }
 0x47d   :  { %v4444_v51 = vpop.f32.mrf.mxu2 }
 0x4a5   :  { %v4403_v3 = vpop.f32.mrf.mxu3 }
 0x4a6   :  { %v4404_v62 = vadd.f32 %v4403_v3, %v4391_v46 }
 0x4a8   :  { %v4459_v22 = vmax.f32 %v4404_v62, 0.0 }
 0x4aa   :  { %v4461_v6 = vpack.c.bf16 %v4459_v22, %v4459_v22 }
 0x4ac   :  { %4603 = vmatmul.bf16.vlgmr.msrb.gmra.mxu0 %v4461_v6 }
 0x4ad   :  { %v4405_v27 = vpop.f32.mrf.mxu3 }
 0x4b5   :  { %v4455_v15 = vpop.f32.mrf.mxu3 }
 0x4b6   :  { %v4456_v41 = vadd.f32 %v4455_v15, %v4443_v13 }
 0x4b8   :  { %v4460_v8 = vmax.f32 %v4456_v41, 0.0 }
 0x4ba   :  { %v4462_v56 = vpack.c.bf16 %v4460_v8, %v4460_v8 }
 0x4bc   :  { %4616 = vmatmul.bf16.vlgmr.msrb.gmra.mxu1 %v4462_v56 }
 0x4bd   :  { %v4457_v42 = vpop.f32.mrf.mxu3 }
 0x529   :  { %v4604_v11 = vpop.f32.mrf.mxu0 }
 0x52a   :  { %v4605_v14 = vadd.f32 %v6697_v37, %v4604_v11 }
 0x531   :  { %v4606_v24 = vpop.f32.mrf.mxu0 }
 0x539   :  { %v4617_v49 = vpop.f32.mrf.mxu1 }
 0x53a   :  { %v4618_v44 = vadd.f32 %v4617_v49, %v4605_v14 }
 0x53c   :  { %4621 = vst [vmem:[#allocation17] sm:$0xff] %v4618_v44 }
 0x53d   :  { %4632 = dma.vmem_to_hbm [thread:$0]  %s4628_s7, 128, %s4630_s26, [#allocation5]  }
 0x541   :  { %v4619_v38 = vpop.f32.mrf.mxu1 }
 0x542   :  { %6925 = dma.done.wait [#allocation5], 128  }
 0x543   :  { %6926 = vsyncadd [#allocation5], 4294967168 }
 0x544   :  { %4637 = vsyncpa [#allocation4], 1 }
 0x545   :  { %4638 = vsyncpa [#allocation7], 1 }
 0x546   :  { %4639 = vsyncpa [#allocation10], 1 }
 0x547   :  { %4640 = vsyncpa [#allocation13], 1 }
 0x548   :  { %4641 = vsyncpa [#allocation16], 1 }
 0x549   :  { %4642 = vsyncpa [#allocation5], 1 }

</bundles_post_ra>
